<compile_context>
chip_gen: v7x
topology: tpu7x:2x2x1
jax: 0.10.0
libtpu: 0.0.40
codegen_flags: <defaults>
</compile_context>

<pallas_src>
import jax
import jax.numpy as jnp
from jax.experimental import pallas as pl
from jax.experimental.pallas import tpu as pltpu


# ------------------------------ fused kernel -------------------------------

def _fused_kernel(x_ref, a1_ref, b1_ref, s1a_ref, s1b_ref,
                  a2_ref, b2_ref, s2a_ref, s2b_ref, w3_ref, b3_ref,
                  o_ref, xpad_ref, p1pad_ref):
    """x_ref: (tb, 28, 28) f32.  o_ref: (tb, 10) log-probs.

    Layout convention: per-image rows are stacked along sublanes with stride
    32 (a multiple of 8 -> free reshapes), W*C is folded into lanes.  Rows
    beyond the valid output height of each image compute harmless junk that
    is never read downstream.
    """
    tb = x_ref.shape[0]
    f32 = jnp.float32
    m = tb * 32

    # ---------- stage 1: conv1(1->4,k5,p2) + bias + ReLU + 2x2 max-pool ----
    # H-padded input in scratch (zeroed every step: safe under megacore).
    xpad_ref[...] = jnp.zeros(xpad_ref.shape, f32)
    xpad_ref[0:tb, 2:30, :] = x_ref[...]
    xflat = xpad_ref[...].reshape((tb + 1) * 32, 28)

    # conv1 as 5 banded matmuls along W: acc1[(b,oh), ow*4+oc]
    acc1 = jnp.dot(xflat[0:m, :], a1_ref[0], preferred_element_type=f32)
    for kh in range(1, 5):
        acc1 = acc1 + jnp.dot(xflat[kh:kh + m, :], a1_ref[kh],
                              preferred_element_type=f32)
    z1 = jnp.maximum(acc1 + b1_ref[...], 0.0)                  # (m, 112)

    # W-pool via 0/1 selection matmuls (exact copies), H-pool via row pairs.
    zw1 = jnp.maximum(jnp.dot(z1, s1a_ref[...], preferred_element_type=f32),
                      jnp.dot(z1, s1b_ref[...], preferred_element_type=f32))
    zh1 = zw1.reshape(tb * 16, 2, 56)
    q1 = jnp.maximum(zh1[:, 0, :], zh1[:, 1, :])               # (tb*16, 56)
    q1_3d = q1.reshape(tb, 16, 56)                             # rows 0..13 valid

    # ---------- stage 2: conv2(4->16,k5,p2) + bias + ReLU + 2x2 max-pool ---
    p1pad_ref[...] = jnp.zeros(p1pad_ref.shape, f32)
    p1pad_ref[0:tb, 2:16, :] = q1_3d[:, 0:14, :]
    pflat = p1pad_ref[...].reshape((tb + 1) * 32, 56)

    # conv2 as 5 banded matmuls along W*Cin: acc2[(b,oh), ow*16+oc]
    acc2 = jnp.dot(pflat[0:m, :], a2_ref[0], preferred_element_type=f32)
    for kh in range(1, 5):
        acc2 = acc2 + jnp.dot(pflat[kh:kh + m, :], a2_ref[kh],
                              preferred_element_type=f32)
    z2 = jnp.maximum(acc2 + b2_ref[...], 0.0)                  # (m, 224)

    zw2 = jnp.maximum(jnp.dot(z2, s2a_ref[...], preferred_element_type=f32),
                      jnp.dot(z2, s2b_ref[...], preferred_element_type=f32))
    zh2 = zw2.reshape(tb * 16, 2, 112)
    q2 = jnp.maximum(zh2[:, 0, :], zh2[:, 1, :])               # (tb*16, 112)
    q2_3d = q2.reshape(tb, 16, 112)                            # rows 0..6 valid

    # ---------- fc3 + log_softmax ----------
    logits = b3_ref[...] + jnp.dot(q2_3d[:, 0, :], w3_ref[0],
                                   preferred_element_type=f32)
    for h in range(1, 7):
        logits = logits + jnp.dot(q2_3d[:, h, :], w3_ref[h],
                                  preferred_element_type=f32)
    mx = jnp.max(logits, axis=-1, keepdims=True)
    lse = mx + jnp.log(jnp.sum(jnp.exp(logits - mx), axis=-1, keepdims=True))
    o_ref[...] = logits - lse


# --------------------- trace-time operand construction ---------------------

def _build_operands(params):
    """Tiny one-time weight re-layouts done by XLA at trace time."""
    f32 = jnp.float32
    w1 = params["w1"].astype(f32)[:, 0]        # (4, 5, 5)    (oc, kh, kw)
    w2 = params["w2"].astype(f32)              # (16, 4, 5, 5)
    w3 = params["w3"].astype(f32)              # (10, 784)
    kh_idx = jnp.arange(5)

    # conv1 banded weights: a1[kh, iw, ow*4+oc] = w1[oc, kh, iw-ow+2]
    iw1 = jnp.arange(28)
    col1 = jnp.arange(112)
    ow1, oc1 = col1 // 4, col1 % 4
    kw1 = iw1[:, None] - ow1[None, :] + 2
    a1 = w1[oc1[None, None, :], kh_idx[:, None, None], jnp.clip(kw1, 0, 4)[None]]
    a1 = jnp.where(((kw1 >= 0) & (kw1 <= 4))[None], a1, 0.0)       # (5, 28, 112)

    # conv2 banded weights: a2[kh, iw*4+ic, ow*16+oc] = w2[oc, ic, kh, iw-ow+2]
    in2 = jnp.arange(56)
    iw2, ic2 = in2 // 4, in2 % 4
    col2 = jnp.arange(224)
    ow2, oc2 = col2 // 16, col2 % 16
    kw2 = iw2[:, None] - ow2[None, :] + 2
    a2 = w2[oc2[None, None, :], ic2[None, :, None], kh_idx[:, None, None],
            jnp.clip(kw2, 0, 4)[None]]
    a2 = jnp.where(((kw2 >= 0) & (kw2 <= 4))[None], a2, 0.0)       # (5, 56, 224)

    # 0/1 lane-selection matrices for the 2x2 max-pool along W.
    o1 = jnp.arange(56)
    s1a = jnp.zeros((112, 56), f32).at[8 * (o1 // 4) + o1 % 4, o1].set(1.0)
    s1b = jnp.zeros((112, 56), f32).at[8 * (o1 // 4) + 4 + o1 % 4, o1].set(1.0)
    o2 = jnp.arange(112)
    s2a = jnp.zeros((224, 112), f32).at[32 * (o2 // 16) + o2 % 16, o2].set(1.0)
    s2b = jnp.zeros((224, 112), f32).at[32 * (o2 // 16) + 16 + o2 % 16, o2].set(1.0)

    # fc3 weight grouped per pooled row h: w3h[h, w*16+c, o] == w3[o, c*49+h*7+w]
    w3h = jnp.transpose(w3.reshape(10, 16, 7, 7), (2, 3, 1, 0)).reshape(7, 112, 10)

    b1l = jnp.tile(params["b1"].astype(f32), 28).reshape(1, 112)
    b2l = jnp.tile(params["b2"].astype(f32), 14).reshape(1, 224)
    b3l = params["b3"].astype(f32).reshape(1, 10)
    return (a1, b1l, s1a, s1b, a2, b2l, s2a, s2b, w3h, b3l)


# --------------------------------- wrapper ----------------------------------

def _pick_batch_tile(n, max_tile=64):
    # Large tiles amortize the ~0.35 us/step grid overhead; 64 keeps the
    # double-buffered blocks + scratch well inside v7x's 64 MiB VMEM.
    return n if n <= max_tile else max_tile


@jax.jit
def simple_mnist_convnet_forward(x_nchw, params):
    n = x_nchw.shape[0]
    x = x_nchw.reshape(n, 28, 28).astype(jnp.float32)      # drop the C=1 dim

    tb = _pick_batch_tile(n)
    n_pad = -(-n // tb) * tb
    if n_pad != n:
        x = jnp.pad(x, ((0, n_pad - n), (0, 0), (0, 0)))
    grid = (n_pad // tb,)

    operands = _build_operands(params)

    out = pl.pallas_call(
        _fused_kernel,
        out_shape=jax.ShapeDtypeStruct((n_pad, 10), jnp.float32),
        grid=grid,
        in_specs=[
            pl.BlockSpec((tb, 28, 28), lambda i: (i, 0, 0)),     # images
            pl.BlockSpec((5, 28, 112), lambda i: (0, 0, 0)),     # a1
            pl.BlockSpec((1, 112), lambda i: (0, 0)),            # b1 lanes
            pl.BlockSpec((112, 56), lambda i: (0, 0)),           # s1a
            pl.BlockSpec((112, 56), lambda i: (0, 0)),           # s1b
            pl.BlockSpec((5, 56, 224), lambda i: (0, 0, 0)),     # a2
            pl.BlockSpec((1, 224), lambda i: (0, 0)),            # b2 lanes
            pl.BlockSpec((224, 112), lambda i: (0, 0)),          # s2a
            pl.BlockSpec((224, 112), lambda i: (0, 0)),          # s2b
            pl.BlockSpec((7, 112, 10), lambda i: (0, 0, 0)),     # fc3
            pl.BlockSpec((1, 10), lambda i: (0, 0)),             # b3
        ],
        out_specs=pl.BlockSpec((tb, 10), lambda i: (i, 0)),
        scratch_shapes=[
            pltpu.VMEM((tb + 1, 32, 28), jnp.float32),   # H-padded conv1 input
            pltpu.VMEM((tb + 1, 32, 56), jnp.float32),   # H-padded conv2 input
        ],
        compiler_params=pltpu.CompilerParams(
            dimension_semantics=("parallel",),
            vmem_limit_bytes=40 * 1024 * 1024,
        ),
    )(x, *operands)

    return out[:n]


# ---------------------------- reference / init ------------------------------

def _reference_forward(x_nchw, params):
    hi = jax.lax.Precision.HIGHEST
    dn = ("NCHW", "OIHW", "NCHW")
    y = jax.lax.conv_general_dilated(x_nchw, params["w1"], (1, 1), ((2, 2), (2, 2)),
                                     dimension_numbers=dn, precision=hi)
    y = jax.nn.relu(y + params["b1"][None, :, None, None])
    y = jax.lax.reduce_window(y, -jnp.inf, jax.lax.max, (1, 1, 2, 2), (1, 1, 2, 2), "VALID")
    y = jax.lax.conv_general_dilated(y, params["w2"], (1, 1), ((2, 2), (2, 2)),
                                     dimension_numbers=dn, precision=hi)
    y = jax.nn.relu(y + params["b2"][None, :, None, None])
    y = jax.lax.reduce_window(y, -jnp.inf, jax.lax.max, (1, 1, 2, 2), (1, 1, 2, 2), "VALID")
    flat = y.reshape(y.shape[0], -1)
    logits = jnp.dot(flat, params["w3"].T, precision=hi) + params["b3"]
    return jax.nn.log_softmax(logits, axis=-1)


def init_params(key):
    k1, k2, k3, k4, k5, k6 = jax.random.split(key, 6)
    w1 = jax.random.normal(k1, (4, 1, 5, 5), jnp.float32) * (1.0 / (1 * 25) ** 0.5)
    b1 = jax.random.normal(k2, (4,), jnp.float32) * 0.01
    w2 = jax.random.normal(k3, (16, 4, 5, 5), jnp.float32) * (1.0 / (4 * 25) ** 0.5)
    b2 = jax.random.normal(k4, (16,), jnp.float32) * 0.01
    w3 = jax.random.normal(k5, (10, 7 * 7 * 16), jnp.float32) * (1.0 / 784.0 ** 0.5)
    b3 = jax.random.normal(k6, (10,), jnp.float32) * 0.01
    return dict(w1=w1, b1=b1, w2=w2, b2=b2, w3=w3, b3=b3)


if __name__ == "__main__":
    key = jax.random.PRNGKey(0)
    kx, kp = jax.random.split(key)
    # MNIST-shaped input (fc3 hard-codes 7*7*16, so spatial must be 28x28).
    x = jax.random.normal(kx, (2, 1, 28, 28), jnp.float32)
    params = init_params(kp)

    out = jax.block_until_ready(simple_mnist_convnet_forward(x, params))
    assert out.shape == (2, 10)

    ref = jax.block_until_ready(_reference_forward(x, params))
    assert jnp.allclose(jnp.sum(jnp.exp(out), axis=-1), 1.0, atol=1e-4)
    err = float(jnp.max(jnp.abs(out - ref)))
    assert jnp.allclose(out, ref, atol=5e-4, rtol=5e-4), err
    print("KERNEL_OK")
</pallas_src>

<mosaic_0001>
module attributes {stable_mosaic.version = 11 : i64} {
  func.func @_fused_kernel(%arg0: i32, %arg1: memref<2x28x28xf32, #tpu.memory_space<vmem>>, %arg2: memref<5x28x112xf32, #tpu.memory_space<vmem>>, %arg3: memref<1x112xf32, #tpu.memory_space<vmem>>, %arg4: memref<112x56xf32, #tpu.memory_space<vmem>>, %arg5: memref<112x56xf32, #tpu.memory_space<vmem>>, %arg6: memref<5x56x224xf32, #tpu.memory_space<vmem>>, %arg7: memref<1x224xf32, #tpu.memory_space<vmem>>, %arg8: memref<224x112xf32, #tpu.memory_space<vmem>>, %arg9: memref<224x112xf32, #tpu.memory_space<vmem>>, %arg10: memref<7x112x10xf32, #tpu.memory_space<vmem>>, %arg11: memref<1x10xf32, #tpu.memory_space<vmem>>, %arg12: memref<2x10xf32, #tpu.memory_space<vmem>>, %arg13: memref<3x32x28xf32, #tpu.memory_space<vmem>>, %arg14: memref<3x32x56xf32, #tpu.memory_space<vmem>>) attributes {dimension_semantics = [#tpu.dimension_semantics<parallel>], iteration_bounds = array<i64: 1>, scalar_prefetch = 0 : i64, scratch_operands = 2 : i64, tpu.core_type = #tpu.core_type<tc>, window_params = [{transform_indices = @transform_0, window_bounds = array<i64: 2, 28, 28>}, {pipeline_mode = #tpu.pipeline_mode<synchronous>, transform_indices = @transform_1, window_bounds = array<i64: 5, 28, 112>}, {pipeline_mode = #tpu.pipeline_mode<synchronous>, transform_indices = @transform_2, window_bounds = array<i64: 1, 112>}, {pipeline_mode = #tpu.pipeline_mode<synchronous>, transform_indices = @transform_3, window_bounds = array<i64: 112, 56>}, {pipeline_mode = #tpu.pipeline_mode<synchronous>, transform_indices = @transform_4, window_bounds = array<i64: 112, 56>}, {pipeline_mode = #tpu.pipeline_mode<synchronous>, transform_indices = @transform_5, window_bounds = array<i64: 5, 56, 224>}, {pipeline_mode = #tpu.pipeline_mode<synchronous>, transform_indices = @transform_6, window_bounds = array<i64: 1, 224>}, {pipeline_mode = #tpu.pipeline_mode<synchronous>, transform_indices = @transform_7, window_bounds = array<i64: 224, 112>}, {pipeline_mode = #tpu.pipeline_mode<synchronous>, transform_indices = @transform_8, window_bounds = array<i64: 224, 112>}, {pipeline_mode = #tpu.pipeline_mode<synchronous>, transform_indices = @transform_9, window_bounds = array<i64: 7, 112, 10>}, {pipeline_mode = #tpu.pipeline_mode<synchronous>, transform_indices = @transform_10, window_bounds = array<i64: 1, 10>}, {transform_indices = @transform_11, window_bounds = array<i64: 2, 10>}]} {
    %cst = arith.constant 0.000000e+00 : f32
    %0 = vector.broadcast %cst : f32 to vector<3x32x28xf32>
    %c0 = arith.constant 0 : index
    %c0_0 = arith.constant 0 : index
    %c0_1 = arith.constant 0 : index
    %1 = vector.load %arg13[%c0, %c0_0, %c0_1] : memref<3x32x28xf32, #tpu.memory_space<vmem>>, vector<3x32x28xf32>
    tpu.vector_store %arg13[%c0, %c0_0, %c0_1], %0 {strides = array<i32>} : memref<3x32x28xf32, #tpu.memory_space<vmem>>, vector<3x32x28xf32>,
    %c0_2 = arith.constant 0 : index
    %c0_3 = arith.constant 0 : index
    %c0_4 = arith.constant 0 : index
    %2 = vector.load %arg1[%c0_2, %c0_3, %c0_4] : memref<2x28x28xf32, #tpu.memory_space<vmem>>, vector<2x28x28xf32>
    %c0_5 = arith.constant 0 : index
    %c2 = arith.constant 2 : index
    %c0_6 = arith.constant 0 : index
    %3 = vector.load %arg13[%c0_5, %c2, %c0_6] : memref<3x32x28xf32, #tpu.memory_space<vmem>>, vector<2x28x28xf32>
    tpu.vector_store %arg13[%c0_5, %c2, %c0_6], %2 {strides = array<i32>} : memref<3x32x28xf32, #tpu.memory_space<vmem>>, vector<2x28x28xf32>,
    %c0_7 = arith.constant 0 : index
    %c0_8 = arith.constant 0 : index
    %c0_9 = arith.constant 0 : index
    %4 = vector.load %arg13[%c0_7, %c0_8, %c0_9] : memref<3x32x28xf32, #tpu.memory_space<vmem>>, vector<3x32x28xf32>
    %5 = vector.shape_cast %4 : vector<3x32x28xf32> to vector<96x28xf32>
    %6 = vector.extract_strided_slice %5 {offsets = [0, 0], sizes = [64, 28], strides = [1, 1]} : vector<96x28xf32> to vector<64x28xf32>
    %c0_10 = arith.constant 0 : index
    %c0_11 = arith.constant 0 : index
    %c0_12 = arith.constant 0 : index
    %7 = vector.load %arg2[%c0_10, %c0_11, %c0_12] : memref<5x28x112xf32, #tpu.memory_space<vmem>>, vector<1x28x112xf32>
    %8 = vector.shape_cast %7 : vector<1x28x112xf32> to vector<28x112xf32>
    %cst_13 = arith.constant dense<0.000000e+00> : vector<64x112xf32>
    %9 = tpu.matmul %6, %8, %cst_13 {dimension_numbers = #tpu.dot_dimension_numbers<[1], [0], [0], [1], [0, 0, 1, 1], [], []>} : vector<64x28xf32>, vector<28x112xf32>, vector<64x112xf32> -> vector<64x112xf32>
    %10 = vector.extract_strided_slice %5 {offsets = [1, 0], sizes = [64, 28], strides = [1, 1]} : vector<96x28xf32> to vector<64x28xf32>
    %c1 = arith.constant 1 : index
    %c0_14 = arith.constant 0 : index
    %c0_15 = arith.constant 0 : index
    %11 = vector.load %arg2[%c1, %c0_14, %c0_15] : memref<5x28x112xf32, #tpu.memory_space<vmem>>, vector<1x28x112xf32>
    %12 = vector.shape_cast %11 : vector<1x28x112xf32> to vector<28x112xf32>
    %cst_16 = arith.constant dense<0.000000e+00> : vector<64x112xf32>
    %13 = tpu.matmul %10, %12, %cst_16 {dimension_numbers = #tpu.dot_dimension_numbers<[1], [0], [0], [1], [0, 0, 1, 1], [], []>} : vector<64x28xf32>, vector<28x112xf32>, vector<64x112xf32> -> vector<64x112xf32>
    %14 = arith.addf %9, %13 : vector<64x112xf32>
    %15 = vector.extract_strided_slice %5 {offsets = [2, 0], sizes = [64, 28], strides = [1, 1]} : vector<96x28xf32> to vector<64x28xf32>
    %c2_17 = arith.constant 2 : index
    %c0_18 = arith.constant 0 : index
    %c0_19 = arith.constant 0 : index
    %16 = vector.load %arg2[%c2_17, %c0_18, %c0_19] : memref<5x28x112xf32, #tpu.memory_space<vmem>>, vector<1x28x112xf32>
    %17 = vector.shape_cast %16 : vector<1x28x112xf32> to vector<28x112xf32>
    %cst_20 = arith.constant dense<0.000000e+00> : vector<64x112xf32>
    %18 = tpu.matmul %15, %17, %cst_20 {dimension_numbers = #tpu.dot_dimension_numbers<[1], [0], [0], [1], [0, 0, 1, 1], [], []>} : vector<64x28xf32>, vector<28x112xf32>, vector<64x112xf32> -> vector<64x112xf32>
    %19 = arith.addf %14, %18 : vector<64x112xf32>
    %20 = vector.extract_strided_slice %5 {offsets = [3, 0], sizes = [64, 28], strides = [1, 1]} : vector<96x28xf32> to vector<64x28xf32>
    %c3 = arith.constant 3 : index
    %c0_21 = arith.constant 0 : index
    %c0_22 = arith.constant 0 : index
    %21 = vector.load %arg2[%c3, %c0_21, %c0_22] : memref<5x28x112xf32, #tpu.memory_space<vmem>>, vector<1x28x112xf32>
    %22 = vector.shape_cast %21 : vector<1x28x112xf32> to vector<28x112xf32>
    %cst_23 = arith.constant dense<0.000000e+00> : vector<64x112xf32>
    %23 = tpu.matmul %20, %22, %cst_23 {dimension_numbers = #tpu.dot_dimension_numbers<[1], [0], [0], [1], [0, 0, 1, 1], [], []>} : vector<64x28xf32>, vector<28x112xf32>, vector<64x112xf32> -> vector<64x112xf32>
    %24 = arith.addf %19, %23 : vector<64x112xf32>
    %25 = vector.extract_strided_slice %5 {offsets = [4, 0], sizes = [64, 28], strides = [1, 1]} : vector<96x28xf32> to vector<64x28xf32>
    %c4 = arith.constant 4 : index
    %c0_24 = arith.constant 0 : index
    %c0_25 = arith.constant 0 : index
    %26 = vector.load %arg2[%c4, %c0_24, %c0_25] : memref<5x28x112xf32, #tpu.memory_space<vmem>>, vector<1x28x112xf32>
    %27 = vector.shape_cast %26 : vector<1x28x112xf32> to vector<28x112xf32>
    %cst_26 = arith.constant dense<0.000000e+00> : vector<64x112xf32>
    %28 = tpu.matmul %25, %27, %cst_26 {dimension_numbers = #tpu.dot_dimension_numbers<[1], [0], [0], [1], [0, 0, 1, 1], [], []>} : vector<64x28xf32>, vector<28x112xf32>, vector<64x112xf32> -> vector<64x112xf32>
    %29 = arith.addf %24, %28 : vector<64x112xf32>
    %c0_27 = arith.constant 0 : index
    %c0_28 = arith.constant 0 : index
    %30 = vector.load %arg3[%c0_27, %c0_28] : memref<1x112xf32, #tpu.memory_space<vmem>>, vector<1x112xf32>
    %31 = vector.broadcast %30 : vector<1x112xf32> to vector<64x112xf32>
    %32 = arith.addf %29, %31 : vector<64x112xf32>
    %cst_29 = arith.constant 0.000000e+00 : f32
    %33 = vector.broadcast %cst_29 : f32 to vector<64x112xf32>
    %34 = arith.maximumf %32, %33 : vector<64x112xf32>
    %c0_30 = arith.constant 0 : index
    %c0_31 = arith.constant 0 : index
    %35 = vector.load %arg4[%c0_30, %c0_31] : memref<112x56xf32, #tpu.memory_space<vmem>>, vector<112x56xf32>
    %cst_32 = arith.constant dense<0.000000e+00> : vector<64x56xf32>
    %36 = tpu.matmul %34, %35, %cst_32 {dimension_numbers = #tpu.dot_dimension_numbers<[1], [0], [0], [1], [0, 0, 1, 1], [], []>} : vector<64x112xf32>, vector<112x56xf32>, vector<64x56xf32> -> vector<64x56xf32>
    %c0_33 = arith.constant 0 : index
    %c0_34 = arith.constant 0 : index
    %37 = vector.load %arg5[%c0_33, %c0_34] : memref<112x56xf32, #tpu.memory_space<vmem>>, vector<112x56xf32>
    %cst_35 = arith.constant dense<0.000000e+00> : vector<64x56xf32>
    %38 = tpu.matmul %34, %37, %cst_35 {dimension_numbers = #tpu.dot_dimension_numbers<[1], [0], [0], [1], [0, 0, 1, 1], [], []>} : vector<64x112xf32>, vector<112x56xf32>, vector<64x56xf32> -> vector<64x56xf32>
    %39 = arith.maximumf %36, %38 : vector<64x56xf32>
    %40 = vector.shape_cast %39 : vector<64x56xf32> to vector<32x2x56xf32>
    %41 = vector.extract_strided_slice %40 {offsets = [0, 0, 0], sizes = [32, 1, 56], strides = [1, 1, 1]} : vector<32x2x56xf32> to vector<32x1x56xf32>
    %42 = vector.shape_cast %41 : vector<32x1x56xf32> to vector<32x56xf32>
    %43 = vector.extract_strided_slice %40 {offsets = [0, 1, 0], sizes = [32, 1, 56], strides = [1, 1, 1]} : vector<32x2x56xf32> to vector<32x1x56xf32>
    %44 = vector.shape_cast %43 : vector<32x1x56xf32> to vector<32x56xf32>
    %45 = arith.maximumf %42, %44 : vector<32x56xf32>
    %46 = vector.shape_cast %45 : vector<32x56xf32> to vector<2x16x56xf32>
    %cst_36 = arith.constant 0.000000e+00 : f32
    %47 = vector.broadcast %cst_36 : f32 to vector<3x32x56xf32>
    %c0_37 = arith.constant 0 : index
    %c0_38 = arith.constant 0 : index
    %c0_39 = arith.constant 0 : index
    %48 = vector.load %arg14[%c0_37, %c0_38, %c0_39] : memref<3x32x56xf32, #tpu.memory_space<vmem>>, vector<3x32x56xf32>
    tpu.vector_store %arg14[%c0_37, %c0_38, %c0_39], %47 {strides = array<i32>} : memref<3x32x56xf32, #tpu.memory_space<vmem>>, vector<3x32x56xf32>,
    %49 = vector.extract_strided_slice %46 {offsets = [0, 0, 0], sizes = [2, 14, 56], strides = [1, 1, 1]} : vector<2x16x56xf32> to vector<2x14x56xf32>
    %c0_40 = arith.constant 0 : index
    %c2_41 = arith.constant 2 : index
    %c0_42 = arith.constant 0 : index
    %50 = vector.load %arg14[%c0_40, %c2_41, %c0_42] : memref<3x32x56xf32, #tpu.memory_space<vmem>>, vector<2x14x56xf32>
    tpu.vector_store %arg14[%c0_40, %c2_41, %c0_42], %49 {strides = array<i32>} : memref<3x32x56xf32, #tpu.memory_space<vmem>>, vector<2x14x56xf32>,
    %c0_43 = arith.constant 0 : index
    %c0_44 = arith.constant 0 : index
    %c0_45 = arith.constant 0 : index
    %51 = vector.load %arg14[%c0_43, %c0_44, %c0_45] : memref<3x32x56xf32, #tpu.memory_space<vmem>>, vector<3x32x56xf32>
    %52 = vector.shape_cast %51 : vector<3x32x56xf32> to vector<96x56xf32>
    %53 = vector.extract_strided_slice %52 {offsets = [0, 0], sizes = [64, 56], strides = [1, 1]} : vector<96x56xf32> to vector<64x56xf32>
    %c0_46 = arith.constant 0 : index
    %c0_47 = arith.constant 0 : index
    %c0_48 = arith.constant 0 : index
    %54 = vector.load %arg6[%c0_46, %c0_47, %c0_48] : memref<5x56x224xf32, #tpu.memory_space<vmem>>, vector<1x56x224xf32>
    %55 = vector.shape_cast %54 : vector<1x56x224xf32> to vector<56x224xf32>
    %cst_49 = arith.constant dense<0.000000e+00> : vector<64x224xf32>
    %56 = tpu.matmul %53, %55, %cst_49 {dimension_numbers = #tpu.dot_dimension_numbers<[1], [0], [0], [1], [0, 0, 1, 1], [], []>} : vector<64x56xf32>, vector<56x224xf32>, vector<64x224xf32> -> vector<64x224xf32>
    %57 = vector.extract_strided_slice %52 {offsets = [1, 0], sizes = [64, 56], strides = [1, 1]} : vector<96x56xf32> to vector<64x56xf32>
    %c1_50 = arith.constant 1 : index
    %c0_51 = arith.constant 0 : index
    %c0_52 = arith.constant 0 : index
    %58 = vector.load %arg6[%c1_50, %c0_51, %c0_52] : memref<5x56x224xf32, #tpu.memory_space<vmem>>, vector<1x56x224xf32>
    %59 = vector.shape_cast %58 : vector<1x56x224xf32> to vector<56x224xf32>
    %cst_53 = arith.constant dense<0.000000e+00> : vector<64x224xf32>
    %60 = tpu.matmul %57, %59, %cst_53 {dimension_numbers = #tpu.dot_dimension_numbers<[1], [0], [0], [1], [0, 0, 1, 1], [], []>} : vector<64x56xf32>, vector<56x224xf32>, vector<64x224xf32> -> vector<64x224xf32>
    %61 = arith.addf %56, %60 : vector<64x224xf32>
    %62 = vector.extract_strided_slice %52 {offsets = [2, 0], sizes = [64, 56], strides = [1, 1]} : vector<96x56xf32> to vector<64x56xf32>
    %c2_54 = arith.constant 2 : index
    %c0_55 = arith.constant 0 : index
    %c0_56 = arith.constant 0 : index
    %63 = vector.load %arg6[%c2_54, %c0_55, %c0_56] : memref<5x56x224xf32, #tpu.memory_space<vmem>>, vector<1x56x224xf32>
    %64 = vector.shape_cast %63 : vector<1x56x224xf32> to vector<56x224xf32>
    %cst_57 = arith.constant dense<0.000000e+00> : vector<64x224xf32>
    %65 = tpu.matmul %62, %64, %cst_57 {dimension_numbers = #tpu.dot_dimension_numbers<[1], [0], [0], [1], [0, 0, 1, 1], [], []>} : vector<64x56xf32>, vector<56x224xf32>, vector<64x224xf32> -> vector<64x224xf32>
    %66 = arith.addf %61, %65 : vector<64x224xf32>
    %67 = vector.extract_strided_slice %52 {offsets = [3, 0], sizes = [64, 56], strides = [1, 1]} : vector<96x56xf32> to vector<64x56xf32>
    %c3_58 = arith.constant 3 : index
    %c0_59 = arith.constant 0 : index
    %c0_60 = arith.constant 0 : index
    %68 = vector.load %arg6[%c3_58, %c0_59, %c0_60] : memref<5x56x224xf32, #tpu.memory_space<vmem>>, vector<1x56x224xf32>
    %69 = vector.shape_cast %68 : vector<1x56x224xf32> to vector<56x224xf32>
    %cst_61 = arith.constant dense<0.000000e+00> : vector<64x224xf32>
    %70 = tpu.matmul %67, %69, %cst_61 {dimension_numbers = #tpu.dot_dimension_numbers<[1], [0], [0], [1], [0, 0, 1, 1], [], []>} : vector<64x56xf32>, vector<56x224xf32>, vector<64x224xf32> -> vector<64x224xf32>
    %71 = arith.addf %66, %70 : vector<64x224xf32>
    %72 = vector.extract_strided_slice %52 {offsets = [4, 0], sizes = [64, 56], strides = [1, 1]} : vector<96x56xf32> to vector<64x56xf32>
    %c4_62 = arith.constant 4 : index
    %c0_63 = arith.constant 0 : index
    %c0_64 = arith.constant 0 : index
    %73 = vector.load %arg6[%c4_62, %c0_63, %c0_64] : memref<5x56x224xf32, #tpu.memory_space<vmem>>, vector<1x56x224xf32>
    %74 = vector.shape_cast %73 : vector<1x56x224xf32> to vector<56x224xf32>
    %cst_65 = arith.constant dense<0.000000e+00> : vector<64x224xf32>
    %75 = tpu.matmul %72, %74, %cst_65 {dimension_numbers = #tpu.dot_dimension_numbers<[1], [0], [0], [1], [0, 0, 1, 1], [], []>} : vector<64x56xf32>, vector<56x224xf32>, vector<64x224xf32> -> vector<64x224xf32>
    %76 = arith.addf %71, %75 : vector<64x224xf32>
    %c0_66 = arith.constant 0 : index
    %c0_67 = arith.constant 0 : index
    %77 = vector.load %arg7[%c0_66, %c0_67] : memref<1x224xf32, #tpu.memory_space<vmem>>, vector<1x224xf32>
    %78 = vector.broadcast %77 : vector<1x224xf32> to vector<64x224xf32>
    %79 = arith.addf %76, %78 : vector<64x224xf32>
    %cst_68 = arith.constant 0.000000e+00 : f32
    %80 = vector.broadcast %cst_68 : f32 to vector<64x224xf32>
    %81 = arith.maximumf %79, %80 : vector<64x224xf32>
    %c0_69 = arith.constant 0 : index
    %c0_70 = arith.constant 0 : index
    %82 = vector.load %arg8[%c0_69, %c0_70] : memref<224x112xf32, #tpu.memory_space<vmem>>, vector<224x112xf32>
    %cst_71 = arith.constant dense<0.000000e+00> : vector<64x112xf32>
    %83 = tpu.matmul %81, %82, %cst_71 {dimension_numbers = #tpu.dot_dimension_numbers<[1], [0], [0], [1], [0, 0, 1, 1], [], []>} : vector<64x224xf32>, vector<224x112xf32>, vector<64x112xf32> -> vector<64x112xf32>
    %c0_72 = arith.constant 0 : index
    %c0_73 = arith.constant 0 : index
    %84 = vector.load %arg9[%c0_72, %c0_73] : memref<224x112xf32, #tpu.memory_space<vmem>>, vector<224x112xf32>
    %cst_74 = arith.constant dense<0.000000e+00> : vector<64x112xf32>
    %85 = tpu.matmul %81, %84, %cst_74 {dimension_numbers = #tpu.dot_dimension_numbers<[1], [0], [0], [1], [0, 0, 1, 1], [], []>} : vector<64x224xf32>, vector<224x112xf32>, vector<64x112xf32> -> vector<64x112xf32>
    %86 = arith.maximumf %83, %85 : vector<64x112xf32>
    %87 = vector.shape_cast %86 : vector<64x112xf32> to vector<32x2x112xf32>
    %88 = vector.extract_strided_slice %87 {offsets = [0, 0, 0], sizes = [32, 1, 112], strides = [1, 1, 1]} : vector<32x2x112xf32> to vector<32x1x112xf32>
    %89 = vector.shape_cast %88 : vector<32x1x112xf32> to vector<32x112xf32>
    %90 = vector.extract_strided_slice %87 {offsets = [0, 1, 0], sizes = [32, 1, 112], strides = [1, 1, 1]} : vector<32x2x112xf32> to vector<32x1x112xf32>
    %91 = vector.shape_cast %90 : vector<32x1x112xf32> to vector<32x112xf32>
    %92 = arith.maximumf %89, %91 : vector<32x112xf32>
    %93 = vector.shape_cast %92 : vector<32x112xf32> to vector<2x16x112xf32>
    %c0_75 = arith.constant 0 : index
    %c0_76 = arith.constant 0 : index
    %94 = vector.load %arg11[%c0_75, %c0_76] : memref<1x10xf32, #tpu.memory_space<vmem>>, vector<1x10xf32>
    %95 = vector.extract_strided_slice %93 {offsets = [0, 0, 0], sizes = [2, 1, 112], strides = [1, 1, 1]} : vector<2x16x112xf32> to vector<2x1x112xf32>
    %96 = vector.shape_cast %95 : vector<2x1x112xf32> to vector<2x112xf32>
    %c0_77 = arith.constant 0 : index
    %c0_78 = arith.constant 0 : index
    %c0_79 = arith.constant 0 : index
    %97 = vector.load %arg10[%c0_77, %c0_78, %c0_79] : memref<7x112x10xf32, #tpu.memory_space<vmem>>, vector<1x112x10xf32>
    %98 = vector.shape_cast %97 : vector<1x112x10xf32> to vector<112x10xf32>
    %cst_80 = arith.constant dense<0.000000e+00> : vector<2x10xf32>
    %99 = tpu.matmul %96, %98, %cst_80 {dimension_numbers = #tpu.dot_dimension_numbers<[1], [0], [0], [1], [0, 0, 1, 1], [], []>} : vector<2x112xf32>, vector<112x10xf32>, vector<2x10xf32> -> vector<2x10xf32>
    %100 = vector.broadcast %94 : vector<1x10xf32> to vector<2x10xf32>
    %101 = arith.addf %100, %99 : vector<2x10xf32>
    %102 = vector.extract_strided_slice %93 {offsets = [0, 1, 0], sizes = [2, 1, 112], strides = [1, 1, 1]} : vector<2x16x112xf32> to vector<2x1x112xf32>
    %103 = vector.shape_cast %102 : vector<2x1x112xf32> to vector<2x112xf32>
    %c1_81 = arith.constant 1 : index
    %c0_82 = arith.constant 0 : index
    %c0_83 = arith.constant 0 : index
    %104 = vector.load %arg10[%c1_81, %c0_82, %c0_83] : memref<7x112x10xf32, #tpu.memory_space<vmem>>, vector<1x112x10xf32>
    %105 = vector.shape_cast %104 : vector<1x112x10xf32> to vector<112x10xf32>
    %cst_84 = arith.constant dense<0.000000e+00> : vector<2x10xf32>
    %106 = tpu.matmul %103, %105, %cst_84 {dimension_numbers = #tpu.dot_dimension_numbers<[1], [0], [0], [1], [0, 0, 1, 1], [], []>} : vector<2x112xf32>, vector<112x10xf32>, vector<2x10xf32> -> vector<2x10xf32>
    %107 = arith.addf %101, %106 : vector<2x10xf32>
    %108 = vector.extract_strided_slice %93 {offsets = [0, 2, 0], sizes = [2, 1, 112], strides = [1, 1, 1]} : vector<2x16x112xf32> to vector<2x1x112xf32>
    %109 = vector.shape_cast %108 : vector<2x1x112xf32> to vector<2x112xf32>
    %c2_85 = arith.constant 2 : index
    %c0_86 = arith.constant 0 : index
    %c0_87 = arith.constant 0 : index
    %110 = vector.load %arg10[%c2_85, %c0_86, %c0_87] : memref<7x112x10xf32, #tpu.memory_space<vmem>>, vector<1x112x10xf32>
    %111 = vector.shape_cast %110 : vector<1x112x10xf32> to vector<112x10xf32>
    %cst_88 = arith.constant dense<0.000000e+00> : vector<2x10xf32>
    %112 = tpu.matmul %109, %111, %cst_88 {dimension_numbers = #tpu.dot_dimension_numbers<[1], [0], [0], [1], [0, 0, 1, 1], [], []>} : vector<2x112xf32>, vector<112x10xf32>, vector<2x10xf32> -> vector<2x10xf32>
    %113 = arith.addf %107, %112 : vector<2x10xf32>
    %114 = vector.extract_strided_slice %93 {offsets = [0, 3, 0], sizes = [2, 1, 112], strides = [1, 1, 1]} : vector<2x16x112xf32> to vector<2x1x112xf32>
    %115 = vector.shape_cast %114 : vector<2x1x112xf32> to vector<2x112xf32>
    %c3_89 = arith.constant 3 : index
    %c0_90 = arith.constant 0 : index
    %c0_91 = arith.constant 0 : index
    %116 = vector.load %arg10[%c3_89, %c0_90, %c0_91] : memref<7x112x10xf32, #tpu.memory_space<vmem>>, vector<1x112x10xf32>
    %117 = vector.shape_cast %116 : vector<1x112x10xf32> to vector<112x10xf32>
    %cst_92 = arith.constant dense<0.000000e+00> : vector<2x10xf32>
    %118 = tpu.matmul %115, %117, %cst_92 {dimension_numbers = #tpu.dot_dimension_numbers<[1], [0], [0], [1], [0, 0, 1, 1], [], []>} : vector<2x112xf32>, vector<112x10xf32>, vector<2x10xf32> -> vector<2x10xf32>
    %119 = arith.addf %113, %118 : vector<2x10xf32>
    %120 = vector.extract_strided_slice %93 {offsets = [0, 4, 0], sizes = [2, 1, 112], strides = [1, 1, 1]} : vector<2x16x112xf32> to vector<2x1x112xf32>
    %121 = vector.shape_cast %120 : vector<2x1x112xf32> to vector<2x112xf32>
    %c4_93 = arith.constant 4 : index
    %c0_94 = arith.constant 0 : index
    %c0_95 = arith.constant 0 : index
    %122 = vector.load %arg10[%c4_93, %c0_94, %c0_95] : memref<7x112x10xf32, #tpu.memory_space<vmem>>, vector<1x112x10xf32>
    %123 = vector.shape_cast %122 : vector<1x112x10xf32> to vector<112x10xf32>
    %cst_96 = arith.constant dense<0.000000e+00> : vector<2x10xf32>
    %124 = tpu.matmul %121, %123, %cst_96 {dimension_numbers = #tpu.dot_dimension_numbers<[1], [0], [0], [1], [0, 0, 1, 1], [], []>} : vector<2x112xf32>, vector<112x10xf32>, vector<2x10xf32> -> vector<2x10xf32>
    %125 = arith.addf %119, %124 : vector<2x10xf32>
    %126 = vector.extract_strided_slice %93 {offsets = [0, 5, 0], sizes = [2, 1, 112], strides = [1, 1, 1]} : vector<2x16x112xf32> to vector<2x1x112xf32>
    %127 = vector.shape_cast %126 : vector<2x1x112xf32> to vector<2x112xf32>
    %c5 = arith.constant 5 : index
    %c0_97 = arith.constant 0 : index
    %c0_98 = arith.constant 0 : index
    %128 = vector.load %arg10[%c5, %c0_97, %c0_98] : memref<7x112x10xf32, #tpu.memory_space<vmem>>, vector<1x112x10xf32>
    %129 = vector.shape_cast %128 : vector<1x112x10xf32> to vector<112x10xf32>
    %cst_99 = arith.constant dense<0.000000e+00> : vector<2x10xf32>
    %130 = tpu.matmul %127, %129, %cst_99 {dimension_numbers = #tpu.dot_dimension_numbers<[1], [0], [0], [1], [0, 0, 1, 1], [], []>} : vector<2x112xf32>, vector<112x10xf32>, vector<2x10xf32> -> vector<2x10xf32>
    %131 = arith.addf %125, %130 : vector<2x10xf32>
    %132 = vector.extract_strided_slice %93 {offsets = [0, 6, 0], sizes = [2, 1, 112], strides = [1, 1, 1]} : vector<2x16x112xf32> to vector<2x1x112xf32>
    %133 = vector.shape_cast %132 : vector<2x1x112xf32> to vector<2x112xf32>
    %c6 = arith.constant 6 : index
    %c0_100 = arith.constant 0 : index
    %c0_101 = arith.constant 0 : index
    %134 = vector.load %arg10[%c6, %c0_100, %c0_101] : memref<7x112x10xf32, #tpu.memory_space<vmem>>, vector<1x112x10xf32>
    %135 = vector.shape_cast %134 : vector<1x112x10xf32> to vector<112x10xf32>
    %cst_102 = arith.constant dense<0.000000e+00> : vector<2x10xf32>
    %136 = tpu.matmul %133, %135, %cst_102 {dimension_numbers = #tpu.dot_dimension_numbers<[1], [0], [0], [1], [0, 0, 1, 1], [], []>} : vector<2x112xf32>, vector<112x10xf32>, vector<2x10xf32> -> vector<2x10xf32>
    %137 = arith.addf %131, %136 : vector<2x10xf32>
    %cst_103 = arith.constant dense<0xFF800000> : vector<2xf32>
    %138 = vector.multi_reduction <maximumf>, %137, %cst_103 [1] : vector<2x10xf32> to vector<2xf32>
    %139 = vector.shape_cast %138 : vector<2xf32> to vector<2x1xf32>
    %140 = vector.broadcast %139 : vector<2x1xf32> to vector<2x10xf32>
    %141 = arith.subf %137, %140 : vector<2x10xf32>
    %142 = math.exp %141 : vector<2x10xf32>
    %cst_104 = arith.constant dense<0.000000e+00> : vector<2xf32>
    %143 = vector.multi_reduction <add>, %142, %cst_104 [1] : vector<2x10xf32> to vector<2xf32>
    %144 = vector.shape_cast %143 : vector<2xf32> to vector<2x1xf32>
    %145 = math.log %144 : vector<2x1xf32>
    %146 = arith.addf %139, %145 : vector<2x1xf32>
    %147 = vector.broadcast %146 : vector<2x1xf32> to vector<2x10xf32>
    %148 = arith.subf %137, %147 : vector<2x10xf32>
    %c0_105 = arith.constant 0 : index
    %c0_106 = arith.constant 0 : index
    %149 = vector.load %arg12[%c0_105, %c0_106] : memref<2x10xf32, #tpu.memory_space<vmem>>, vector<2x10xf32>
    tpu.vector_store %arg12[%c0_105, %c0_106], %148 {strides = array<i32>} : memref<2x10xf32, #tpu.memory_space<vmem>>, vector<2x10xf32>,
    return
  }
  func.func @transform_0(%arg0: i32) -> (i32, i32, i32) {
    %c0_i32 = arith.constant 0 : i32
    %c0_i32_0 = arith.constant 0 : i32
    %c0_i32_1 = arith.constant 0 : i32
    return %arg0, %c0_i32, %c0_i32_0 : i32, i32, i32
  }
  func.func @transform_1(%arg0: i32) -> (i32, i32, i32) {
    %c0_i32 = arith.constant 0 : i32
    %c0_i32_0 = arith.constant 0 : i32
    %c0_i32_1 = arith.constant 0 : i32
    %c0_i32_2 = arith.constant 0 : i32
    return %c0_i32, %c0_i32_0, %c0_i32_1 : i32, i32, i32
  }
  func.func @transform_2(%arg0: i32) -> (i32, i32) {
    %c0_i32 = arith.constant 0 : i32
    %c0_i32_0 = arith.constant 0 : i32
    %c0_i32_1 = arith.constant 0 : i32
    return %c0_i32, %c0_i32_0 : i32, i32
  }
  func.func @transform_3(%arg0: i32) -> (i32, i32) {
    %c0_i32 = arith.constant 0 : i32
    %c0_i32_0 = arith.constant 0 : i32
    %c0_i32_1 = arith.constant 0 : i32
    return %c0_i32, %c0_i32_0 : i32, i32
  }
  func.func @transform_4(%arg0: i32) -> (i32, i32) {
    %c0_i32 = arith.constant 0 : i32
    %c0_i32_0 = arith.constant 0 : i32
    %c0_i32_1 = arith.constant 0 : i32
    return %c0_i32, %c0_i32_0 : i32, i32
  }
  func.func @transform_5(%arg0: i32) -> (i32, i32, i32) {
    %c0_i32 = arith.constant 0 : i32
    %c0_i32_0 = arith.constant 0 : i32
    %c0_i32_1 = arith.constant 0 : i32
    %c0_i32_2 = arith.constant 0 : i32
    return %c0_i32, %c0_i32_0, %c0_i32_1 : i32, i32, i32
  }
  func.func @transform_6(%arg0: i32) -> (i32, i32) {
    %c0_i32 = arith.constant 0 : i32
    %c0_i32_0 = arith.constant 0 : i32
    %c0_i32_1 = arith.constant 0 : i32
    return %c0_i32, %c0_i32_0 : i32, i32
  }
  func.func @transform_7(%arg0: i32) -> (i32, i32) {
    %c0_i32 = arith.constant 0 : i32
    %c0_i32_0 = arith.constant 0 : i32
    %c0_i32_1 = arith.constant 0 : i32
    return %c0_i32, %c0_i32_0 : i32, i32
  }
  func.func @transform_8(%arg0: i32) -> (i32, i32) {
    %c0_i32 = arith.constant 0 : i32
    %c0_i32_0 = arith.constant 0 : i32
    %c0_i32_1 = arith.constant 0 : i32
    return %c0_i32, %c0_i32_0 : i32, i32
  }
  func.func @transform_9(%arg0: i32) -> (i32, i32, i32) {
    %c0_i32 = arith.constant 0 : i32
    %c0_i32_0 = arith.constant 0 : i32
    %c0_i32_1 = arith.constant 0 : i32
    %c0_i32_2 = arith.constant 0 : i32
    return %c0_i32, %c0_i32_0, %c0_i32_1 : i32, i32, i32
  }
  func.func @transform_10(%arg0: i32) -> (i32, i32) {
    %c0_i32 = arith.constant 0 : i32
    %c0_i32_0 = arith.constant 0 : i32
    %c0_i32_1 = arith.constant 0 : i32
    return %c0_i32, %c0_i32_0 : i32, i32
  }
  func.func @transform_11(%arg0: i32) -> (i32, i32) {
    %c0_i32 = arith.constant 0 : i32
    %c0_i32_0 = arith.constant 0 : i32
    return %arg0, %c0_i32 : i32, i32
  }
}

</mosaic_0001>

<bundles_post_ra>
// kernel: tile.13
= control target key start
LH: loop header
LB: loop body
LE: loop exit
PB: predicated region body
PF: predicated region fallthrough
CT: control target
= control target key end

     0   :  { %s40_s0 = inlined_call_operand.vmem [shape: f32[4], index: 0, kind: input, shape index: {}]   ;;  %s41_s1 = inlined_call_operand.vmem [shape: f32[28,4], index: 1, kind: output, shape index: {}]  }
   0x1   :  { %v4_v0 = vld [vmem:[%s40_s0] ss:$0 sm:$0xff] }
   0x2   :  { %5 = vst [vmem:[%s41_s1] sm:$0xff] %v4_v0  ;;  %12 = vst [vmem:[%s41_s1 + $0x8] sm:$0xff] %v4_v0 }
   0x3   :  { %13 = vst [vmem:[%s41_s1 + $0x10] sm:$0xff] %v4_v0  ;;  %14 = vst [vmem:[%s41_s1 + $0x18] sm:$0xff] %v4_v0 }

// kernel: tile.14
= control target key start
LH: loop header
LB: loop body
LE: loop exit
PB: predicated region body
PF: predicated region fallthrough
CT: control target
= control target key end

     0   :  { %s227_s10 = smov 108   ;;  %s228_s11 = smov 100   ;;  %vm3_vm0 = vcmask 31744   ;;  %vm9_vm1 = vcmask 917344   ;;  %vm15_vm2 = vcmask 884544   ;;  %vm21_vm3 = vcmask 851744   ;;  %s351_s0 = inlined_call_operand.vmem [shape: f32[28,4], index: 0, kind: input, shape index: {}]   ;;  %s352_s1 = inlined_call_operand.vmem [shape: f32[1,112], index: 1, kind: output, shape index: {}]  }
   0x1   :  { %v173_v0 = vld [vmem:[%s351_s0 + $0x1b] sm:$0x1]   ;;  %v175_v1 = vld [vmem:[%s351_s0 + $0x19] sm:$0x1]   ;;  %v174_v2 = vld [vmem:[%s351_s0 + $0x1a] sm:$0x1]  }
   0x2   :  { %7 = vrot.lane.b32.xlu0 %v173_v0, %s227_s10  ;;  %19 = vrot.lane.b32.xlu1 %v175_v1, %s228_s11  ;;  %v176_v3 = vld [vmem:[%s351_s0 + $0x18] sm:$0x1]   ;;  %s229_s16 = smov 104   ;;  %s230_s17 = smov 96   ;;  %v177_v4 = vld [vmem:[%s351_s0 + $0x17] sm:$0x1]  }
   0x3   :  { %v178_v5 = vld [vmem:[%s351_s0 + $0x16] sm:$0x1]   ;;  %s231_s22 = smov 92   ;;  %s232_s23 = smov 88   ;;  %v179_v6 = vld [vmem:[%s351_s0 + $0x15] sm:$0x1]  }
   0x4   :  { %v180_v7 = vld [vmem:[%s351_s0 + $0x14] sm:$0x1]   ;;  %s233_s28 = smov 84   ;;  %s234_s29 = smov 80   ;;  %v181_v8 = vld [vmem:[%s351_s0 + $0x13] sm:$0x1]  }
   0x5   :  { %v2_v9 = vld [vmem:[%s351_s0] sm:$0x1]   ;;  %v182_v10 = vld [vmem:[%s351_s0 + $0x12] sm:$0x1]   ;;  %s235_s7 = smov 76   ;;  %s236_s8 = smov 72  }
   0x6   :  { %13 = vrot.lane.b32.xlu0 %v174_v2, %s229_s16  ;;  %25 = vrot.lane.b32.xlu1 %v176_v3, %s230_s17  ;;  %4 = vst.msk [vmem:[#allocation0] sm:$0x1] %vm3_vm0, %v2_v9   ;;  %v183_v11 = vld [vmem:[%s351_s0 + $0x11] sm:$0x1]   ;;  %v184_v12 = vld [vmem:[%s351_s0 + $0x10] sm:$0x1]  }
   0x7   :  { %s237_s13 = smov 68   ;;  %s238_s14 = smov 64   ;;  %v185_v13 = vld [vmem:[%s351_s0 + $0xf] sm:$0x1]   ;;  %v186_v14 = vld [vmem:[%s351_s0 + $0xe] sm:$0x1]  }
   0x8   :  { %s239_s19 = smov 60   ;;  %s240_s20 = smov 56   ;;  %v187_v15 = vld [vmem:[%s351_s0 + $0xd] sm:$0x1]   ;;  %v188_v16 = vld [vmem:[%s351_s0 + $0xc] sm:$0x1]  }
   0x9   :  { %s241_s25 = smov 52   ;;  %s242_s26 = smov 48   ;;  %v189_v17 = vld [vmem:[%s351_s0 + $0xb] sm:$0x1]   ;;  %v190_v18 = vld [vmem:[%s351_s0 + $0xa] sm:$0x1]  }
   0xa   :  { %31 = vrot.lane.b32.xlu0 %v177_v4, %s231_s22  ;;  %37 = vrot.lane.b32.xlu1 %v178_v5, %s232_s23  ;;  %s243_s2 = smov 44   ;;  %s244_s3 = smov 40   ;;  %v191_v19 = vld [vmem:[%s351_s0 + $0x9] sm:$0x1]   ;;  %v192_v20 = vld [vmem:[%s351_s0 + $0x8] sm:$0x1]  }
   0xb   :  { %s246_s9 = smov 32   ;;  %v193_v21 = vld [vmem:[%s351_s0 + $0x7] sm:$0x1]   ;;  %v194_v22 = vld [vmem:[%s351_s0 + $0x6] sm:$0x1]   ;;  %s248_s15 = smov 24  }
   0xc   :  { %v195_v23 = vld [vmem:[%s351_s0 + $0x5] sm:$0x1]   ;;  %v196_v24 = vld [vmem:[%s351_s0 + $0x4] sm:$0x1]   ;;  %s250_s21 = smov 16   ;;  %s252_s27 = smov 8  }
   0xd   :  { %v197_v25 = vld [vmem:[%s351_s0 + $0x3] sm:$0x1]   ;;  %v198_v26 = vld [vmem:[%s351_s0 + $0x2] sm:$0x1]   ;;  %v199_v27 = vld [vmem:[%s351_s0 + $0x1] sm:$0x1]  }
   0xe   :  { %43 = vrot.lane.b32.xlu0 %v179_v6, %s233_s28  ;;  %49 = vrot.lane.b32.xlu1 %v180_v7, %s234_s29  ;;  %s253_s0 = smov 4   ;;  %vm27_vm4 = vcmask 818944   ;;  %vm33_vm5 = vcmask 786144   ;;  %vm39_vm6 = vcmask 753344   ;;  %vm45_vm7 = vcmask 720544  }
   0xf   :  { %vm51_vm8 = vcmask 687744   ;;  %vm57_vm9 = vcmask 654944   ;;  %vm63_vm10 = vcmask 622144   ;;  %vm69_vm11 = vcmask 589344  }
  0x10   :  { %vm75_vm12 = vcmask 556544   ;;  %vm81_vm13 = vcmask 523744   ;;  %vm87_vm14 = vcmask 490944   ;;  %vm93_vm15 = vcmask 458144  }
  0x11   :  { %vm99_vm0 = vcmask 425344  }
  0x12   :  { %55 = vrot.lane.b32.xlu0 %v181_v8, %s235_s7  ;;  %61 = vrot.lane.b32.xlu1 %v182_v10, %s236_s8  ;;  %s245_s8 = smov 36  }
  0x16   :  { %67 = vrot.lane.b32.xlu0 %v183_v11, %s237_s13  ;;  %73 = vrot.lane.b32.xlu1 %v184_v12, %s238_s14  ;;  %s247_s14 = smov 28  }
  0x1a   :  { %79 = vrot.lane.b32.xlu0 %v185_v13, %s239_s19  ;;  %85 = vrot.lane.b32.xlu1 %v186_v14, %s240_s20  ;;  %s249_s20 = smov 20  }
  0x1e   :  { %91 = vrot.lane.b32.xlu0 %v187_v15, %s241_s25  ;;  %97 = vrot.lane.b32.xlu1 %v188_v16, %s242_s26  ;;  %s251_s26 = smov 12  }
  0x22   :  { %103 = vrot.lane.b32.xlu0 %v189_v17, %s243_s2  ;;  %109 = vrot.lane.b32.xlu1 %v190_v18, %s244_s3 }
  0x26   :  { %115 = vrot.lane.b32.xlu0 %v191_v19, %s245_s8  ;;  %121 = vrot.lane.b32.xlu1 %v192_v20, %s246_s9 }
  0x2a   :  { %127 = vrot.lane.b32.xlu0 %v193_v21, %s247_s14  ;;  %133 = vrot.lane.b32.xlu1 %v194_v22, %s248_s15 }
  0x2e   :  { %139 = vrot.lane.b32.xlu0 %v195_v23, %s249_s20  ;;  %145 = vrot.lane.b32.xlu1 %v196_v24, %s250_s21 }
  0x32   :  { %151 = vrot.lane.b32.xlu0 %v197_v25, %s251_s26  ;;  %157 = vrot.lane.b32.xlu1 %v198_v26, %s252_s27 }
  0x36   :  { %163 = vrot.lane.b32.xlu0 %v199_v27, %s253_s0 }
  0x74   :  { %v8_v28 = vpop.permute.xlu0 %7   ;;  %v20_v29 = vpop.permute.xlu1 %19  }
  0x75   :  { %10 = vst.msk [vmem:[#allocation0] sm:$0x1] %vm9_vm1, %v8_v28   ;;  %vm105_vm1 = vcmask 392544  }
  0x78   :  { %v14_v30 = vpop.permute.xlu0 %13   ;;  %v26_v31 = vpop.permute.xlu1 %25  }
  0x79   :  { %16 = vst.msk [vmem:[#allocation0] sm:$0x1] %vm15_vm2, %v14_v30   ;;  %vm111_vm2 = vcmask 359744  }
  0x7a   :  { %22 = vst.msk [vmem:[#allocation0] sm:$0x1] %vm21_vm3, %v20_v29   ;;  %vm117_vm3 = vcmask 326944  }
  0x7b   :  { %28 = vst.msk [vmem:[#allocation0] sm:$0x1] %vm27_vm4, %v26_v31   ;;  %vm123_vm4 = vcmask 294144  }
  0x7c   :  { %v32_v32 = vpop.permute.xlu0 %31   ;;  %v38_v33 = vpop.permute.xlu1 %37  }
  0x7d   :  { %34 = vst.msk [vmem:[#allocation0] sm:$0x1] %vm33_vm5, %v32_v32   ;;  %vm129_vm5 = vcmask 261344  }
  0x7e   :  { %40 = vst.msk [vmem:[#allocation0] sm:$0x1] %vm39_vm6, %v38_v33   ;;  %vm135_vm6 = vcmask 228544  }
  0x80   :  { %v44_v34 = vpop.permute.xlu0 %43   ;;  %v50_v35 = vpop.permute.xlu1 %49  }
  0x81   :  { %46 = vst.msk [vmem:[#allocation0] sm:$0x1] %vm45_vm7, %v44_v34   ;;  %vm141_vm7 = vcmask 195744  }
  0x82   :  { %52 = vst.msk [vmem:[#allocation0] sm:$0x1] %vm51_vm8, %v50_v35   ;;  %vm147_vm8 = vcmask 162944  }
  0x84   :  { %v56_v36 = vpop.permute.xlu0 %55   ;;  %v62_v37 = vpop.permute.xlu1 %61  }
  0x85   :  { %58 = vst.msk [vmem:[#allocation0] sm:$0x1] %vm57_vm9, %v56_v36   ;;  %vm153_vm9 = vcmask 130144  }
  0x86   :  { %64 = vst.msk [vmem:[#allocation0] sm:$0x1] %vm63_vm10, %v62_v37   ;;  %vm159_vm10 = vcmask 97344  }
  0x88   :  { %v68_v38 = vpop.permute.xlu0 %67   ;;  %v74_v39 = vpop.permute.xlu1 %73  }
  0x89   :  { %70 = vst.msk [vmem:[#allocation0] sm:$0x1] %vm69_vm11, %v68_v38   ;;  %vm165_vm11 = vcmask 64544  }
  0x8a   :  { %76 = vst.msk [vmem:[#allocation0] sm:$0x1] %vm75_vm12, %v74_v39  }
  0x8c   :  { %v80_v40 = vpop.permute.xlu0 %79   ;;  %v86_v41 = vpop.permute.xlu1 %85  }
  0x8d   :  { %82 = vst.msk [vmem:[#allocation0] sm:$0x1] %vm81_vm13, %v80_v40  }
  0x8e   :  { %88 = vst.msk [vmem:[#allocation0] sm:$0x1] %vm87_vm14, %v86_v41  }
  0x90   :  { %v92_v42 = vpop.permute.xlu0 %91   ;;  %v98_v43 = vpop.permute.xlu1 %97  }
  0x91   :  { %94 = vst.msk [vmem:[#allocation0] sm:$0x1] %vm93_vm15, %v92_v42  }
  0x92   :  { %100 = vst.msk [vmem:[#allocation0] sm:$0x1] %vm99_vm0, %v98_v43  }
  0x94   :  { %v104_v44 = vpop.permute.xlu0 %103   ;;  %v110_v45 = vpop.permute.xlu1 %109  }
  0x95   :  { %106 = vst.msk [vmem:[#allocation0] sm:$0x1] %vm105_vm1, %v104_v44  }
  0x96   :  { %112 = vst.msk [vmem:[#allocation0] sm:$0x1] %vm111_vm2, %v110_v45  }
  0x98   :  { %v116_v46 = vpop.permute.xlu0 %115   ;;  %v122_v47 = vpop.permute.xlu1 %121  }
  0x99   :  { %118 = vst.msk [vmem:[#allocation0] sm:$0x1] %vm117_vm3, %v116_v46  }
  0x9a   :  { %124 = vst.msk [vmem:[#allocation0] sm:$0x1] %vm123_vm4, %v122_v47  }
  0x9c   :  { %v128_v48 = vpop.permute.xlu0 %127   ;;  %v134_v49 = vpop.permute.xlu1 %133  }
  0x9d   :  { %130 = vst.msk [vmem:[#allocation0] sm:$0x1] %vm129_vm5, %v128_v48  }
  0x9e   :  { %136 = vst.msk [vmem:[#allocation0] sm:$0x1] %vm135_vm6, %v134_v49  }
  0xa0   :  { %v140_v50 = vpop.permute.xlu0 %139   ;;  %v146_v51 = vpop.permute.xlu1 %145  }
  0xa1   :  { %142 = vst.msk [vmem:[#allocation0] sm:$0x1] %vm141_vm7, %v140_v50  }
  0xa2   :  { %148 = vst.msk [vmem:[#allocation0] sm:$0x1] %vm147_vm8, %v146_v51  }
  0xa4   :  { %v152_v52 = vpop.permute.xlu0 %151   ;;  %v158_v53 = vpop.permute.xlu1 %157  }
  0xa5   :  { %154 = vst.msk [vmem:[#allocation0] sm:$0x1] %vm153_vm9, %v152_v52  }
  0xa6   :  { %160 = vst.msk [vmem:[#allocation0] sm:$0x1] %vm159_vm10, %v158_v53  }
  0xa8   :  { %v164_v54 = vpop.permute.xlu0 %163  }
  0xa9   :  { %166 = vst.msk [vmem:[#allocation0] sm:$0x1] %vm165_vm11, %v164_v54  }
  0xb0   :  { %v170_v55 = vld [vmem:[#allocation0] sm:$0x1] }
  0xb1   :  { %172 = vst [vmem:[%s352_s1] sm:$0x1] %v170_v55 }

// kernel: tile.18
= control target key start
LH: loop header
LB: loop body
LE: loop exit
PB: predicated region body
PF: predicated region fallthrough
CT: control target
= control target key end

     0   :  { %s28_s0 = inlined_call_operand.vmem [shape: f32[16], index: 0, kind: input, shape index: {}]   ;;  %s29_s1 = inlined_call_operand.vmem [shape: f32[14,16], index: 1, kind: output, shape index: {}]  }
   0x1   :  { %v4_v0 = vld [vmem:[%s28_s0] ss:$0 sm:$0xff] }
   0x2   :  { %5 = vst [vmem:[%s29_s1] sm:$0xff] %v4_v0  ;;  %8 = vst [vmem:[%s29_s1 + $0x8] sm:$0xff] %v4_v0 }

// kernel: tile.19
= control target key start
LH: loop header
LB: loop body
LE: loop exit
PB: predicated region body
PF: predicated region fallthrough
CT: control target
= control target key end

     0   :  { %s19_s8 = smov 3  ;;  %s79_s9 = smov 112   ;;  %vm4_vm0 = vcmask 130048   ;;  %vm10_vm1 = vcmask 1048448   ;;  %vm16_vm2 = vcmask 917248   ;;  %vm23_vm3 = vcmask 786048   ;;  %s126_s0 = inlined_call_operand.vmem [shape: f32[14,16], index: 0, kind: input, shape index: {}]   ;;  %s127_s1 = inlined_call_operand.vmem [shape: f32[1,224], index: 1, kind: output, shape index: {}]  }
   0x1   :  { %v64_v0 = vld [vmem:[%s126_s0 + $0x7] sm:$0x1]   ;;  %v66_v1 = vld [vmem:[%s126_s0 + $0x5] ss:$8 sm:%s19_s8]   ;;  %s80_s12 = smov 80   ;;  %s26_s15 = smov 3 }
   0x2   :  { %8 = vrot.lane.b32.xlu0 %v64_v0, %s79_s9  ;;  %21 = vrot.lane.b32.xlu1 %v66_v1, %s80_s12  ;;  %v65_v2 = vld [vmem:[%s126_s0 + $0x6] sm:$0x1]   ;;  %s33_s18 = smov 3  ;;  %s40_s19 = smov 3  ;;  %vm30_vm4 = vcmask 654848   ;;  %vm37_vm5 = vcmask 523648  }
   0x3   :  { %v67_v3 = vld [vmem:[%s126_s0 + $0x4] ss:$8 sm:%s26_s15]   ;;  %s81_s20 = smov 96   ;;  %s82_s21 = smov 64   ;;  %v68_v4 = vld [vmem:[%s126_s0 + $0x3] ss:$8 sm:%s33_s18]  }
   0x4   :  { %s2_s24 = smov 3  ;;  %v69_v5 = vld [vmem:[%s126_s0 + $0x2] ss:$8 sm:%s40_s19]   ;;  %s47_s27 = smov 3  ;;  %vm44_vm6 = vcmask 392448   ;;  %vm51_vm7 = vcmask 261248  }
   0x5   :  { %v3_v6 = vld [vmem:[%s126_s0] ss:$8 sm:%s2_s24]   ;;  %s83_s30 = smov 48   ;;  %s84_s2 = smov 32   ;;  %v70_v7 = vld [vmem:[%s126_s0 + $0x1] ss:$8 sm:%s47_s27]  }
   0x6   :  { %14 = vrot.lane.b32.xlu0 %v65_v2, %s81_s20  ;;  %28 = vrot.lane.b32.xlu1 %v67_v3, %s82_s21  ;;  %5 = vst.msk [vmem:[#allocation0] ss:$8 sm:$0x3] %vm4_vm0, %v3_v6   ;;  %s85_s0 = smov 16  }
   0xa   :  { %35 = vrot.lane.b32.xlu0 %v68_v4, %s83_s30  ;;  %42 = vrot.lane.b32.xlu1 %v69_v5, %s84_s2 }
   0xe   :  { %49 = vrot.lane.b32.xlu0 %v70_v7, %s85_s0 }
  0x74   :  { %v9_v8 = vpop.permute.xlu0 %8   ;;  %v22_v9 = vpop.permute.xlu1 %21  }
  0x75   :  { %11 = vst.msk [vmem:[#allocation0] sm:$0x1] %vm10_vm1, %v9_v8  }
  0x78   :  { %v15_v10 = vpop.permute.xlu0 %14   ;;  %v29_v11 = vpop.permute.xlu1 %28  }
  0x79   :  { %17 = vst.msk [vmem:[#allocation0] sm:$0x1] %vm16_vm2, %v15_v10  }
  0x7a   :  { %24 = vst.msk [vmem:[#allocation0] ss:$8 sm:$0x3] %vm23_vm3, %v22_v9  }
  0x7b   :  { %31 = vst.msk [vmem:[#allocation0] ss:$8 sm:$0x3] %vm30_vm4, %v29_v11  }
  0x7c   :  { %v36_v12 = vpop.permute.xlu0 %35   ;;  %v43_v13 = vpop.permute.xlu1 %42  }
  0x7d   :  { %38 = vst.msk [vmem:[#allocation0] ss:$8 sm:$0x3] %vm37_vm5, %v36_v12  }
  0x7e   :  { %45 = vst.msk [vmem:[#allocation0] ss:$8 sm:$0x3] %vm44_vm6, %v43_v13  }
  0x80   :  { %v50_v14 = vpop.permute.xlu0 %49  }
  0x81   :  { %52 = vst.msk [vmem:[#allocation0] ss:$8 sm:$0x3] %vm51_vm7, %v50_v14  }
  0x88   :  { %v56_v15 = vld [vmem:[#allocation0] sm:$0x1]  ;;  %v60_v16 = vld [vmem:[#allocation0 + $0x8] sm:$0x1] }
  0x89   :  { %58 = vst [vmem:[%s127_s1] sm:$0x1] %v56_v15  ;;  %71 = vst [vmem:[%s127_s1 + $0x1] sm:$0x1] %v60_v16 }

// kernel: simple_mnist_convnet_forward.1
= control target key start
LH: loop header
LB: loop body
LE: loop exit
PB: predicated region body
PF: predicated region fallthrough
CT: control target
= control target key end

     0   :  { %vm130_vm0 = vcmask 1043456   ;;  %vm39_vm1 = vcmask 228352   ;;  %vm5101_vm2 = vmmov 1   ;;  %vm63_vm4 = vcmask 224256   ;;  %s6775_s0 = inlined_call_operand.vmem [shape: f32[2,28,28], index: 0, kind: input, shape index: {}]   ;;  %s6776_s1 = inlined_call_operand.vmem [shape: f32[5,28,112], index: 1, kind: input, shape index: {}]   ;;  %s6777_s2 = inlined_call_operand.vmem [shape: f32[1,112], index: 2, kind: input, shape index: {}]   ;;  %s6778_s3 = inlined_call_operand.vmem [shape: f32[112,56], index: 3, kind: input, shape index: {}]   ;;  %s6779_s4 = inlined_call_operand.vmem [shape: f32[112,56], index: 4, kind: input, shape index: {}]   ;;  %s6780_s5 = inlined_call_operand.vmem [shape: f32[5,56,224], index: 5, kind: input, shape index: {}]   ;;  %s6781_s6 = inlined_call_operand.vmem [shape: f32[1,224], index: 6, kind: input, shape index: {}]   ;;  %s6782_s7 = inlined_call_operand.vmem [shape: f32[224,112], index: 7, kind: input, shape index: {}]   ;;  %s6783_s8 = inlined_call_operand.vmem [shape: f32[224,112], index: 8, kind: input, shape index: {}]   ;;  %s6784_s9 = inlined_call_operand.vmem [shape: f32[7,112,10], index: 9, kind: input, shape index: {}]   ;;  %s6785_s10 = inlined_call_operand.vmem [shape: f32[1,10], index: 10, kind: input, shape index: {}]   ;;  %s6786_s11 = inlined_call_operand.hbm [shape: f32[2,10], index: 11, kind: output, shape index: {}]  }
   0x1   :  { %v78_v0 = vld [vmem:[%s6776_s1] sm:$0xff]  ;;  %v79_v1 = vld [vmem:[%s6776_s1 + $0x8] sm:$0xff]  ;;  %v80_v2 = vld [vmem:[%s6776_s1 + $0x10] sm:$0xff]  ;;  %v5102_v8 = vmov 0.0  }
   0x2   :  { %v4572_v3 = vpack.c.bf16 %v79_v1, %v78_v0  ;;  %v81_v4 = vld [vmem:[%s6776_s1 + $0x18] sm:$0xf]  ;;  %vm5180_vm3 = vmpackc.low %vm130_vm0, %vm5101_vm2  ;;  %v52_v6 = vld [vmem:[%s6775_s0] sm:$0xff]  ;;  %40 = vst.msk [vmem:[#allocation2] sm:$0xff] %vm39_vm1, %v5102_v8 }
   0x3   :  { %v4576_v7 = vpack.c.bf16 %v81_v4, %v80_v2  ;;  %41 = vst.msk [vmem:[#allocation2 + $0x8] sm:$0xff] %vm39_vm1, %v5102_v8  ;;  %42 = vst.msk [vmem:[#allocation2 + $0x10] sm:$0xff] %vm39_vm1, %v5102_v8  ;;  %v53_v9 = vld [vmem:[%s6775_s0 + $0x8] sm:$0xff]  ;;  %v3654_v10 = vld [vmem:[%s6776_s1 + $0x40] sm:$0xff] }
   0x4   :  { %43 = vst.msk [vmem:[#allocation2 + $0x18] sm:$0xff] %vm39_vm1, %v5102_v8  ;;  %44 = vst.msk [vmem:[#allocation2 + $0x20] sm:$0xff] %vm39_vm1, %v5102_v8  ;;  %v3655_v11 = vld [vmem:[%s6776_s1 + $0x48] sm:$0xff]  ;;  %4573 = vmatprep.subr.bf16.mxu0 %v4572_v3  ;;  %v54_v12 = vld [vmem:[%s6775_s0 + $0x10] sm:$0xff] }
   0x5   :  { %45 = vst.msk [vmem:[#allocation2 + $0x28] sm:$0xff] %vm39_vm1, %v5102_v8  ;;  %46 = vst.msk [vmem:[#allocation2 + $0x30] sm:$0xff] %vm39_vm1, %v5102_v8  ;;  %v55_v13 = vld [vmem:[%s6775_s0 + $0x18] sm:$0xf]  ;;  %v56_v14 = vld [vmem:[%s6775_s0 + $0x20] sm:$0xff]  ;;  %4575 = vmatpush3.bf16.msra.mxu0 %v4572_v3  ;;  %v4582_v16 = vpack.c.bf16 %v3655_v11, %v3654_v10 }
   0x6   :  { %47 = vst.msk [vmem:[#allocation2 + $0x38] sm:$0xff] %vm39_vm1, %v5102_v8  ;;  %48 = vst.msk [vmem:[#allocation2 + $0x40] sm:$0xff] %vm39_vm1, %v5102_v8  ;;  %v57_v15 = vld [vmem:[%s6775_s0 + $0x28] sm:$0xff]  ;;  %4578 = vmatprep.subr.msk.bf16.mxu0 %vm5180_vm3, %v4576_v7  ;;  %v58_v17 = vld [vmem:[%s6775_s0 + $0x30] sm:$0xff] }
   0x7   :  { %60 = vst.msk [vmem:[#allocation2 + $0x2] sm:$0xff] %vm39_vm1, %v52_v6  ;;  %61 = vst.msk [vmem:[#allocation2 + $0xa] sm:$0xff] %vm39_vm1, %v53_v9  ;;  %v59_v18 = vld [vmem:[%s6775_s0 + $0x38] sm:$0xf]  ;;  %v3656_v19 = vld [vmem:[%s6776_s1 + $0x50] sm:$0xff] }
   0x8   :  { %62 = vst.msk [vmem:[#allocation2 + $0x12] sm:$0xff] %vm39_vm1, %v54_v12  ;;  %65 = vst.msk [vmem:[#allocation2 + $0x22] sm:$0xff] %vm39_vm1, %v56_v14  ;;  %v3657_v20 = vld [vmem:[%s6776_s1 + $0x58] sm:$0xf]  ;;  %v3632_v21 = vld [vmem:[%s6776_s1 + $0x20] sm:$0xff] }
   0x9   :  { %64 = vst.msk [vmem:[#allocation2 + $0x1a] sm:$0xf] %vm63_vm4, %v55_v13  ;;  %68 = vst.msk [vmem:[#allocation2 + $0x3a] sm:$0xf] %vm63_vm4, %v59_v18  ;;  %4581 = vmatpush3.bf16.msk.msra.mxu0 %vm5180_vm3, %v4576_v7  ;;  %v3633_v22 = vld [vmem:[%s6776_s1 + $0x28] sm:$0xff]  ;;  %v3634_v24 = vld [vmem:[%s6776_s1 + $0x30] sm:$0xff]  ;;  %v4586_v28 = vpack.c.bf16 %v3657_v20, %v3656_v19 }
   0xa   :  { %66 = vst.msk [vmem:[#allocation2 + $0x2a] sm:$0xff] %vm39_vm1, %v57_v15  ;;  %67 = vst.msk [vmem:[#allocation2 + $0x32] sm:$0xff] %vm39_vm1, %v58_v17  ;;  %4583 = vmatprep.subr.bf16.mxu0 %v4582_v16  ;;  %v4562_v23 = vpack.c.bf16 %v3633_v22, %v3632_v21  ;;  %v3635_v25 = vld [vmem:[%s6776_s1 + $0x38] sm:$0xf]  ;;  %v3667_v31 = vld [vmem:[%s6776_s1 + $0x60] sm:$0xff] }
   0xb   :  { %v4566_v29 = vpack.c.bf16 %v3635_v25, %v3634_v24  ;;  %v3668_v32 = vld [vmem:[%s6776_s1 + $0x68] sm:$0xff] }
   0xc   :  { %4563 = vmatprep.subr.bf16.mxu1 %v4562_v23  ;;  %v4592_v35 = vpack.c.bf16 %v3668_v32, %v3667_v31 }
   0xd   :  { %4565 = vmatpush3.bf16.msra.mxu1 %v4562_v23 }
   0xe   :  { %v5262_v26 = vld [vmem:[#allocation2] sm:$0xff]  ;;  %v5264_v27 = vld [vmem:[#allocation2 + $0x8] sm:$0xff]  ;;  %4568 = vmatprep.subr.msk.bf16.mxu1 %vm5180_vm3, %v4566_v29 }
   0xf   :  { %4193 = vmatprep.mubr.msk.f32.mxu0 %vm39_vm1, %v5262_v26  ;;  %v5268_v30 = vld [vmem:[#allocation2 + $0x10] sm:$0xff]  ;;  %v5282_v34 = vld [vmem:[#allocation2 + $0x20] sm:$0xff] }
  0x10   :  { %4194 = vmatmul.mubr.msk.f32.vlgmr.msra.gmra.mrb[0].mxu0 %vm39_vm1, %v5264_v27  ;;  %v5280_v33 = vld [vmem:[#allocation2 + $0x18] sm:$0xff] }
  0x11   :  { %4585 = vmatpush3.bf16.msra.mxu0 %v4582_v16  ;;  %4196 = vmatprep.mubr.msk.f32.mxu0 %vm39_vm1, %v5268_v30 }
  0x12   :  { %4588 = vmatprep.subr.msk.bf16.mxu0 %vm5180_vm3, %v4586_v28  ;;  %4571 = vmatpush3.bf16.msk.msra.mxu1 %vm5180_vm3, %v4566_v29 }
  0x14   :  { %4197 = vmatmul.mubr.msk.f32.gmra.mrb[2].mxu0 %vm39_vm1, %v5280_v33 }
  0x15   :  { %16 = vsyncpa [#allocation5], 0  ;;  %4199 = vmatprep.mubr.msk.f32.mxu0 %vm39_vm1, %v5282_v34  ;;  %v5294_v36 = vld [vmem:[#allocation2 + $0x28] sm:$0xff]  ;;  %4591 = vmatpush3.bf16.msk.msra.mxu0 %vm5180_vm3, %v4586_v28  ;;  %vm96_vm5 = vcmask 1046528   ;;  %v5298_v37 = vld [vmem:[#allocation2 + $0x30] sm:$0xff]  ;;  %v369_v38 = vrot.slane %v5262_v26, 2 }
  0x16   :  { %v370_v39 = vrot.slane %v5264_v27, 2  ;;  %4593 = vmatprep.subr.bf16.mxu0 %v4592_v35  ;;  %v97_v40 = vrot.slane %v5262_v26, 1  ;;  %v98_v41 = vrot.slane %v5264_v27, 1  ;;  %vm368_vm6 = vcmask 1045504   ;;  %v5311_v45 = vld [vmem:[#allocation2 + $0x38] sm:$0xff]  ;;  %v3669_v50 = vld [vmem:[%s6776_s1 + $0x70] sm:$0xff] }
  0x17   :  { %v100_v43 = vrot.slane %v5268_v30, 1  ;;  %v372_v44 = vrot.slane %v5268_v30, 2  ;;  %v102_v46 = vrot.slane %v5280_v33, 1  ;;  %v104_v47 = vrot.slane %v5282_v34, 1  ;;  %v3670_v53 = vld [vmem:[%s6776_s1 + $0x78] sm:$0xf] }
  0x18   :  { %4200 = vmatmul.mubr.msk.f32.gmra.mrb[4].mxu0 %vm39_vm1, %v5294_v36  ;;  %v99_v42 = vsel %vm96_vm5, %v97_v40, %v98_v41  ;;  %v371_v48 = vsel %vm368_vm6, %v369_v38, %v370_v39  ;;  %v374_v49 = vrot.slane %v5280_v33, 2  ;;  %v106_v52 = vrot.slane %v5294_v36, 1  ;;  %v850_v55 = vld [vmem:[%s6778_s3] sm:$0xff]  ;;  %v851_v56 = vld [vmem:[%s6778_s3 + $0x8] sm:$0xff]  ;;  %v852_v10 = vld [vmem:[%s6778_s3 + $0x10] sm:$0xff] }
  0x19   :  { %4202 = vmatprep.mubr.msk.f32.mxu0 %vm39_vm1, %v5298_v37  ;;  %4173 = vmatprep.mubr.msk.f32.mxu1 %vm39_vm1, %v99_v42  ;;  %v101_v51 = vsel %vm96_vm5, %v98_v41, %v100_v43  ;;  %v103_v54 = vsel %vm96_vm5, %v100_v43, %v102_v46  ;;  %v105_v57 = vsel %vm96_vm5, %v102_v46, %v104_v47  ;;  %v108_v58 = vrot.slane %v5298_v37, 1  ;;  %v5346_v3 = vld [vmem:[#allocation2 + $0x40] sm:$0xff]  ;;  %v3681_v6 = vld [vmem:[%s6776_s1 + $0x88] sm:$0xff]  ;;  %v853_v11 = vld [vmem:[%s6778_s3 + $0x18] sm:$0xff] }
  0x1a   :  { %4174 = vmatmul.mubr.msk.f32.vlgmr.msra.gmra.mrb[0].mxu1 %vm39_vm1, %v101_v51  ;;  %v373_v59 = vsel %vm368_vm6, %v370_v39, %v372_v44  ;;  %v376_v60 = vrot.slane %v5282_v34, 2  ;;  %v107_v61 = vsel %vm96_vm5, %v104_v47, %v106_v52  ;;  %v110_v62 = vrot.slane %v5311_v45, 1  ;;  %v3680_v4 = vld [vmem:[%s6776_s1 + $0x80] sm:$0xff]  ;;  %v855_v21 = vld [vmem:[%s6778_s3 + $0x28] sm:$0xff]  ;;  %v856_v31 = vld [vmem:[%s6778_s3 + $0x30] sm:$0xff] }
  0x1b   :  { %4176 = vmatprep.mubr.msk.f32.mxu1 %vm39_vm1, %v103_v54  ;;  %v375_v63 = vsel %vm368_vm6, %v372_v44, %v374_v49  ;;  %v378_v0 = vrot.slane %v5294_v36, 2  ;;  %v4596_v1 = vpack.c.bf16 %v3670_v53, %v3669_v50  ;;  %v4612_v2 = vpack.c.bf16 %v851_v56, %v850_v55  ;;  %v854_v20 = vld [vmem:[%s6778_s3 + $0x20] sm:$0xff]  ;;  %v857_v32 = vld [vmem:[%s6778_s3 + $0x38] sm:$0xff]  ;;  %v3682_v41 = vld [vmem:[%s6776_s1 + $0x90] sm:$0xff] }
  0x1c   :  { %4203 = vmatmul.mubr.msk.f32.gmra.mrb[6].mxu0 %vm39_vm1, %v5311_v45  ;;  %v109_v7 = vsel %vm96_vm5, %v106_v52, %v108_v58  ;;  %v112_v9 = vrot.slane %v5346_v3, 1  ;;  %v377_v12 = vsel %vm368_vm6, %v374_v49, %v376_v60  ;;  %v380_v13 = vrot.slane %v5298_v37, 2  ;;  %v3683_v42 = vld [vmem:[%s6776_s1 + $0x98] sm:$0xf]  ;;  %v858_v44 = vld [vmem:[%s6778_s3 + $0x40] sm:$0xff]  ;;  %v859_v46 = vld [vmem:[%s6778_s3 + $0x48] sm:$0xff] }
  0x1d   :  { %4213 = vmatprep.mubr.msk.f32.mxu0 %vm39_vm1, %v371_v48  ;;  %v111_v14 = vsel %vm96_vm5, %v108_v58, %v110_v62  ;;  %v379_v15 = vsel %vm368_vm6, %v376_v60, %v378_v0  ;;  %v382_v16 = vrot.slane %v5311_v45, 2  ;;  %v4602_v17 = vpack.c.bf16 %v3681_v6, %v3680_v4  ;;  %4613 = vmatprep.subr.bf16.mxu1 %v4612_v2 }
  0x1e   :  { %4177 = vmatmul.mubr.msk.f32.gmra.mrb[2].mxu1 %vm39_vm1, %v105_v57  ;;  %v4616_v18 = vpack.c.bf16 %v853_v11, %v852_v10  ;;  %v113_v19 = vsel %vm96_vm5, %v110_v62, %v112_v9  ;;  %v381_v22 = vsel %vm368_vm6, %v378_v0, %v380_v13  ;;  %v384_v23 = vrot.slane %v5346_v3, 2  ;;  %v861_v9 = vld [vmem:[%s6778_s3 + $0x58] sm:$0xff]  ;;  %v863_v11 = vld [vmem:[%s6778_s3 + $0x68] sm:$0xff] }
  0x1f   :  { %4179 = vmatprep.mubr.msk.f32.mxu1 %vm39_vm1, %v107_v61  ;;  %v383_v24 = vsel %vm368_vm6, %v380_v13, %v382_v16  ;;  %v524_v25 = vrot.slane %v5262_v26, 3  ;;  %v525_v28 = vrot.slane %v5264_v27, 3  ;;  %4615 = vmatpush3.bf16.msra.mxu1 %v4612_v2  ;;  %vm523_vm7 = vcmask 1044480   ;;  %v994_v13 = vld [vmem:[%s6779_s4] sm:$0xff] }
  0x20   :  { %4214 = vmatmul.mubr.msk.f32.vlgmr.msra.gmra.mrb[0].mxu0 %vm39_vm1, %v373_v59  ;;  %4617 = vmatprep.subr.bf16.mxu1 %v4616_v18  ;;  %v4620_v29 = vpack.c.bf16 %v855_v21, %v854_v20  ;;  %v385_v38 = vsel %vm368_vm6, %v382_v16, %v384_v23  ;;  %v529_v40 = vrot.slane %v5280_v33, 3  ;;  %v4624_v43 = vpack.c.bf16 %v857_v32, %v856_v31 }
  0x21   :  { %4595 = vmatpush3.bf16.msra.mxu0 %v4592_v35  ;;  %4216 = vmatprep.mubr.msk.f32.mxu0 %vm39_vm1, %v375_v63  ;;  %v527_v35 = vrot.slane %v5268_v30, 3  ;;  %v526_v39 = vsel %vm523_vm7, %v524_v25, %v525_v28  ;;  %v531_v48 = vrot.slane %v5282_v34, 3  ;;  %v533_v50 = vrot.slane %v5294_v36, 3  ;;  %v3693_v25 = vld [vmem:[%s6777_s2] ss:$0 sm:$0xff] }
  0x22   :  { %4598 = vmatprep.subr.msk.bf16.mxu0 %vm5180_vm3, %v4596_v1  ;;  %4180 = vmatmul.mubr.msk.f32.gmra.mrb[4].mxu1 %vm39_vm1, %v109_v7  ;;  %v4606_v51 = vpack.c.bf16 %v3683_v42, %v3682_v41  ;;  %v4628_v52 = vpack.c.bf16 %v859_v46, %v858_v44  ;;  %v535_v54 = vrot.slane %v5298_v37, 3  ;;  %v537_v56 = vrot.slane %v5311_v45, 3 }
  0x23   :  { %4182 = vmatprep.mubr.msk.f32.mxu1 %vm39_vm1, %v111_v14  ;;  %4619 = vmatpush3.bf16.msra.mxu1 %v4616_v18  ;;  %v528_v47 = vsel %vm523_vm7, %v525_v28, %v527_v35  ;;  %v530_v49 = vsel %vm523_vm7, %v527_v35, %v529_v40  ;;  %v532_v53 = vsel %vm523_vm7, %v529_v40, %v531_v48  ;;  %v539_v58 = vrot.slane %v5346_v3, 3  ;;  %v995_v14 = vld [vmem:[%s6779_s4 + $0x8] sm:$0xff]  ;;  %v997_v40 = vld [vmem:[%s6779_s4 + $0x18] sm:$0xff] }
  0x24   :  { %4217 = vmatmul.mubr.msk.f32.gmra.mrb[2].mxu0 %vm39_vm1, %v377_v12  ;;  %4621 = vmatprep.subr.bf16.mxu1 %v4620_v29  ;;  %v534_v55 = vsel %vm523_vm7, %v531_v48, %v533_v50  ;;  %v536_v57 = vsel %vm523_vm7, %v533_v50, %v535_v54  ;;  %v538_v59 = vsel %vm523_vm7, %v535_v54, %v537_v56  ;;  %v678_v60 = vrot.slane %v5262_v26, 4 }
  0x25   :  { %4219 = vmatprep.mubr.msk.f32.mxu0 %vm39_vm1, %v379_v15  ;;  %4601 = vmatpush3.bf16.msk.msra.mxu0 %vm5180_vm3, %v4596_v1  ;;  %v679_v61 = vrot.slane %v5264_v27, 4  ;;  %v681_v62 = vrot.slane %v5268_v30, 4  ;;  %v540_v63 = vsel %vm523_vm7, %v537_v56, %v539_v58  ;;  %v683_v0 = vrot.slane %v5280_v33, 4 }
  0x26   :  { %4603 = vmatprep.subr.bf16.mxu0 %v4602_v17  ;;  %4183 = vmatmul.mubr.msk.f32.gmra.mrb[6].mxu1 %vm39_vm1, %v113_v19  ;;  %v685_v27 = vrot.slane %v5282_v34, 4  ;;  %v687_v30 = vrot.slane %v5294_v36, 4  ;;  %v689_v33 = vrot.slane %v5298_v37, 4  ;;  %v691_v6 = vrot.slane %v5311_v45, 4  ;;  %v860_v45 = vld [vmem:[%s6778_s3 + $0x50] sm:$0xff] }
  0x27   :  { %4623 = vmatpush3.bf16.msra.mxu1 %v4620_v29  ;;  %v680_v5 = vsel %vm130_vm0, %v678_v60, %v679_v61  ;;  %v682_v26 = vsel %vm130_vm0, %v679_v61, %v681_v62  ;;  %v684_v1 = vsel %vm130_vm0, %v681_v62, %v683_v0  ;;  %v693_v36 = vrot.slane %v5346_v3, 4  ;;  %v862_v3 = vld [vmem:[%s6778_s3 + $0x60] sm:$0xff]  ;;  %v1000_v62 = vld [vmem:[%s6779_s4 + $0x30] sm:$0xff] }
  0x28   :  { %4220 = vmatmul.mubr.msk.f32.gmra.mrb[4].mxu0 %vm39_vm1, %v381_v22  ;;  %4625 = vmatprep.subr.bf16.mxu1 %v4624_v43  ;;  %v686_v2 = vsel %vm130_vm0, %v683_v0, %v685_v27  ;;  %v688_v4 = vsel %vm130_vm0, %v685_v27, %v687_v30  ;;  %v690_v34 = vsel %vm130_vm0, %v687_v30, %v689_v33  ;;  %vm864_vm8 = vcmask 916480  }
  0x29   :  { %4222 = vmatprep.mubr.msk.f32.mxu0 %vm39_vm1, %v383_v24  ;;  %v692_v7 = vsel %vm130_vm0, %v689_v33, %v691_v6  ;;  %v694_v37 = vsel %vm130_vm0, %v691_v6, %v693_v36  ;;  %v4632_v10 = vpack.c.bf16 %v861_v9, %v860_v45  ;;  %v4636_v12 = vpack.c.bf16 %v863_v11, %v862_v3  ;;  %v1003_v6 = vld [vmem:[%s6779_s4 + $0x48] sm:$0xff]  ;;  %v1005_v45 = vld [vmem:[%s6779_s4 + $0x58] sm:$0xff] }
  0x2a   :  { %v4640_v15 = vpack.c.bf16 %v995_v14, %v994_v13  ;;  %v1007_v3 = vld [vmem:[%s6779_s4 + $0x68] sm:$0xff]  ;;  %vm1387_vm9 = vcmask 457728   ;;  %vm1540_vm10 = vcmask 1041409   ;;  %vm1542_vm11 = vcmask 1042434  }
  0x2b   :  { %4627 = vmatpush3.bf16.msra.mxu1 %v4624_v43  ;;  %1388 = vst.msk [vmem:[#allocation3] sm:$0xff] %vm1387_vm9, %v5102_v8  ;;  %1389 = vst.msk [vmem:[#allocation3 + $0x8] sm:$0xff] %vm1387_vm9, %v5102_v8  ;;  %v3741_v13 = vld [vmem:[%s6780_s5 + $0x88] sm:$0xff]  ;;  %vm1544_vm12 = vcmask 1043459   ;;  %vm1546_vm13 = vcmask 1044484   ;;  %vm1548_vm14 = vcmask 1045509  }
  0x2c   :  { %4223 = vmatmul.mubr.msk.f32.gmra.mrb[6].mxu0 %vm39_vm1, %v385_v38  ;;  %4629 = vmatprep.subr.bf16.mxu1 %v4628_v52  ;;  %1390 = vst.msk [vmem:[#allocation3 + $0x10] sm:$0xff] %vm1387_vm9, %v5102_v8  ;;  %1391 = vst.msk [vmem:[#allocation3 + $0x18] sm:$0xff] %vm1387_vm9, %v5102_v8  ;;  %vm1550_vm15 = vcmask 1046534   ;;  %vm1576_vm2 = vcmask 455680   ;;  %vm3603_vm4 = vcmask 74752  }
  0x2d   :  { %4233 = vmatprep.mubr.msk.f32.mxu0 %vm39_vm1, %v526_v39  ;;  %v996_v39 = vld [vmem:[%s6779_s4 + $0x10] sm:$0xff]  ;;  %1392 = vst.msk [vmem:[#allocation3 + $0x20] sm:$0xff] %vm1387_vm9, %v5102_v8  ;;  %1393 = vst.msk [vmem:[#allocation3 + $0x28] sm:$0xff] %vm1387_vm9, %v5102_v8 }
  0x2e   :  { %v4644_v48 = vpack.c.bf16 %v997_v40, %v996_v39  ;;  %1394 = vst.msk [vmem:[#allocation3 + $0x30] sm:$0xff] %vm1387_vm9, %v5102_v8  ;;  %1395 = vst.msk [vmem:[#allocation3 + $0x38] sm:$0xff] %vm1387_vm9, %v5102_v8  ;;  %v1590_v39 = vld [vmem:[%s6780_s5 + $0x8] sm:$0xff]  ;;  %v1592_v40 = vld [vmem:[%s6780_s5 + $0x18] sm:$0xff] }
  0x2f   :  { %4631 = vmatpush3.bf16.msra.mxu1 %v4628_v52  ;;  %v999_v52 = vld [vmem:[%s6779_s4 + $0x28] sm:$0xff]  ;;  %1396 = vst.msk [vmem:[#allocation3 + $0x40] sm:$0xff] %vm1387_vm9, %v5102_v8 }
  0x30   :  { %4234 = vmatmul.mubr.msk.f32.vlgmr.msra.gmra.mrb[0].mxu0 %vm39_vm1, %v528_v47  ;;  %4633 = vmatprep.subr.bf16.mxu1 %v4632_v10 }
  0x31   :  { %4605 = vmatpush3.bf16.msra.mxu0 %v4602_v17  ;;  %4236 = vmatprep.mubr.msk.f32.mxu0 %vm39_vm1, %v530_v49 }
  0x32   :  { %4608 = vmatprep.subr.msk.bf16.mxu0 %vm5180_vm3, %v4606_v51 }
  0x33   :  { %4635 = vmatpush3.bf16.msra.mxu1 %v4632_v10  ;;  %v1006_v10 = vld [vmem:[%s6779_s4 + $0x60] sm:$0xff] }
  0x34   :  { %4237 = vmatmul.mubr.msk.f32.gmra.mrb[2].mxu0 %vm39_vm1, %v532_v53  ;;  %4637 = vmatprep.subr.bf16.mxu1 %v4636_v12  ;;  %v4664_v11 = vpack.c.bf16 %v1007_v3, %v1006_v10 }
  0x35   :  { %4239 = vmatprep.mubr.msk.f32.mxu0 %vm39_vm1, %v534_v55  ;;  %4611 = vmatpush3.bf16.msk.msra.mxu0 %vm5180_vm3, %v4606_v51  ;;  %v998_v51 = vld [vmem:[%s6779_s4 + $0x20] sm:$0xff]  ;;  %vm5105_vm3 = vmmov 0  }
  0x37   :  { %4639 = vmatpush3.bf16.msra.mxu1 %v4636_v12  ;;  %v3739_v12 = vld [vmem:[%s6780_s5 + $0x78] sm:$0xff] }
  0x38   :  { %4240 = vmatmul.mubr.msk.f32.gmra.mrb[4].mxu0 %vm39_vm1, %v536_v57  ;;  %4641 = vmatprep.subr.bf16.mxu1 %v4640_v15  ;;  %v4668_v14 = vpack.c.bf16 %v3741_v13, %v3739_v12 }
  0x39   :  { %4242 = vmatprep.mubr.msk.f32.mxu0 %vm39_vm1, %v538_v59  ;;  %v4648_v59 = vpack.c.bf16 %v999_v52, %v998_v51  ;;  %v5103_v51 = vmov 1983009808  }
  0x3a   :  { %v1131_v52 = vunpack.c.l.s4 %v5103_v51 }
  0x3c   :  { %4243 = vmatmul.mubr.msk.f32.gmra.mrb[6].mxu0 %vm39_vm1, %v540_v63  ;;  %v1001_v63 = vld [vmem:[%s6779_s4 + $0x38] sm:$0xff] }
  0x3d   :  { %4253 = vmatprep.mubr.msk.f32.mxu0 %vm39_vm1, %v680_v5 }
  0x40   :  { %4254 = vmatmul.mubr.msk.f32.vlgmr.msra.gmra.mrb[0].mxu0 %vm39_vm1, %v682_v26 }
  0x41   :  { %4256 = vmatprep.mubr.msk.f32.mxu0 %vm39_vm1, %v684_v1 }
  0x44   :  { %4257 = vmatmul.mubr.msk.f32.gmra.mrb[2].mxu0 %vm39_vm1, %v686_v2  ;;  %v4652_v2 = vpack.c.bf16 %v1001_v63, %v1000_v62 }
  0x45   :  { %4259 = vmatprep.mubr.msk.f32.mxu0 %vm39_vm1, %v688_v4  ;;  %v1002_v4 = vld [vmem:[%s6779_s4 + $0x40] sm:$0xff] }
  0x48   :  { %4260 = vmatmul.mubr.msk.f32.gmra.mrb[4].mxu0 %vm39_vm1, %v690_v34 }
  0x49   :  { %4262 = vmatprep.mubr.msk.f32.mxu0 %vm39_vm1, %v692_v7  ;;  %v4656_v7 = vpack.c.bf16 %v1003_v6, %v1002_v4 }
  0x4c   :  { %4263 = vmatmul.mubr.msk.f32.gmra.mrb[6].mxu0 %vm39_vm1, %v694_v37  ;;  %v1004_v37 = vld [vmem:[%s6779_s4 + $0x50] sm:$0xff]  ;;  %vm1552_vm1 = vcmask 1047559  }
  0x4d   :  { %v4660_v9 = vpack.c.bf16 %v1005_v45, %v1004_v37 }
  0xed   :  { %v4175_v16 = vpop.f32.mrb[0].mxu1 }
  0xee   :  { %v200_v17 = vpop.f32.mrb[1].mxu1 }
  0xf1   :  { %v4178_v18 = vpop.f32.mrb[2].mxu1 }
  0xf2   :  { %v210_v19 = vpop.f32.mrb[3].mxu1 }
  0xf5   :  { %v4181_v20 = vpop.f32.mrb[4].mxu1 }
  0xf6   :  { %v220_v21 = vpop.f32.mrb[5].mxu1 }
  0xf9   :  { %v4184_v22 = vpop.f32.mrb[6].mxu1 }
  0xfa   :  { %v230_v23 = vpop.f32.mrb[7].mxu1 }
 0x113   :  { %v4255_v24 = vpop.f32.mrb[0].mxu0 }
 0x114   :  { %v4959_v28 = vadd.f32 %v4255_v24, %v4175_v16  ;;  %v780_v29 = vpop.f32.mrb[1].mxu0  ;;  %v3740_v16 = vld [vmem:[%s6780_s5 + $0x80] sm:$0xff]  ;;  %v3747_v24 = vld [vmem:[%s6780_s5 + $0xb8] sm:$0xff] }
 0x115   :  { %v4960_v31 = vadd.f32 %v780_v29, %v200_v17  ;;  %v3746_v29 = vld [vmem:[%s6780_s5 + $0xb0] sm:$0xff] }
 0x116   :  { %v5487_v32 = vadd.f32 %v4959_v28, %v3693_v25 }
 0x117   :  { %v834_v35 = vadd.f32 %v4960_v31, %v3693_v25  ;;  %v4258_v38 = vpop.f32.mrb[2].mxu0  ;;  %v3748_v31 = vld [vmem:[%s6780_s5 + $0xc0] sm:$0xff] }
 0x118   :  { %v4961_v41 = vadd.f32 %v4258_v38, %v4178_v18  ;;  %v790_v42 = vpop.f32.mrb[3].mxu0  ;;  %v843_v46 = vmax.f32 %v5487_v32, 0.0  ;;  %v3743_v18 = vld [vmem:[%s6780_s5 + $0x98] sm:$0xff]  ;;  %v4678_v32 = vpack.c.bf16 %v3748_v31, %v3746_v29  ;;  %v3750_v38 = vld [vmem:[%s6780_s5 + $0xd0] sm:$0xff] }
 0x119   :  { %v842_v43 = vmax.f32 %v834_v35, 0.0  ;;  %v4962_v44 = vadd.f32 %v790_v42, %v210_v19  ;;  %v3745_v19 = vld [vmem:[%s6780_s5 + $0xa8] sm:$0xff]  ;;  %v3751_v35 = vld [vmem:[%s6780_s5 + $0xd8] sm:$0xff] }
 0x11a   :  { %v837_v47 = vadd.f32 %v4961_v41, %v3693_v25  ;;  %v4680_v41 = vpack.c.bf16 %v1592_v40, %v1590_v39 }
 0x11b   :  { %v836_v49 = vadd.f32 %v4962_v44, %v3693_v25  ;;  %v4261_v50 = vpop.f32.mrb[4].mxu0  ;;  %4293 = vmatprep.mubr.msk.f32.mxu1 %vm864_vm8, %v842_v43 }
 0x11c   :  { %v4963_v53 = vadd.f32 %v4261_v50, %v4181_v20  ;;  %v800_v54 = vpop.f32.mrb[5].mxu0  ;;  %4294 = vmatmul.mubr.msk.f32.vlgmr.msra.gmra.mrb[8].mxu1 %vm864_vm8, %v843_v46  ;;  %v845_v57 = vmax.f32 %v837_v47, 0.0  ;;  %v4672_v20 = vpack.c.bf16 %v3745_v19, %v3743_v18 }
 0x11d   :  { %v844_v55 = vmax.f32 %v836_v49, 0.0  ;;  %v4964_v56 = vadd.f32 %v800_v54, %v220_v21  ;;  %4643 = vmatpush3.bf16.msra.mxu1 %v4640_v15  ;;  %v3738_v15 = vld [vmem:[%s6780_s5 + $0x70] sm:$0xff]  ;;  %v1132_v54 = vunpack.c.0.s8 %v1131_v52 }
 0x11e   :  { %v839_v58 = vadd.f32 %v4963_v53, %v3693_v25  ;;  %4645 = vmatprep.subr.bf16.mxu1 %v4644_v48  ;;  %v4670_v17 = vpack.c.bf16 %v3740_v16, %v3738_v15  ;;  %v3742_v21 = vld [vmem:[%s6780_s5 + $0x90] sm:$0xff]  ;;  %v1133_v53 = vlaneseq }
 0x11f   :  { %v838_v60 = vadd.f32 %v4964_v56, %v3693_v25  ;;  %v4264_v61 = vpop.f32.mrb[6].mxu0  ;;  %4296 = vmatprep.mubr.msk.f32.mxu1 %vm864_vm8, %v844_v55 }
 0x120   :  { %v4965_v5 = vadd.f32 %v4264_v61, %v4184_v22  ;;  %v810_v0 = vpop.f32.mrb[7].mxu0  ;;  %4297 = vmatmul.mubr.msk.f32.gmra.mrb[10].mxu1 %vm864_vm8, %v845_v57  ;;  %v847_v1 = vmax.f32 %v839_v58, 0.0  ;;  %v3744_v22 = vld [vmem:[%s6780_s5 + $0xa0] sm:$0xff] }
 0x121   :  { %v846_v26 = vmax.f32 %v838_v60, 0.0  ;;  %v4966_v27 = vadd.f32 %v810_v0, %v230_v23  ;;  %4647 = vmatpush3.bf16.msra.mxu1 %v4644_v48  ;;  %v4674_v23 = vpack.c.bf16 %v3744_v22, %v3742_v21 }
 0x122   :  { %v841_v30 = vadd.f32 %v4965_v5, %v3693_v25  ;;  %4649 = vmatprep.subr.bf16.mxu1 %v4648_v59 }
 0x123   :  { %v840_v33 = vadd.f32 %v4966_v27, %v3693_v25  ;;  %4299 = vmatprep.mubr.msk.f32.mxu1 %vm864_vm8, %v846_v26  ;;  %v3749_v25 = vld [vmem:[%s6780_s5 + $0xc8] sm:$0xff] }
 0x124   :  { %4300 = vmatmul.mubr.msk.f32.gmra.mrb[12].mxu1 %vm864_vm8, %v847_v1  ;;  %v849_v36 = vmax.f32 %v841_v30, 0.0  ;;  %v4676_v28 = vpack.c.bf16 %v3749_v25, %v3747_v24 }
 0x125   :  { %v848_v34 = vmax.f32 %v840_v33, 0.0  ;;  %4651 = vmatpush3.bf16.msra.mxu1 %v4648_v59 }
 0x126   :  { %4653 = vmatprep.subr.bf16.mxu1 %v4652_v2 }
 0x127   :  { %4302 = vmatprep.mubr.msk.f32.mxu1 %vm864_vm8, %v848_v34 }
 0x128   :  { %4303 = vmatmul.mubr.msk.f32.gmra.mrb[14].mxu1 %vm864_vm8, %v849_v36 }
 0x129   :  { %4655 = vmatpush3.bf16.msra.mxu1 %v4652_v2  ;;  %4333 = vmatprep.mubr.msk.f32.mxu1 %vm864_vm8, %v842_v43 }
 0x12a   :  { %4657 = vmatprep.subr.bf16.mxu1 %v4656_v7 }
 0x12d   :  { %4659 = vmatpush3.bf16.msra.mxu1 %v4656_v7 }
 0x12e   :  { %4661 = vmatprep.subr.bf16.mxu1 %v4660_v9 }
 0x131   :  { %4663 = vmatpush3.bf16.msra.mxu1 %v4660_v9 }
 0x132   :  { %4665 = vmatprep.subr.bf16.mxu1 %v4664_v11 }
 0x135   :  { %4667 = vmatpush3.bf16.msra.mxu1 %v4664_v11 }
 0x136   :  { %4669 = vmatprep.subr.bf16.mxu1 %v4668_v14 }
 0x138   :  { %4334 = vmatmul.mubr.msk.f32.vlgmr.msra.gmra.mrb[16].mxu1 %vm864_vm8, %v843_v46 }
 0x139   :  { %4336 = vmatprep.mubr.msk.f32.mxu1 %vm864_vm8, %v844_v55  ;;  %4671 = vmatpush1.bf16.msra.mxu1 %v4670_v17  ;;  %v5617_v55 = vshrl.u32 %v1133_v53, 7 }
 0x13a   :  { %4673 = vmatprep.subr.bf16.mxu1 %v4672_v20 }
 0x13b   :  { %v5620_v56 = vsub.s32 %v1132_v54, %v5617_v55  ;;  %v5624_v63 = vsub.s32 0, %v5617_v55 }
 0x13c   :  { %4337 = vmatmul.mubr.msk.f32.gmra.mrb[18].mxu1 %vm864_vm8, %v845_v57 }
 0x13d   :  { %4339 = vmatprep.mubr.msk.f32.mxu1 %vm864_vm8, %v846_v26  ;;  %4675 = vmatpush1.bf16.msra.mxu1 %v4674_v23 }
 0x13e   :  { %4677 = vmatprep.subr.bf16.mxu1 %v4676_v28 }
 0x140   :  { %4340 = vmatmul.mubr.msk.f32.gmra.mrb[20].mxu1 %vm864_vm8, %v847_v1 }
 0x141   :  { %4342 = vmatprep.mubr.msk.f32.mxu1 %vm864_vm8, %v848_v34  ;;  %4679 = vmatpush1.bf16.msra.mxu1 %v4678_v32 }
 0x142   :  { %1672 = vmatprep.subr.mxu1 %v3751_v35 }
 0x144   :  { %4343 = vmatmul.mubr.msk.f32.gmra.mrb[22].mxu1 %vm864_vm8, %v849_v36 }
 0x145   :  { %1724 = vmatprep.mubr.f32.mxu1 %v5102_v8  ;;  %1673 = vmatpush1.msra.mxu1 %v3750_v38 }
 0x146   :  { %4681 = vmatprep.subr.bf16.mxu1 %v4680_v41 }
 0x1ef   :  { %v4295_v42 = vpop.f32.mrb[8].mxu1 }
 0x1f0   :  { %v955_v43 = vpop.f32.mrb[9].mxu1 }
 0x1f3   :  { %v4298_v44 = vpop.f32.mrb[10].mxu1 }
 0x1f4   :  { %v965_v46 = vpop.f32.mrb[11].mxu1 }
 0x1f7   :  { %v5609_v47 = vpop.f32.mrb[12].mxu1 }
 0x1f8   :  { %v5611_v48 = vpop.f32.mrb[13].mxu1 }
 0x1fb   :  { %v5613_v49 = vpop.f32.mrb[14].mxu1 }
 0x1fc   :  { %v5615_v50 = vpop.f32.mrb[15].mxu1 }
 0x20b   :  { %v4335_v57 = vpop.f32.mrb[16].mxu1 }
 0x20c   :  { %v1114_v58 = vmax.f32 %v4295_v42, %v4335_v57  ;;  %v1074_v59 = vpop.f32.mrb[17].mxu1 }
 0x20d   :  { %v1113_v60 = vmax.f32 %v955_v43, %v1074_v59 }
 0x20e   :  { %v1146_v61 = vcombine.high %v1114_v58, %v1114_v58  ;;  %v1153_v62 = vrot.slane %v1114_v58, %v5620_v56 }
 0x20f   :  { %v1129_v5 = vcombine.high %v1113_v60, %v1113_v60  ;;  %v1136_v0 = vrot.slane %v1113_v60, %v5620_v56  ;;  %v4338_v26 = vpop.f32.mrb[18].mxu1 }
 0x210   :  { %v1160_v27 = vrot.slane %v1146_v61, %v5620_v56  ;;  %v1161_v1 = vcombine.high %v1153_v62, %v1153_v62  ;;  %v3714_v30 = vrot.slane %v1153_v62, 9  ;;  %v1116_v2 = vmax.f32 %v4298_v44, %v4338_v26  ;;  %v1084_v33 = vpop.f32.mrb[19].mxu1 }
 0x211   :  { %v1143_v4 = vrot.slane %v1129_v5, %v5620_v56  ;;  %v1144_v6 = vcombine.high %v1136_v0, %v1136_v0  ;;  %v3710_v34 = vrot.slane %v1136_v0, 9  ;;  %v1115_v36 = vmax.f32 %v965_v46, %v1084_v33 }
 0x212   :  { %v1162_v7 = vcombine.high %v1160_v27, %v1160_v27  ;;  %v3715_v37 = vrot.slane %v1161_v1, 9  ;;  %v3716_v45 = vrot.slane %v1160_v27, 9  ;;  %v1363_v9 = vmax.f32 %v1153_v62, %v3714_v30 }
 0x213   :  { %v1145_v10 = vcombine.high %v1143_v4, %v1143_v4  ;;  %v3711_v3 = vrot.slane %v1144_v6, 9  ;;  %v3712_v11 = vrot.slane %v1143_v4, 9  ;;  %v1359_v12 = vmax.f32 %v1136_v0, %v3710_v34  ;;  %v4341_v13 = vpop.f32.mrb[20].mxu1 }
 0x214   :  { %v3717_v14 = vrot.slane %v1162_v7, 9  ;;  %v1364_v15 = vmax.f32 %v1161_v1, %v3715_v37  ;;  %v1365_v16 = vmax.f32 %v1160_v27, %v3716_v45  ;;  %v1094_v17 = vpop.f32.mrb[21].mxu1  ;;  %v1447_v18 = vrot.slane %v1363_v9, %v5624_v63 }
 0x215   :  { %v3713_v19 = vrot.slane %v1145_v10, 9  ;;  %v1360_v20 = vmax.f32 %v1144_v6, %v3711_v3  ;;  %v1361_v21 = vmax.f32 %v1143_v4, %v3712_v11  ;;  %v1431_v24 = vrot.slane %v1359_v12, %v5624_v63 }
 0x216   :  { %v1366_v22 = vmax.f32 %v1162_v7, %v3717_v14  ;;  %v1451_v23 = vrot.slane %v1364_v15, %v5624_v63  ;;  %v1186_v25 = vrot.slane %v1116_v2, %v5620_v56  ;;  %v1163_v32 = vcombine.high %v1115_v36, %v1115_v36 }
 0x217   :  { %v1362_v28 = vmax.f32 %v1145_v10, %v3713_v19  ;;  %v1435_v29 = vrot.slane %v1360_v20, %v5624_v63  ;;  %v1439_v31 = vrot.slane %v1361_v21, %v5624_v63  ;;  %v5635_v35 = vpop.f32.mrb[22].mxu1  ;;  %v1455_v38 = vrot.slane %v1365_v16, %v5624_v63  ;;  %v5667_v20 = vld [vmem:[%s6780_s5] sm:$0xff] }
 0x218   :  { %v1187_v39 = vcombine.high %v1186_v25, %v1186_v25  ;;  %v3722_v40 = vrot.slane %v1186_v25, 9  ;;  %v1170_v41 = vrot.slane %v1115_v36, %v5620_v56  ;;  %v1104_v42 = vpop.f32.mrb[23].mxu1  ;;  %v1177_v46 = vrot.slane %v1163_v32, %v5620_v56 }
 0x219   :  { %v1443_v43 = vrot.slane %v1362_v28, %v5624_v63  ;;  %v1541_v44 = vsel %vm1540_vm10, %v1435_v29, %v1431_v24  ;;  %v1118_v51 = vmax.f32 %v5609_v47, %v4341_v13  ;;  %v1459_v62 = vrot.slane %v1366_v22, %v5624_v63 }
 0x21a   :  { %v1543_v52 = vsel %vm1542_vm11, %v1439_v31, %v1541_v44  ;;  %v3723_v53 = vrot.slane %v1187_v39, 9  ;;  %v1371_v54 = vmax.f32 %v1186_v25, %v3722_v40  ;;  %v1178_v57 = vcombine.high %v1170_v41, %v1170_v41 }
 0x21b   :  { %v1545_v58 = vsel %vm1544_vm12, %v1443_v43, %v1543_v52  ;;  %v1179_v59 = vcombine.high %v1177_v46, %v1177_v46  ;;  %v3718_v60 = vrot.slane %v1170_v41, 9  ;;  %v3720_v61 = vrot.slane %v1177_v46, 9 }
 0x21c   :  { %v1547_v5 = vsel %vm1546_vm13, %v1447_v18, %v1545_v58  ;;  %v1372_v0 = vmax.f32 %v1187_v39, %v3723_v53  ;;  %v3719_v26 = vrot.slane %v1178_v57, 9  ;;  %v1479_v33 = vrot.slane %v1371_v54, %v5624_v63 }
 0x21d   :  { %v1549_v27 = vsel %vm1548_vm14, %v1451_v23, %v1547_v5  ;;  %v3721_v47 = vrot.slane %v1179_v59, 9  ;;  %v1367_v1 = vmax.f32 %v1170_v41, %v3718_v60  ;;  %v1369_v30 = vmax.f32 %v1177_v46, %v3720_v61  ;;  %v5684_v23 = vld [vmem:[%s6780_s5 + $0x38] sm:$0xff] }
 0x21e   :  { %v1551_v2 = vsel %vm1550_vm15, %v1455_v38, %v1549_v27  ;;  %v1368_v4 = vmax.f32 %v1178_v57, %v3719_v26  ;;  %v1205_v6 = vcombine.high %v1118_v51, %v1118_v51  ;;  %v1212_v9 = vrot.slane %v1118_v51, %v5620_v56 }
 0x21f   :  { %v1553_v34 = vsel %vm1552_vm1, %v1459_v62, %v1551_v2  ;;  %v1370_v36 = vmax.f32 %v1179_v59, %v3721_v47  ;;  %v1463_v7 = vrot.slane %v1367_v1, %v5624_v63  ;;  %v1471_v37 = vrot.slane %v1369_v30, %v5624_v63 }
 0x220   :  { %v1467_v45 = vrot.slane %v1368_v4, %v5624_v63  ;;  %1575 = vst.msk [vmem:[#allocation3 + $0x2] sm:$0xff] %vm1387_vm9, %v1553_v34  ;;  %v1219_v10 = vrot.slane %v1205_v6, %v5620_v56  ;;  %v1117_v3 = vmax.f32 %v5611_v48, %v1094_v17  ;;  %v1483_v11 = vrot.slane %v1372_v0, %v5624_v63 }
 0x221   :  { %v1475_v12 = vrot.slane %v1370_v36, %v5624_v63  ;;  %v1120_v13 = vmax.f32 %v5613_v49, %v5635_v35  ;;  %v1119_v14 = vmax.f32 %v5615_v50, %v1104_v42  ;;  %v1220_v16 = vcombine.high %v1212_v9, %v1212_v9  ;;  %v5674_v49 = vld [vmem:[%s6780_s5 + $0x10] sm:$0xff]  ;;  %v5679_v50 = vld [vmem:[%s6780_s5 + $0x28] sm:$0xff] }
 0x222   :  { %v1554_v15 = vsel %vm1540_vm10, %v1467_v45, %v1463_v7  ;;  %v1221_v18 = vcombine.high %v1219_v10, %v1219_v10  ;;  %v3728_v19 = vrot.slane %v1212_v9, 9  ;;  %v3730_v17 = vrot.slane %v1219_v10, 9 }
 0x223   :  { %v1555_v48 = vsel %vm1542_vm11, %v1471_v37, %v1554_v15  ;;  %v1188_v21 = vcombine.high %v1117_v3, %v1117_v3  ;;  %v1195_v22 = vrot.slane %v1117_v3, %v5620_v56  ;;  %v3729_v25 = vrot.slane %v1220_v16, 9 }
 0x224   :  { %v1556_v24 = vsel %vm1544_vm12, %v1475_v12, %v1555_v48  ;;  %v3731_v28 = vrot.slane %v1221_v18, 9  ;;  %v1377_v29 = vmax.f32 %v1212_v9, %v3728_v19  ;;  %v1379_v32 = vmax.f32 %v1219_v10, %v3730_v17 }
 0x225   :  { %v1557_v31 = vsel %vm1546_vm13, %v1479_v33, %v1556_v24  ;;  %v1202_v35 = vrot.slane %v1188_v21, %v5620_v56  ;;  %v1203_v38 = vcombine.high %v1195_v22, %v1195_v22  ;;  %v1378_v40 = vmax.f32 %v1220_v16, %v3729_v25 }
 0x226   :  { %v1558_v39 = vsel %vm1548_vm14, %v1483_v11, %v1557_v31  ;;  %v4682_v41 = vpack.c.bf16 %v5674_v49, %v5667_v20  ;;  %v4684_v42 = vpack.c.bf16 %v5684_v23, %v5679_v50  ;;  %v1380_v43 = vmax.f32 %v1221_v18, %v3731_v28  ;;  %v5717_v28 = vld [vmem:[#allocation3 + $0x10] sm:$0xff] }
 0x227   :  { %1577 = vst.msk [vmem:[#allocation3 + $0xa] sm:$0x3f] %vm1576_vm2, %v1558_v39  ;;  %v1204_v44 = vcombine.high %v1202_v35, %v1202_v35  ;;  %v3724_v46 = vrot.slane %v1195_v22, 9  ;;  %v3725_v51 = vrot.slane %v1203_v38, 9  ;;  %v1503_v52 = vrot.slane %v1377_v29, %v5624_v63  ;;  %v5706_v45 = vld [vmem:[#allocation3] sm:$0xff] }
 0x228   :  { %v1511_v53 = vrot.slane %v1379_v32, %v5624_v63  ;;  %v3726_v54 = vrot.slane %v1202_v35, 9  ;;  %v1245_v57 = vrot.slane %v1120_v13, %v5620_v56  ;;  %v1222_v61 = vcombine.high %v1119_v14, %v1119_v14 }
 0x229   :  { %v3727_v58 = vrot.slane %v1204_v44, 9  ;;  %v1373_v59 = vmax.f32 %v1195_v22, %v3724_v46  ;;  %v1374_v60 = vmax.f32 %v1203_v38, %v3725_v51  ;;  %v1229_v26 = vrot.slane %v1119_v14, %v5620_v56 }
 0x22a   :  { %v1375_v62 = vmax.f32 %v1202_v35, %v3726_v54  ;;  %v1246_v5 = vcombine.high %v1245_v57, %v1245_v57  ;;  %v3736_v0 = vrot.slane %v1245_v57, 9  ;;  %v1236_v30 = vrot.slane %v1222_v61, %v5620_v56 }
 0x22b   :  { %v1376_v27 = vmax.f32 %v1204_v44, %v3727_v58  ;;  %v1487_v47 = vrot.slane %v1373_v59, %v5624_v63  ;;  %v1491_v1 = vrot.slane %v1374_v60, %v5624_v63  ;;  %v1507_v2 = vrot.slane %v1378_v40, %v5624_v63  ;;  %v1595_v44 = vld [vmem:[%s6780_s5 + $0x30] sm:$0xff]  ;;  %v1600_v58 = vld [vmem:[%s6780_s5 + $0x58] sm:$0xff] }
 0x22c   :  { %v1495_v33 = vrot.slane %v1375_v62, %v5624_v63  ;;  %v3737_v4 = vrot.slane %v1246_v5, 9  ;;  %v1237_v6 = vcombine.high %v1229_v26, %v1229_v26  ;;  %v1238_v7 = vcombine.high %v1236_v30, %v1236_v30  ;;  %v5746_v60 = vld [vmem:[#allocation3 + $0x18] sm:$0xff] }
 0x22d   :  { %v1499_v34 = vrot.slane %v1376_v27, %v5624_v63  ;;  %v1559_v36 = vsel %vm1540_vm10, %v1491_v1, %v1487_v47  ;;  %v3732_v37 = vrot.slane %v1229_v26, 9  ;;  %v1515_v9 = vrot.slane %v1380_v43, %v5624_v63  ;;  %v1593_v43 = vld [vmem:[%s6780_s5 + $0x20] sm:$0xff] }
 0x22e   :  { %v1560_v10 = vsel %vm1542_vm11, %v1495_v33, %v1559_v36  ;;  %v1385_v3 = vmax.f32 %v1245_v57, %v3736_v0  ;;  %v3733_v11 = vrot.slane %v1237_v6, 9  ;;  %v3734_v13 = vrot.slane %v1236_v30, 9  ;;  %v5711_v16 = vld [vmem:[#allocation3 + $0x8] sm:$0xff] }
 0x22f   :  { %v1561_v12 = vsel %vm1544_vm12, %v1499_v34, %v1560_v10  ;;  %v3735_v14 = vrot.slane %v1238_v7, 9  ;;  %v1381_v15 = vmax.f32 %v1229_v26, %v3732_v37  ;;  %v1386_v19 = vmax.f32 %v1246_v5, %v3737_v4  ;;  %v1598_v57 = vld [vmem:[%s6780_s5 + $0x48] sm:$0xff]  ;;  %v3771_v37 = vld [vmem:[%s6780_s5 + $0xf8] sm:$0xff]  ;;  %v1601_v10 = vld [vmem:[%s6780_s5 + $0x60] sm:$0xff] }
 0x230   :  { %v1562_v18 = vsel %vm1546_vm13, %v1503_v52, %v1561_v12  ;;  %v1382_v48 = vmax.f32 %v1237_v6, %v3733_v11  ;;  %v1627_v17 = vrot.slane %v5706_v45, 1  ;;  %v1383_v22 = vmax.f32 %v1236_v30, %v3734_v13  ;;  %v1597_v30 = vld [vmem:[%s6780_s5 + $0x40] sm:$0xff]  ;;  %v1602_v36 = vld [vmem:[%s6780_s5 + $0x68] sm:$0xff] }
 0x231   :  { %v1563_v21 = vsel %vm1548_vm14, %v1507_v2, %v1562_v18  ;;  %v1384_v24 = vmax.f32 %v1238_v7, %v3735_v14  ;;  %v1519_v25 = vrot.slane %v1381_v15, %v5624_v63  ;;  %v1628_v32 = vrot.slane %v5711_v16, 1  ;;  %v1599_v2 = vld [vmem:[%s6780_s5 + $0x50] sm:$0xff]  ;;  %v3769_v7 = vld [vmem:[%s6780_s5 + $0xe8] sm:$0xff] }
 0x232   :  { %v1564_v29 = vsel %vm1550_vm15, %v1511_v53, %v1563_v21  ;;  %v1523_v31 = vrot.slane %v1382_v48, %v5624_v63  ;;  %v1917_v35 = vrot.slane %v5706_v45, 2  ;;  %v1527_v39 = vrot.slane %v1383_v22, %v5624_v63  ;;  %v5813_v15 = vld [vmem:[#allocation3 + $0x30] sm:$0xff]  ;;  %v5821_v22 = vld [vmem:[#allocation3 + $0x38] sm:$0xff] }
 0x233   :  { %v1565_v38 = vsel %vm1552_vm1, %v1515_v9, %v1564_v29  ;;  %v1531_v40 = vrot.slane %v1384_v24, %v5624_v63  ;;  %v1918_v46 = vrot.slane %v5711_v16, 2  ;;  %v1535_v51 = vrot.slane %v1385_v3, %v5624_v63 }
 0x234   :  { %1578 = vst.msk [vmem:[#allocation3 + $0x22] sm:$0xff] %vm1387_vm9, %v1565_v38  ;;  %v1566_v52 = vsel %vm1540_vm10, %v1523_v31, %v1519_v25  ;;  %v1629_v53 = vsel %vm96_vm5, %v1627_v17, %v1628_v32  ;;  %v1630_v54 = vrot.slane %v5717_v28, 1  ;;  %v2094_v62 = vrot.slane %v5706_v45, 3  ;;  %v5849_v38 = vld [vmem:[#allocation3 + $0x40] sm:$0xff] }
 0x235   :  { %v1567_v59 = vsel %vm1542_vm11, %v1527_v39, %v1566_v52  ;;  %3752 = vmatmul.mubr.msk.f32.vlgmr.msra.gmra.mrb[24].mxu1 %vm1387_vm9, %v1629_v53  ;;  %v5751_v61 = vsel %vm368_vm6, %v1917_v35, %v1918_v46  ;;  %v2095_v5 = vrot.slane %v5711_v16, 3  ;;  %v1539_v0 = vrot.slane %v1386_v19, %v5624_v63  ;;  %v3770_v52 = vld [vmem:[%s6780_s5 + $0xf0] sm:$0xff]  ;;  %v3773_v53 = vld [vmem:[%s6780_s5 + $0x108] sm:$0xff] }
 0x236   :  { %v1568_v26 = vsel %vm1544_vm12, %v1531_v40, %v1567_v59  ;;  %4683 = vmatpush1.bf16.msra.mxu1 %v4682_v41  ;;  %1730 = vmatprep.mubr.f32.mxu1 %v5102_v8  ;;  %v4686_v27 = vpack.c.bf16 %v1595_v44, %v1593_v43  ;;  %v4688_v1 = vpack.c.bf16 %v1600_v58, %v1598_v57  ;;  %v1632_v50 = vrot.slane %v5746_v60, 1  ;;  %v2631_v57 = vld [vmem:[%s6783_s8] sm:$0xff] }
 0x237   :  { %v1569_v47 = vsel %vm1546_vm13, %v1535_v51, %v1568_v26  ;;  %4685 = vmatprep.subr.bf16.mxu1 %v4684_v42  ;;  %v5774_v20 = vsel %vm523_vm7, %v2094_v62, %v2095_v5  ;;  %v1631_v41 = vsel %vm96_vm5, %v1628_v32, %v1630_v54  ;;  %v4690_v42 = vpack.c.bf16 %v1599_v2, %v1597_v30  ;;  %v3768_v51 = vld [vmem:[%s6780_s5 + $0xe0] sm:$0xff]  ;;  %v2634_v30 = vld [vmem:[%s6783_s8 + $0x18] sm:$0xff]  ;;  %v3777_v2 = vld [vmem:[%s6780_s5 + $0x128] sm:$0xff] }
 0x238   :  { %v1570_v49 = vsel %vm1548_vm14, %v1539_v0, %v1569_v47  ;;  %v1633_v23 = vsel %vm96_vm5, %v1630_v54, %v1632_v50  ;;  %v2271_v33 = vrot.slane %v5706_v45, 4  ;;  %v2272_v4 = vrot.slane %v5711_v16, 4  ;;  %v3775_v54 = vld [vmem:[%s6780_s5 + $0x118] sm:$0xff]  ;;  %v3772_v59 = vld [vmem:[%s6780_s5 + $0x100] sm:$0xff]  ;;  %v2632_v0 = vld [vmem:[%s6783_s8 + $0x8] sm:$0xff] }
 0x239   :  { %1579 = vst.msk [vmem:[#allocation3 + $0x2a] sm:$0x3f] %vm1576_vm2, %v1570_v49  ;;  %3753 = vmatmul.mubr.msk.f32.gmra.mrb[26].mxu1 %vm1387_vm9, %v1631_v41  ;;  %v4692_v3 = vpack.c.bf16 %v3771_v37, %v3769_v7  ;;  %v1638_v29 = vrot.slane %v5813_v15, 1  ;;  %v1640_v35 = vrot.slane %v5821_v22, 1  ;;  %v1642_v43 = vrot.slane %v5849_v38, 1  ;;  %v3779_v49 = vld [vmem:[%s6780_s5 + $0x138] sm:$0xff] }
 0x23a   :  { %1736 = vmatprep.mubr.f32.mxu1 %v5102_v8  ;;  %4687 = vmatpush1.bf16.msra.mxu1 %v4686_v27  ;;  %v5800_v9 = vsel %vm130_vm0, %v2271_v33, %v2272_v4  ;;  %v4694_v58 = vpack.c.bf16 %v3770_v52, %v3768_v51  ;;  %v5104_v62 = vmov 0.0|0.0   ;;  %v4696_v26 = vpack.c.bf16 %v3775_v54, %v3773_v53  ;;  %v3774_v27 = vld [vmem:[%s6780_s5 + $0x110] sm:$0xff]  ;;  %v2642_v51 = vld [vmem:[%s6783_s8 + $0x58] sm:$0xff]  ;;  %v2643_v53 = vld [vmem:[%s6783_s8 + $0x60] sm:$0xff] }
 0x23b   :  { %v5785_v6 = vld [vmem:[#allocation3 + $0x20] sm:$0xff]  ;;  %4689 = vmatprep.subr.bf16.mxu1 %v4688_v1  ;;  %v1641_v40 = vsel %vm96_vm5, %v1638_v29, %v1640_v35  ;;  %v1643_v44 = vsel %vm96_vm5, %v1640_v35, %v1642_v43  ;;  %4770 = vmatprep.subr.bf16.mxu0 %v5104_v62  ;;  %v4771_v47 = vpack.c.bf16 %v2632_v0, %v2631_v57  ;;  %v2633_v1 = vld [vmem:[%s6783_s8 + $0x10] sm:$0xff]  ;;  %v2640_v35 = vld [vmem:[%s6783_s8 + $0x48] sm:$0xff] }
 0x23c   :  { %v1634_v34 = vrot.slane %v5785_v6, 1  ;;  %v1924_v13 = vrot.slane %v5785_v6, 2  ;;  %v2101_v17 = vrot.slane %v5785_v6, 3  ;;  %v2278_v21 = vrot.slane %v5785_v6, 4  ;;  %v2637_v37 = vld [vmem:[%s6783_s8 + $0x30] sm:$0xff]  ;;  %v2644_v54 = vld [vmem:[%s6783_s8 + $0x68] sm:$0xff] }
 0x23d   :  { %3754 = vmatmul.mubr.msk.f32.gmra.mrb[28].mxu1 %vm1387_vm9, %v1633_v23  ;;  %4772 = vmatpush1.bf16.msra.mxu0 %v4771_v47  ;;  %v4774_v41 = vpack.c.bf16 %v2634_v30, %v2633_v1  ;;  %v2635_v23 = vld [vmem:[%s6783_s8 + $0x20] sm:$0xff]  ;;  %v4700_v33 = vpack.c.bf16 %v3779_v49, %v3777_v2  ;;  %v4789_v57 = vpack.c.bf16 %v2644_v54, %v2643_v53  ;;  %v3790_v47 = vld [vmem:[%s6780_s5 + $0x150] sm:$0xff]  ;;  %v3795_v30 = vld [vmem:[%s6780_s5 + $0x178] sm:$0xff] }
 0x23e   :  { %1742 = vmatprep.mubr.f32.mxu1 %v5102_v8  ;;  %4691 = vmatpush1.bf16.msra.mxu1 %v4690_v42  ;;  %v1635_v11 = vsel %vm96_vm5, %v1632_v50, %v1634_v34  ;;  %v4698_v50 = vpack.c.bf16 %v3774_v27, %v3772_v59  ;;  %v2636_v42 = vld [vmem:[%s6783_s8 + $0x28] sm:$0xff]  ;;  %v2646_v59 = vld [vmem:[%s6783_s8 + $0x78] sm:$0xff]  ;;  %v3792_v1 = vld [vmem:[%s6780_s5 + $0x160] sm:$0xff] }
 0x23f   :  { %1801 = vmatprep.subr.mxu1 %v1602_v36  ;;  %4773 = vmatprep.subr.bf16.mxu0 %v5104_v62  ;;  %v4777_v36 = vpack.c.bf16 %v2636_v42, %v2635_v23  ;;  %v2648_v27 = vld [vmem:[%s6783_s8 + $0x88] sm:$0xff]  ;;  %v2650_v23 = vld [vmem:[%s6783_s8 + $0x98] sm:$0xff] }
 0x240   :  { %v5808_v12 = vld [vmem:[#allocation3 + $0x28] sm:$0xff]  ;;  %v3815_v53 = vld [vmem:[%s6780_s5 + $0x1d8] sm:$0xff] }
 0x241   :  { %3755 = vmatmul.mubr.msk.f32.gmra.mrb[30].mxu1 %vm1387_vm9, %v1635_v11  ;;  %v1636_v14 = vrot.slane %v5808_v12, 1  ;;  %v1926_v18 = vrot.slane %v5808_v12, 2  ;;  %v2103_v19 = vrot.slane %v5808_v12, 3  ;;  %v2280_v48 = vrot.slane %v5808_v12, 4  ;;  %4775 = vmatpush1.bf16.msra.mxu0 %v4774_v41  ;;  %v3791_v11 = vld [vmem:[%s6780_s5 + $0x158] sm:$0xff]  ;;  %v3797_v2 = vld [vmem:[%s6780_s5 + $0x188] sm:$0xff] }
 0x242   :  { %1748 = vmatprep.mubr.f32.mxu1 %v5102_v8  ;;  %1802 = vmatpush1.msra.mxu1 %v1601_v10  ;;  %v2638_v10 = vld [vmem:[%s6783_s8 + $0x38] sm:$0xff]  ;;  %v4706_v41 = vpack.c.bf16 %v3792_v1, %v3790_v47  ;;  %v4708_v42 = vpack.c.bf16 %v3797_v2, %v3795_v30  ;;  %v1932_v47 = vrot.slane %v5849_v38, 2  ;;  %v3812_v1 = vld [vmem:[%s6780_s5 + $0x1c0] sm:$0xff]  ;;  %v3817_v30 = vld [vmem:[%s6780_s5 + $0x1e8] sm:$0xff] }
 0x243   :  { %4693 = vmatprep.subr.bf16.mxu1 %v4692_v3  ;;  %v5828_v24 = vsel %vm368_vm6, %v1924_v13, %v1926_v18  ;;  %v1637_v25 = vsel %vm96_vm5, %v1634_v34, %v1636_v14  ;;  %v5837_v31 = vsel %vm523_vm7, %v2101_v17, %v2103_v19  ;;  %v5844_v32 = vsel %vm130_vm0, %v2278_v21, %v2280_v48  ;;  %v3778_v34 = vld [vmem:[%s6780_s5 + $0x130] sm:$0xff]  ;;  %v3781_v3 = vld [vmem:[%s6780_s5 + $0x148] sm:$0xff]  ;;  %v3819_v2 = vld [vmem:[%s6780_s5 + $0x1f8] sm:$0xff] }
 0x244   :  { %v1639_v39 = vsel %vm96_vm5, %v1636_v14, %v1638_v29  ;;  %4776 = vmatprep.subr.bf16.mxu0 %v5104_v62  ;;  %v3793_v14 = vld [vmem:[%s6780_s5 + $0x168] sm:$0xff]  ;;  %v2639_v29 = vld [vmem:[%s6783_s8 + $0x40] sm:$0xff] }
 0x245   :  { %3756 = vmatmul.mubr.msk.f32.gmra.mrb[32].mxu1 %vm1387_vm9, %v1637_v25  ;;  %4778 = vmatpush1.bf16.msra.mxu0 %v4777_v36  ;;  %v4780_v25 = vpack.c.bf16 %v2638_v10, %v2637_v37  ;;  %v4783_v43 = vpack.c.bf16 %v2640_v35, %v2639_v29  ;;  %v3799_v36 = vld [vmem:[%s6780_s5 + $0x198] sm:$0xff]  ;;  %v1922_v35 = vrot.slane %v5746_v60, 2 }
 0x246   :  { %1754 = vmatprep.mubr.f32.mxu1 %v5102_v8  ;;  %4779 = vmatprep.subr.bf16.mxu0 %v5104_v62 }
 0x249   :  { %3757 = vmatmul.mubr.msk.f32.gmra.mrb[34].mxu1 %vm1387_vm9, %v1639_v39  ;;  %v3780_v39 = vld [vmem:[%s6780_s5 + $0x140] sm:$0xff]  ;;  %4781 = vmatpush1.bf16.msra.mxu0 %v4780_v25 }
 0x24a   :  { %1760 = vmatprep.mubr.f32.mxu1 %v5102_v8  ;;  %4782 = vmatprep.subr.bf16.mxu0 %v5104_v62  ;;  %v3800_v25 = vld [vmem:[%s6780_s5 + $0x1a0] sm:$0xff] }
 0x24d   :  { %3758 = vmatmul.mubr.msk.f32.gmra.mrb[36].mxu1 %vm1387_vm9, %v1641_v40  ;;  %v4704_v40 = vpack.c.bf16 %v3793_v14, %v3791_v11  ;;  %4784 = vmatpush1.bf16.msra.mxu0 %v4783_v43  ;;  %v2652_v11 = vld [vmem:[%s6783_s8 + $0xa8] sm:$0xff] }
 0x24e   :  { %1766 = vmatprep.mubr.f32.mxu1 %v5102_v8  ;;  %4785 = vmatprep.subr.bf16.mxu0 %v5104_v62 }
 0x251   :  { %3759 = vmatmul.mubr.msk.f32.gmra.mrb[38].mxu1 %vm1387_vm9, %v1643_v44  ;;  %v2641_v44 = vld [vmem:[%s6783_s8 + $0x50] sm:$0xff] }
 0x252   :  { %1853 = vmatprep.mubr.f32.mxu1 %v5102_v8  ;;  %v4786_v52 = vpack.c.bf16 %v2642_v51, %v2641_v44  ;;  %v2653_v44 = vld [vmem:[%s6783_s8 + $0xb0] sm:$0xff]  ;;  %v3803_v51 = vld [vmem:[%s6780_s5 + $0x1b8] sm:$0xff] }
 0x254   :  { %4787 = vmatpush1.bf16.msra.mxu0 %v4786_v52  ;;  %v3813_v52 = vld [vmem:[%s6780_s5 + $0x1c8] sm:$0xff] }
 0x255   :  { %3760 = vmatmul.mubr.msk.f32.vlgmr.msra.gmra.mrb[24].mxu1 %vm1387_vm9, %v5706_v45  ;;  %v3776_v45 = vld [vmem:[%s6780_s5 + $0x120] sm:$0xff]  ;;  %4788 = vmatprep.subr.bf16.mxu0 %v5104_v62 }
 0x256   :  { %4695 = vmatpush1.bf16.msra.mxu1 %v4694_v58  ;;  %1859 = vmatprep.mubr.f32.mxu1 %v5102_v8  ;;  %v4702_v7 = vpack.c.bf16 %v3778_v34, %v3776_v45  ;;  %v2645_v58 = vld [vmem:[%s6783_s8 + $0x70] sm:$0xff]  ;;  %v3796_v45 = vld [vmem:[%s6780_s5 + $0x180] sm:$0xff]  ;;  %v1920_v34 = vrot.slane %v5717_v28, 2 }
 0x257   :  { %4697 = vmatprep.subr.bf16.mxu1 %v4696_v26  ;;  %v4792_v0 = vpack.c.bf16 %v2646_v59, %v2645_v58  ;;  %v2647_v26 = vld [vmem:[%s6783_s8 + $0x80] sm:$0xff]  ;;  %v4716_v58 = vpack.c.bf16 %v3815_v53, %v3813_v52  ;;  %v1925_v59 = vsel %vm368_vm6, %v1922_v35, %v1924_v13 }
 0x258   :  { %4790 = vmatpush1.bf16.msra.mxu0 %v4789_v57  ;;  %v4795_v49 = vpack.c.bf16 %v2648_v27, %v2647_v26  ;;  %v1921_v29 = vsel %vm368_vm6, %v1918_v46, %v1920_v34  ;;  %v2654_v46 = vld [vmem:[%s6783_s8 + $0xb8] sm:$0xff]  ;;  %v3802_v57 = vld [vmem:[%s6780_s5 + $0x1b0] sm:$0xff]  ;;  %v1930_v26 = vrot.slane %v5821_v22, 2  ;;  %v2481_v53 = vld [vmem:[%s6782_s7 + $0x20] sm:$0xff] }
 0x259   :  { %3761 = vmatmul.mubr.msk.f32.gmra.mrb[26].mxu1 %vm1387_vm9, %v5711_v16  ;;  %4791 = vmatprep.subr.bf16.mxu0 %v5104_v62  ;;  %v4804_v54 = vpack.c.bf16 %v2654_v46, %v2653_v44  ;;  %v2479_v44 = vld [vmem:[%s6782_s7 + $0x10] sm:$0xff]  ;;  %v2480_v46 = vld [vmem:[%s6782_s7 + $0x18] sm:$0xff] }
 0x25a   :  { %1865 = vmatprep.mubr.f32.mxu1 %v5102_v8  ;;  %4699 = vmatpush1.bf16.msra.mxu1 %v4698_v50  ;;  %v2649_v50 = vld [vmem:[%s6783_s8 + $0x90] sm:$0xff]  ;;  %v4732_v52 = vpack.c.bf16 %v2480_v46, %v2479_v44  ;;  %v2484_v16 = vld [vmem:[%s6782_s7 + $0x38] sm:$0xff] }
 0x25b   :  { %4701 = vmatprep.subr.bf16.mxu1 %v4700_v33  ;;  %v3794_v33 = vld [vmem:[%s6780_s5 + $0x170] sm:$0xff]  ;;  %v4798_v37 = vpack.c.bf16 %v2650_v23, %v2649_v50  ;;  %v3816_v50 = vld [vmem:[%s6780_s5 + $0x1e0] sm:$0xff] }
 0x25c   :  { %4793 = vmatpush1.bf16.msra.mxu0 %v4792_v0  ;;  %v4710_v10 = vpack.c.bf16 %v3796_v45, %v3794_v33  ;;  %v1928_v0 = vrot.slane %v5813_v15, 2  ;;  %v3818_v23 = vld [vmem:[%s6780_s5 + $0x1f0] sm:$0xff]  ;;  %v3821_v33 = vld [vmem:[%s6780_s5 + $0x208] sm:$0xff]  ;;  %v3823_v45 = vld [vmem:[%s6780_s5 + $0x218] sm:$0xff] }
 0x25d   :  { %3762 = vmatmul.mubr.msk.f32.gmra.mrb[28].mxu1 %vm1387_vm9, %v5717_v28  ;;  %4794 = vmatprep.subr.bf16.mxu0 %v5104_v62 }
 0x25e   :  { %1871 = vmatprep.mubr.f32.mxu1 %v5102_v8  ;;  %4703 = vmatpush1.bf16.msra.mxu1 %v4702_v7  ;;  %v3801_v7 = vld [vmem:[%s6780_s5 + $0x1a8] sm:$0xff]  ;;  %v1929_v13 = vsel %vm368_vm6, %v1926_v18, %v1928_v0  ;;  %v1931_v27 = vsel %vm368_vm6, %v1928_v0, %v1930_v26  ;;  %v3814_v18 = vld [vmem:[%s6780_s5 + $0x1d0] sm:$0xff] }
 0x25f   :  { %1962 = vmatprep.subr.mxu1 %v3781_v3  ;;  %v2651_v3 = vld [vmem:[%s6783_s8 + $0xa0] sm:$0xff]  ;;  %v4712_v14 = vpack.c.bf16 %v3801_v7, %v3799_v36  ;;  %v4724_v36 = vpack.c.bf16 %v3823_v45, %v3821_v33  ;;  %v2486_v0 = vld [vmem:[%s6782_s7 + $0x48] sm:$0xff] }
 0x260   :  { %4796 = vmatpush1.bf16.msra.mxu0 %v4795_v49  ;;  %v4718_v49 = vpack.c.bf16 %v3814_v18, %v3812_v1  ;;  %v3820_v7 = vld [vmem:[%s6780_s5 + $0x200] sm:$0xff]  ;;  %v2490_v18 = vld [vmem:[%s6782_s7 + $0x68] sm:$0xff] }
 0x261   :  { %3763 = vmatmul.mubr.msk.f32.gmra.mrb[30].mxu1 %vm1387_vm9, %v5746_v60  ;;  %4797 = vmatprep.subr.bf16.mxu0 %v5104_v62  ;;  %v2489_v1 = vld [vmem:[%s6782_s7 + $0x60] sm:$0xff] }
 0x262   :  { %1877 = vmatprep.mubr.f32.mxu1 %v5102_v8  ;;  %1963 = vmatpush1.msra.mxu1 %v3780_v39  ;;  %v4801_v39 = vpack.c.bf16 %v2652_v11, %v2651_v3  ;;  %v2497_v45 = vld [vmem:[%s6782_s7 + $0xa0] sm:$0xff] }
 0x263   :  { %4705 = vmatprep.subr.bf16.mxu1 %v4704_v40  ;;  %v1923_v40 = vsel %vm368_vm6, %v1920_v34, %v1922_v35  ;;  %v4722_v34 = vpack.c.bf16 %v3818_v23, %v3816_v50  ;;  %v2495_v23 = vld [vmem:[%s6782_s7 + $0x90] sm:$0xff] }
 0x264   :  { %4799 = vmatpush1.bf16.msra.mxu0 %v4798_v37  ;;  %v3822_v37 = vld [vmem:[%s6780_s5 + $0x210] sm:$0xff] }
 0x265   :  { %3764 = vmatmul.mubr.msk.f32.gmra.mrb[32].mxu1 %vm1387_vm9, %v5785_v6  ;;  %4800 = vmatprep.subr.bf16.mxu0 %v5104_v62  ;;  %v4726_v11 = vpack.c.bf16 %v3822_v37, %v3820_v7  ;;  %v2282_v6 = vrot.slane %v5813_v15, 4  ;;  %v2499_v7 = vld [vmem:[%s6782_s7 + $0xb0] sm:$0xff]  ;;  %v2500_v37 = vld [vmem:[%s6782_s7 + $0xb8] sm:$0xff] }
 0x266   :  { %1883 = vmatprep.mubr.f32.mxu1 %v5102_v8 }
 0x268   :  { %4802 = vmatpush1.bf16.msra.mxu0 %v4801_v39  ;;  %v2109_v39 = vrot.slane %v5849_v38, 3 }
 0x269   :  { %3765 = vmatmul.mubr.msk.f32.gmra.mrb[34].mxu1 %vm1387_vm9, %v5808_v12  ;;  %4803 = vmatprep.subr.bf16.mxu0 %v5104_v62  ;;  %v2492_v12 = vld [vmem:[%s6782_s7 + $0x78] sm:$0xff] }
 0x26a   :  { %1889 = vmatprep.mubr.f32.mxu1 %v5102_v8 }
 0x26c   :  { %4805 = vmatpush1.bf16.msra.mxu0 %v4804_v54  ;;  %v2482_v54 = vld [vmem:[%s6782_s7 + $0x28] sm:$0xff] }
 0x26d   :  { %3766 = vmatmul.mubr.msk.f32.gmra.mrb[36].mxu1 %vm1387_vm9, %v5813_v15  ;;  %4806 = vmatprep.subr.bf16.mxu0 %v5104_v62 }
 0x26e   :  { %1895 = vmatprep.mubr.f32.mxu1 %v5102_v8 }
 0x271   :  { %3767 = vmatmul.mubr.msk.f32.gmra.mrb[38].mxu1 %vm1387_vm9, %v5821_v22 }
 0x272   :  { %2014 = vmatprep.mubr.f32.mxu1 %v5102_v8 }
 0x275   :  { %3782 = vmatmul.mubr.msk.f32.vlgmr.msra.gmra.mrb[24].mxu1 %vm1387_vm9, %v5751_v61  ;;  %v3798_v61 = vld [vmem:[%s6780_s5 + $0x190] sm:$0xff] }
 0x276   :  { %4707 = vmatpush1.bf16.msra.mxu1 %v4706_v41  ;;  %2020 = vmatprep.mubr.f32.mxu1 %v5102_v8  ;;  %v4714_v43 = vpack.c.bf16 %v3800_v25, %v3798_v61  ;;  %v4720_v41 = vpack.c.bf16 %v3819_v2, %v3817_v30  ;;  %v2105_v25 = vrot.slane %v5813_v15, 3  ;;  %v2283_v15 = vsel %vm130_vm0, %v2280_v48, %v2282_v6  ;;  %v2491_v2 = vld [vmem:[%s6782_s7 + $0x70] sm:$0xff] }
 0x277   :  { %4709 = vmatprep.subr.bf16.mxu1 %v4708_v42  ;;  %v2097_v42 = vrot.slane %v5717_v28, 3  ;;  %v4747_v30 = vpack.c.bf16 %v2490_v18, %v2489_v1 }
 0x279   :  { %3783 = vmatmul.mubr.msk.f32.gmra.mrb[26].mxu1 %vm1387_vm9, %v1921_v29  ;;  %v2107_v29 = vrot.slane %v5821_v22, 3 }
 0x27a   :  { %2026 = vmatprep.mubr.f32.mxu1 %v5102_v8  ;;  %4711 = vmatpush1.bf16.msra.mxu1 %v4710_v10  ;;  %v2098_v10 = vsel %vm523_vm7, %v2095_v5, %v2097_v42  ;;  %v3824_v5 = vld [vmem:[%s6780_s5 + $0x220] sm:$0xff] }
 0x27b   :  { %4713 = vmatprep.subr.bf16.mxu1 %v4712_v14  ;;  %v3825_v14 = vld [vmem:[%s6780_s5 + $0x228] sm:$0xff]  ;;  %v2108_v35 = vsel %vm523_vm7, %v2105_v25, %v2107_v29 }
 0x27d   :  { %3784 = vmatmul.mubr.msk.f32.gmra.mrb[28].mxu1 %vm1387_vm9, %v1923_v40  ;;  %v2477_v40 = vld [vmem:[%s6782_s7] sm:$0xff] }
 0x27e   :  { %2032 = vmatprep.mubr.f32.mxu1 %v5102_v8  ;;  %4715 = vmatpush1.bf16.msra.mxu1 %v4714_v43 }
 0x27f   :  { %2139 = vmatprep.subr.mxu1 %v3803_v51  ;;  %v2274_v51 = vrot.slane %v5717_v28, 4 }
 0x281   :  { %3785 = vmatmul.mubr.msk.f32.gmra.mrb[30].mxu1 %vm1387_vm9, %v1925_v59  ;;  %v2275_v28 = vsel %vm130_vm0, %v2272_v4, %v2274_v51  ;;  %v2483_v59 = vld [vmem:[%s6782_s7 + $0x30] sm:$0xff]  ;;  %v2485_v4 = vld [vmem:[%s6782_s7 + $0x40] sm:$0xff] }
 0x282   :  { %2038 = vmatprep.mubr.f32.mxu1 %v5102_v8  ;;  %2140 = vmatpush1.msra.mxu1 %v3802_v57 }
 0x283   :  { %4717 = vmatprep.subr.bf16.mxu1 %v4716_v58  ;;  %v4735_v58 = vpack.c.bf16 %v2482_v54, %v2481_v53  ;;  %v3866_v53 = vld [vmem:[%s6784_s9 + $0x70] sm:$0xff]  ;;  %v3867_v54 = vld [vmem:[%s6784_s9 + $0x78] sm:$0xff] }
 0x285   :  { %3786 = vmatmul.mubr.msk.f32.gmra.mrb[32].mxu1 %vm1387_vm9, %v5828_v24  ;;  %v1933_v24 = vsel %vm368_vm6, %v1930_v26, %v1932_v47  ;;  %v2488_v47 = vld [vmem:[%s6782_s7 + $0x58] sm:$0xff] }
 0x286   :  { %2044 = vmatprep.mubr.f32.mxu1 %v5102_v8 }
 0x289   :  { %3787 = vmatmul.mubr.msk.f32.gmra.mrb[34].mxu1 %vm1387_vm9, %v1929_v13  ;;  %v4741_v13 = vpack.c.bf16 %v2486_v0, %v2485_v4 }
 0x28a   :  { %2050 = vmatprep.mubr.f32.mxu1 %v5102_v8 }
 0x28d   :  { %3788 = vmatmul.mubr.msk.f32.gmra.mrb[36].mxu1 %vm1387_vm9, %v1931_v27  ;;  %v2487_v27 = vld [vmem:[%s6782_s7 + $0x50] sm:$0xff] }
 0x28e   :  { %2056 = vmatprep.mubr.f32.mxu1 %v5102_v8 }
 0x291   :  { %3789 = vmatmul.mubr.msk.f32.gmra.mrb[38].mxu1 %vm1387_vm9, %v1933_v24  ;;  %v4744_v24 = vpack.c.bf16 %v2488_v47, %v2487_v27 }
 0x292   :  { %2191 = vmatprep.mubr.f32.mxu1 %v5102_v8 }
 0x295   :  { %3804 = vmatmul.mubr.msk.f32.vlgmr.msra.gmra.mrb[24].mxu1 %vm1387_vm9, %v5774_v20  ;;  %v2099_v20 = vrot.slane %v5746_v60, 3 }
 0x296   :  { %4719 = vmatpush1.bf16.msra.mxu1 %v4718_v49  ;;  %2197 = vmatprep.mubr.f32.mxu1 %v5102_v8  ;;  %v2493_v49 = vld [vmem:[%s6782_s7 + $0x80] sm:$0xff] }
 0x297   :  { %4721 = vmatprep.subr.bf16.mxu1 %v4720_v41  ;;  %v2100_v3 = vsel %vm523_vm7, %v2097_v42, %v2099_v20  ;;  %v2102_v61 = vsel %vm523_vm7, %v2099_v20, %v2101_v17  ;;  %v2106_v17 = vsel %vm523_vm7, %v2103_v19, %v2105_v25  ;;  %v2478_v19 = vld [vmem:[%s6782_s7 + $0x8] sm:$0xff]  ;;  %v2496_v42 = vld [vmem:[%s6782_s7 + $0x98] sm:$0xff]  ;;  %v2501_v20 = vld [vmem:[%s6782_s7 + $0xc0] sm:$0xff] }
 0x298   :  { %v4729_v43 = vpack.c.bf16 %v2478_v19, %v2477_v40  ;;  %v2494_v41 = vld [vmem:[%s6782_s7 + $0x88] sm:$0xff]  ;;  %v4756_v33 = vpack.c.bf16 %v2496_v42, %v2495_v23  ;;  %v2503_v25 = vld [vmem:[%s6782_s7 + $0xd0] sm:$0xff]  ;;  %v2433_v40 = vld [vmem:[%s6781_s6] sm:$0x3]  ;;  %v2441_v19 = vsub.s32 1, %v5617_v55 }
 0x299   :  { %3805 = vmatmul.mubr.msk.f32.gmra.mrb[26].mxu1 %vm1387_vm9, %v2098_v10  ;;  %v4753_v50 = vpack.c.bf16 %v2494_v41, %v2493_v49  ;;  %v4762_v10 = vpack.c.bf16 %v2500_v37, %v2499_v7 }
 0x29a   :  { %2203 = vmatprep.mubr.f32.mxu1 %v5102_v8  ;;  %4723 = vmatpush1.bf16.msra.mxu1 %v4722_v34  ;;  %v2498_v34 = vld [vmem:[%s6782_s7 + $0xa8] sm:$0xff]  ;;  %v6314_v44 = vrot.slane %v2433_v40, %v2441_v19 }
 0x29b   :  { %4725 = vmatprep.subr.bf16.mxu1 %v4724_v36  ;;  %v4759_v36 = vpack.c.bf16 %v2498_v34, %v2497_v45  ;;  %v3869_v19 = vld [vmem:[%s6784_s9 + $0x88] sm:$0xff] }
 0x29d   :  { %3806 = vmatmul.mubr.msk.f32.gmra.mrb[28].mxu1 %vm1387_vm9, %v2100_v3  ;;  %v2502_v3 = vld [vmem:[%s6782_s7 + $0xc8] sm:$0xff] }
 0x29e   :  { %2209 = vmatprep.mubr.f32.mxu1 %v5102_v8  ;;  %4727 = vmatpush1.bf16.msra.mxu1 %v4726_v11  ;;  %v2655_v11 = vld [vmem:[%s6783_s8 + $0xc0] sm:$0xff] }
 0x29f   :  { %2316 = vmatprep.subr.mxu1 %v3825_v14  ;;  %v4765_v14 = vpack.c.bf16 %v2502_v3, %v2501_v20 }
 0x2a1   :  { %3807 = vmatmul.mubr.msk.f32.gmra.mrb[30].mxu1 %vm1387_vm9, %v2102_v61 }
 0x2a2   :  { %2215 = vmatprep.mubr.f32.mxu1 %v5102_v8  ;;  %2317 = vmatpush1.msra.mxu1 %v3824_v5  ;;  %v2656_v5 = vld [vmem:[%s6783_s8 + $0xc8] sm:$0xff] }
 0x2a3   :  { %4728 = vmatprep.subr.bf16.mxu1 %v5104_v62  ;;  %v4807_v61 = vpack.c.bf16 %v2656_v5, %v2655_v11 }
 0x2a5   :  { %3808 = vmatmul.mubr.msk.f32.gmra.mrb[32].mxu1 %vm1387_vm9, %v5837_v31  ;;  %v2110_v31 = vsel %vm523_vm7, %v2107_v29, %v2109_v39  ;;  %4808 = vmatpush1.bf16.msra.mxu0 %v4807_v61  ;;  %v2504_v29 = vld [vmem:[%s6782_s7 + $0xd8] sm:$0xff] }
 0x2a6   :  { %2221 = vmatprep.mubr.f32.mxu1 %v5102_v8  ;;  %4809 = vmatprep.subr.bf16.mxu0 %v5104_v62  ;;  %v2658_v39 = vld [vmem:[%s6783_s8 + $0xd8] sm:$0xff] }
 0x2a9   :  { %3809 = vmatmul.mubr.msk.f32.gmra.mrb[34].mxu1 %vm1387_vm9, %v2106_v17  ;;  %v2657_v17 = vld [vmem:[%s6783_s8 + $0xd0] sm:$0xff] }
 0x2aa   :  { %2227 = vmatprep.mubr.f32.mxu1 %v5102_v8 }
 0x2ad   :  { %3810 = vmatmul.mubr.msk.f32.gmra.mrb[36].mxu1 %vm1387_vm9, %v2108_v35  ;;  %v4768_v35 = vpack.c.bf16 %v2504_v29, %v2503_v25  ;;  %v2905_v29 = vld [vmem:[%s6784_s9] sm:$0xff] }
 0x2ae   :  { %2233 = vmatprep.mubr.f32.mxu1 %v5102_v8 }
 0x2b1   :  { %3811 = vmatmul.mubr.msk.f32.gmra.mrb[38].mxu1 %vm1387_vm9, %v2110_v31  ;;  %v4810_v31 = vpack.c.bf16 %v2658_v39, %v2657_v17  ;;  %v2906_v17 = vld [vmem:[%s6784_s9 + $0x8] sm:$0xff]  ;;  %v2907_v39 = vld [vmem:[%s6784_s9 + $0x10] sm:$0xff] }
 0x2b2   :  { %2368 = vmatprep.mubr.f32.mxu1 %v5102_v8 }
 0x2b3   :  { %4811 = vmatpush1.bf16.msra.mxu0 %v4810_v31  ;;  %v2908_v31 = vld [vmem:[%s6784_s9 + $0x18] sm:$0xff] }
 0x2b4   :  { %4833 = vmatprep.subr.bf16.mxu0 %v5104_v62 }
 0x2b5   :  { %3826 = vmatmul.mubr.msk.f32.vlgmr.msra.gmra.mrb[24].mxu1 %vm1387_vm9, %v5800_v9  ;;  %v2276_v9 = vrot.slane %v5746_v60, 4  ;;  %v4738_v60 = vpack.c.bf16 %v2484_v16, %v2483_v59 }
 0x2b6   :  { %2374 = vmatprep.mubr.f32.mxu1 %v5102_v8  ;;  %4730 = vmatpush1.bf16.msra.mxu1 %v4729_v43  ;;  %v6312_v43 = vrot.slane %v2433_v40, %v5624_v63  ;;  %v3868_v40 = vld [vmem:[%s6784_s9 + $0x80] sm:$0xff] }
 0x2b7   :  { %4731 = vmatprep.subr.bf16.mxu1 %v5104_v62  ;;  %v2277_v57 = vsel %vm130_vm0, %v2274_v51, %v2276_v9  ;;  %v2279_v26 = vsel %vm130_vm0, %v2276_v9, %v2278_v21  ;;  %v2284_v21 = vrot.slane %v5821_v22, 4 }
 0x2b9   :  { %3827 = vmatmul.mubr.msk.f32.gmra.mrb[26].mxu1 %vm1387_vm9, %v2275_v28  ;;  %v2285_v22 = vsel %vm130_vm0, %v2282_v6, %v2284_v21 }
 0x2ba   :  { %2380 = vmatprep.mubr.f32.mxu1 %v5102_v8  ;;  %4733 = vmatpush1.bf16.msra.mxu1 %v4732_v52 }
 0x2bb   :  { %4734 = vmatprep.subr.bf16.mxu1 %v5104_v62 }
 0x2bd   :  { %3828 = vmatmul.mubr.msk.f32.gmra.mrb[28].mxu1 %vm1387_vm9, %v2277_v57  ;;  %v4834_v57 = vpack.c.bf16 %v3867_v54, %v3866_v53  ;;  %v3870_v53 = vld [vmem:[%s6784_s9 + $0x90] sm:$0xff]  ;;  %v3871_v54 = vld [vmem:[%s6784_s9 + $0x98] sm:$0xff] }
 0x2be   :  { %2386 = vmatprep.mubr.f32.mxu1 %v5102_v8  ;;  %4736 = vmatpush1.bf16.msra.mxu1 %v4735_v58 }
 0x2bf   :  { %4737 = vmatprep.subr.bf16.mxu1 %v5104_v62 }
 0x2c1   :  { %3829 = vmatmul.mubr.msk.f32.gmra.mrb[30].mxu1 %vm1387_vm9, %v2279_v26 }
 0x2c2   :  { %2392 = vmatprep.mubr.f32.mxu1 %v5102_v8  ;;  %4739 = vmatpush1.bf16.msra.mxu1 %v4738_v60 }
 0x2c3   :  { %4740 = vmatprep.subr.bf16.mxu1 %v5104_v62 }
 0x2c5   :  { %3830 = vmatmul.mubr.msk.f32.gmra.mrb[32].mxu1 %vm1387_vm9, %v5844_v32  ;;  %v2286_v32 = vrot.slane %v5849_v38, 4  ;;  %v4750_v38 = vpack.c.bf16 %v2492_v12, %v2491_v2 }
 0x2c6   :  { %2398 = vmatprep.mubr.f32.mxu1 %v5102_v8  ;;  %4742 = vmatpush1.bf16.msra.mxu1 %v4741_v13 }
 0x2c7   :  { %4743 = vmatprep.subr.bf16.mxu1 %v5104_v62  ;;  %v2287_v48 = vsel %vm130_vm0, %v2284_v21, %v2286_v32  ;;  %vm2505_vm0 = vcmask 785408  }
 0x2c9   :  { %3831 = vmatmul.mubr.msk.f32.gmra.mrb[34].mxu1 %vm1387_vm9, %v2283_v15 }
 0x2ca   :  { %2404 = vmatprep.mubr.f32.mxu1 %v5102_v8  ;;  %4745 = vmatpush1.bf16.msra.mxu1 %v4744_v24 }
 0x2cb   :  { %4746 = vmatprep.subr.bf16.mxu1 %v5104_v62 }
 0x2cd   :  { %3832 = vmatmul.mubr.msk.f32.gmra.mrb[36].mxu1 %vm1387_vm9, %v2285_v22 }
 0x2ce   :  { %2410 = vmatprep.mubr.f32.mxu1 %v5102_v8  ;;  %4748 = vmatpush1.bf16.msra.mxu1 %v4747_v30 }
 0x2cf   :  { %4749 = vmatprep.subr.bf16.mxu1 %v5104_v62 }
 0x2d1   :  { %3833 = vmatmul.mubr.msk.f32.gmra.mrb[38].mxu1 %vm1387_vm9, %v2287_v48 }
 0x2d2   :  { %4751 = vmatpush1.bf16.msra.mxu1 %v4750_v38 }
 0x2d3   :  { %4752 = vmatprep.subr.bf16.mxu1 %v5104_v62 }
 0x2d6   :  { %4754 = vmatpush1.bf16.msra.mxu1 %v4753_v50 }
 0x2d7   :  { %4755 = vmatprep.subr.bf16.mxu1 %v5104_v62 }
 0x2da   :  { %4757 = vmatpush1.bf16.msra.mxu1 %v4756_v33 }
 0x2db   :  { %4758 = vmatprep.subr.bf16.mxu1 %v5104_v62 }
 0x2de   :  { %4760 = vmatpush1.bf16.msra.mxu1 %v4759_v36 }
 0x2df   :  { %4761 = vmatprep.subr.bf16.mxu1 %v5104_v62 }
 0x2e2   :  { %4763 = vmatpush1.bf16.msra.mxu1 %v4762_v10 }
 0x2e3   :  { %4764 = vmatprep.subr.bf16.mxu1 %v5104_v62 }
 0x2e6   :  { %4766 = vmatpush1.bf16.msra.mxu1 %v4765_v14 }
 0x2e7   :  { %4767 = vmatprep.subr.bf16.mxu1 %v5104_v62 }
 0x2ea   :  { %4769 = vmatpush1.bf16.msra.mxu1 %v4768_v35  ;;  %v4813_v35 = vpack.c.bf16 %v2906_v17, %v2905_v29 }
 0x2eb   :  { %4812 = vmatprep.subr.bf16.mxu1 %v5104_v62 }
 0x388   :  { %v2370_v46 = vpop.f32.mrb[24].mxu1 }
 0x389   :  { %v2445_v51 = vadd.f32 %v6312_v43, %v2370_v46  ;;  %v2372_v52 = vpop.f32.mrb[25].mxu1  ;;  %v2909_v46 = vld [vmem:[%s6784_s9 + $0x20] sm:$0xff] }
 0x38a   :  { %v2446_v28 = vadd.f32 %v6314_v44, %v2372_v52 }
 0x38b   :  { %v2461_v58 = vmax.f32 %v2445_v51, 0.0  ;;  %v2910_v51 = vld [vmem:[%s6784_s9 + $0x28] sm:$0xff] }
 0x38c   :  { %v2462_v55 = vmax.f32 %v2446_v28, 0.0  ;;  %v2376_v9 = vpop.f32.mrb[26].mxu1  ;;  %v4819_v52 = vpack.c.bf16 %v2910_v51, %v2909_v46  ;;  %v2911_v28 = vld [vmem:[%s6784_s9 + $0x30] sm:$0xff] }
 0x38d   :  { %v2447_v59 = vadd.f32 %v6312_v43, %v2376_v9  ;;  %v2378_v16 = vpop.f32.mrb[27].mxu1  ;;  %v2912_v9 = vld [vmem:[%s6784_s9 + $0x38] sm:$0xff] }
 0x38e   :  { %v2448_v60 = vadd.f32 %v6314_v44, %v2378_v16  ;;  %3834 = vmatprep.mubr.msk.f32.mxu1 %vm2505_vm0, %v2462_v55  ;;  %3842 = vmatprep.mubr.msk.f32.mxu0 %vm2505_vm0, %v2462_v55  ;;  %v4840_v55 = vpack.c.bf16 %v3871_v54, %v3870_v53  ;;  %v6455_v54 = vld [vmem:[%s6784_s9 + $0xe0] sm:$0xff] }
 0x38f   :  { %2595 = vmatmul.mubr.f32.vlgmr.msra.gmra.mrb[40].mxu1 %v2461_v58  ;;  %2724 = vmatmul.mubr.f32.vlgmr.msra.gmra.mrb[8].mxu0 %v2461_v58  ;;  %v2463_v26 = vmax.f32 %v2447_v59, 0.0  ;;  %v3873_v58 = vld [vmem:[%s6784_s9 + $0xa8] sm:$0xff]  ;;  %v4822_v59 = vpack.c.bf16 %v2912_v9, %v2911_v28 }
 0x390   :  { %v2464_v4 = vmax.f32 %v2448_v60, 0.0  ;;  %v2382_v0 = vpop.f32.mrb[28].mxu1  ;;  %4835 = vmatpush3.bf16.msra.mxu0 %v4834_v57  ;;  %4814 = vmatpush3.bf16.msra.mxu1 %v4813_v35  ;;  %v3872_v57 = vld [vmem:[%s6784_s9 + $0xa0] sm:$0xff]  ;;  %v6460_v28 = vld [vmem:[%s6784_s9 + $0xe8] sm:$0xff] }
 0x391   :  { %v2449_v13 = vadd.f32 %v6312_v43, %v2382_v0  ;;  %v2384_v27 = vpop.f32.mrb[29].mxu1  ;;  %4836 = vmatprep.subr.bf16.mxu0 %v5104_v62  ;;  %4815 = vmatprep.subr.bf16.mxu1 %v5104_v62  ;;  %v4843_v16 = vpack.c.bf16 %v3873_v58, %v3872_v57  ;;  %v2913_v60 = vld [vmem:[%s6784_s9 + $0x40] sm:$0xff] }
 0x392   :  { %v2450_v47 = vadd.f32 %v6314_v44, %v2384_v27  ;;  %3835 = vmatprep.mubr.msk.f32.mxu1 %vm2505_vm0, %v2464_v4  ;;  %3843 = vmatprep.mubr.msk.f32.mxu0 %vm2505_vm0, %v2464_v4  ;;  %v2914_v4 = vld [vmem:[%s6784_s9 + $0x48] sm:$0xff] }
 0x393   :  { %2600 = vmatmul.mubr.f32.gmra.mrb[42].mxu1 %v2463_v26  ;;  %2729 = vmatmul.mubr.f32.gmra.mrb[10].mxu0 %v2463_v26  ;;  %v2465_v24 = vmax.f32 %v2449_v13, 0.0  ;;  %v4825_v0 = vpack.c.bf16 %v2914_v4, %v2913_v60  ;;  %v3874_v26 = vld [vmem:[%s6784_s9 + $0xb0] sm:$0xff]  ;;  %v3875_v13 = vld [vmem:[%s6784_s9 + $0xb8] sm:$0xff] }
 0x394   :  { %v2466_v6 = vmax.f32 %v2450_v47, 0.0  ;;  %v2388_v21 = vpop.f32.mrb[30].mxu1  ;;  %v4846_v27 = vpack.c.bf16 %v3875_v13, %v3874_v26  ;;  %v2915_v47 = vld [vmem:[%s6784_s9 + $0x50] sm:$0xff] }
 0x395   :  { %v2451_v1 = vadd.f32 %v6312_v43, %v2388_v21  ;;  %v2390_v18 = vpop.f32.mrb[31].mxu1 }
 0x396   :  { %v2452_v15 = vadd.f32 %v6314_v44, %v2390_v18  ;;  %3836 = vmatprep.mubr.msk.f32.mxu1 %vm2505_vm0, %v2466_v6  ;;  %3844 = vmatprep.mubr.msk.f32.mxu0 %vm2505_vm0, %v2466_v6  ;;  %v2916_v6 = vld [vmem:[%s6784_s9 + $0x58] sm:$0xff] }
 0x397   :  { %2605 = vmatmul.mubr.f32.gmra.mrb[44].mxu1 %v2465_v24  ;;  %2734 = vmatmul.mubr.f32.gmra.mrb[12].mxu0 %v2465_v24  ;;  %v2467_v30 = vmax.f32 %v2451_v1, 0.0  ;;  %v4828_v21 = vpack.c.bf16 %v2916_v6, %v2915_v47  ;;  %v3876_v24 = vld [vmem:[%s6784_s9 + $0xc0] sm:$0xff]  ;;  %v3877_v1 = vld [vmem:[%s6784_s9 + $0xc8] sm:$0xff] }
 0x398   :  { %v2468_v22 = vmax.f32 %v2452_v15, 0.0  ;;  %v2394_v32 = vpop.f32.mrb[32].mxu1  ;;  %v4849_v18 = vpack.c.bf16 %v3877_v1, %v3876_v24  ;;  %v2917_v15 = vld [vmem:[%s6784_s9 + $0x60] sm:$0xff] }
 0x399   :  { %v2453_v2 = vadd.f32 %v6312_v43, %v2394_v32  ;;  %v2396_v12 = vpop.f32.mrb[33].mxu1 }
 0x39a   :  { %v2454_v48 = vadd.f32 %v6314_v44, %v2396_v12  ;;  %3837 = vmatprep.mubr.msk.f32.mxu1 %vm2505_vm0, %v2468_v22  ;;  %3845 = vmatprep.mubr.msk.f32.mxu0 %vm2505_vm0, %v2468_v22  ;;  %v2918_v22 = vld [vmem:[%s6784_s9 + $0x68] sm:$0xff] }
 0x39b   :  { %2609 = vmatmul.mubr.f32.gmra.mrb[46].mxu1 %v2467_v30  ;;  %2738 = vmatmul.mubr.f32.gmra.mrb[14].mxu0 %v2467_v30  ;;  %v2469_v41 = vmax.f32 %v2453_v2, 0.0  ;;  %v4831_v32 = vpack.c.bf16 %v2918_v22, %v2917_v15  ;;  %v3878_v30 = vld [vmem:[%s6784_s9 + $0xd0] sm:$0xff]  ;;  %v3879_v2 = vld [vmem:[%s6784_s9 + $0xd8] sm:$0xff] }
 0x39c   :  { %v2470_v38 = vmax.f32 %v2454_v48, 0.0  ;;  %v2400_v49 = vpop.f32.mrb[34].mxu1  ;;  %v4852_v12 = vpack.c.bf16 %v3879_v2, %v3878_v30 }
 0x39d   :  { %v2455_v50 = vadd.f32 %v6312_v43, %v2400_v49  ;;  %v2402_v23 = vpop.f32.mrb[35].mxu1 }
 0x39e   :  { %v2456_v42 = vadd.f32 %v6314_v44, %v2402_v23  ;;  %3838 = vmatprep.mubr.msk.f32.mxu1 %vm2505_vm0, %v2470_v38  ;;  %3846 = vmatprep.mubr.msk.f32.mxu0 %vm2505_vm0, %v2470_v38 }
 0x39f   :  { %2613 = vmatmul.mubr.f32.gmra.mrb[48].mxu1 %v2469_v41  ;;  %2742 = vmatmul.mubr.f32.gmra.mrb[16].mxu0 %v2469_v41  ;;  %v2471_v34 = vmax.f32 %v2455_v50, 0.0 }
 0x3a0   :  { %v2472_v33 = vmax.f32 %v2456_v42, 0.0  ;;  %v2406_v45 = vpop.f32.mrb[36].mxu1 }
 0x3a1   :  { %v2457_v36 = vadd.f32 %v6312_v43, %v2406_v45  ;;  %v2408_v7 = vpop.f32.mrb[37].mxu1 }
 0x3a2   :  { %v2458_v37 = vadd.f32 %v6314_v44, %v2408_v7  ;;  %3839 = vmatprep.mubr.msk.f32.mxu1 %vm2505_vm0, %v2472_v33  ;;  %3847 = vmatprep.mubr.msk.f32.mxu0 %vm2505_vm0, %v2472_v33 }
 0x3a3   :  { %2618 = vmatmul.mubr.f32.gmra.mrb[50].mxu1 %v2471_v34  ;;  %2747 = vmatmul.mubr.f32.gmra.mrb[18].mxu0 %v2471_v34  ;;  %v2473_v3 = vmax.f32 %v2457_v36, 0.0 }
 0x3a4   :  { %v2474_v10 = vmax.f32 %v2458_v37, 0.0  ;;  %v2412_v20 = vpop.f32.mrb[38].mxu1 }
 0x3a5   :  { %v2459_v11 = vadd.f32 %v6312_v43, %v2412_v20  ;;  %v2414_v14 = vpop.f32.mrb[39].mxu1  ;;  %v4816_v43 = vpack.c.bf16 %v2908_v31, %v2907_v39 }
 0x3a6   :  { %v2460_v5 = vadd.f32 %v6314_v44, %v2414_v14  ;;  %3840 = vmatprep.mubr.msk.f32.mxu1 %vm2505_vm0, %v2474_v10  ;;  %3848 = vmatprep.mubr.msk.f32.mxu0 %vm2505_vm0, %v2474_v10  ;;  %v4837_v44 = vpack.c.bf16 %v3869_v19, %v3868_v40 }
 0x3a7   :  { %2623 = vmatmul.mubr.f32.gmra.mrb[52].mxu1 %v2473_v3  ;;  %2752 = vmatmul.mubr.f32.gmra.mrb[20].mxu0 %v2473_v3  ;;  %v2475_v25 = vmax.f32 %v2459_v11, 0.0 }
 0x3a8   :  { %v2476_v61 = vmax.f32 %v2460_v5, 0.0  ;;  %4817 = vmatpush3.bf16.msra.mxu1 %v4816_v43  ;;  %4838 = vmatpush3.bf16.msra.mxu0 %v4837_v44 }
 0x3a9   :  { %4818 = vmatprep.subr.bf16.mxu1 %v5104_v62  ;;  %4839 = vmatprep.subr.bf16.mxu0 %v5104_v62 }
 0x3aa   :  { %3841 = vmatprep.mubr.msk.f32.mxu1 %vm2505_vm0, %v2476_v61  ;;  %3849 = vmatprep.mubr.msk.f32.mxu0 %vm2505_vm0, %v2476_v61 }
 0x3ab   :  { %2627 = vmatmul.mubr.f32.gmra.mrb[54].mxu1 %v2475_v25  ;;  %2756 = vmatmul.mubr.f32.gmra.mrb[22].mxu0 %v2475_v25 }
 0x3ac   :  { %4820 = vmatpush3.bf16.msra.mxu1 %v4819_v52  ;;  %4841 = vmatpush3.bf16.msra.mxu0 %v4840_v55 }
 0x3ad   :  { %4821 = vmatprep.subr.bf16.mxu1 %v5104_v62  ;;  %4842 = vmatprep.subr.bf16.mxu0 %v5104_v62 }
 0x3ae   :  { %4373 = vmatprep.mubr.msk.f32.mxu1 %vm5105_vm3, %v5102_v8  ;;  %4404 = vmatprep.mubr.msk.f32.mxu0 %vm5105_vm3, %v5102_v8 }
 0x3b0   :  { %4823 = vmatpush3.bf16.msra.mxu1 %v4822_v59  ;;  %4844 = vmatpush3.bf16.msra.mxu0 %v4843_v16 }
 0x3b1   :  { %4824 = vmatprep.subr.bf16.mxu1 %v5104_v62  ;;  %4845 = vmatprep.subr.bf16.mxu0 %v5104_v62 }
 0x3b4   :  { %4826 = vmatpush3.bf16.msra.mxu1 %v4825_v0  ;;  %4847 = vmatpush3.bf16.msra.mxu0 %v4846_v27  ;;  %v4855_v27 = vpack.c.bf16 %v6460_v28, %v6455_v54 }
 0x3b5   :  { %4827 = vmatprep.subr.bf16.mxu1 %v5104_v62  ;;  %4848 = vmatprep.subr.bf16.mxu0 %v5104_v62 }
 0x3b8   :  { %4829 = vmatpush3.bf16.msra.mxu1 %v4828_v21  ;;  %4850 = vmatpush3.bf16.msra.mxu0 %v4849_v18 }
 0x3b9   :  { %4830 = vmatprep.subr.bf16.mxu1 %v5104_v62  ;;  %4851 = vmatprep.subr.bf16.mxu0 %v5104_v62 }
 0x3bc   :  { %4832 = vmatpush3.bf16.msra.mxu1 %v4831_v32  ;;  %4853 = vmatpush3.bf16.msra.mxu0 %v4852_v12 }
 0x3bd   :  { %4854 = vmatprep.subr.bf16.mxu0 %v5104_v62 }
 0x462   :  { %v2596_v48 = vpop.f32.mrb[40].mxu1  ;;  %v2725_v38 = vpop.f32.mrb[8].mxu0 }
 0x463   :  { %v2760_v49 = vmax.f32 %v2596_v48, %v2725_v38  ;;  %v2598_v41 = vpop.f32.mrb[41].mxu1  ;;  %v2727_v50 = vpop.f32.mrb[9].mxu0 }
 0x465   :  { %v2768_v36 = vcombine.high %v2760_v49, %v2760_v49  ;;  %v2775_v7 = vrot.slane %v2760_v49, %v5620_v56 }
 0x466   :  { %v2601_v23 = vpop.f32.mrb[42].mxu1  ;;  %v2730_v42 = vpop.f32.mrb[10].mxu0 }
 0x467   :  { %v2761_v33 = vmax.f32 %v2601_v23, %v2730_v42  ;;  %v2603_v45 = vpop.f32.mrb[43].mxu1  ;;  %v2732_v34 = vpop.f32.mrb[11].mxu0  ;;  %v2782_v11 = vrot.slane %v2768_v36, %v5620_v56  ;;  %v2783_v14 = vcombine.high %v2775_v7, %v2775_v7  ;;  %v3850_v5 = vrot.slane %v2775_v7, 9 }
 0x469   :  { %v2784_v35 = vcombine.high %v2782_v11, %v2782_v11  ;;  %v3851_v39 = vrot.slane %v2783_v14, 9  ;;  %v3852_v31 = vrot.slane %v2782_v11, 9  ;;  %v2785_v40 = vcombine.high %v2761_v33, %v2761_v33 }
 0x46a   :  { %v2606_v37 = vpop.f32.mrb[44].mxu1  ;;  %v2735_v10 = vpop.f32.mrb[12].mxu0  ;;  %v2890_v19 = vmax.f32 %v2775_v7, %v3850_v5  ;;  %v2792_v43 = vrot.slane %v2761_v33, %v5620_v56 }
 0x46b   :  { %v2607_v20 = vpop.f32.mrb[45].mxu1  ;;  %v2736_v3 = vpop.f32.mrb[13].mxu0  ;;  %v3853_v55 = vrot.slane %v2784_v35, 9  ;;  %v2891_v9 = vmax.f32 %v2783_v14, %v3851_v39  ;;  %v2892_v57 = vmax.f32 %v2782_v11, %v3852_v31  ;;  %v2799_v58 = vrot.slane %v2785_v40, %v5620_v56 }
 0x46c   :  { %v2924_v60 = vrot.slane %v2890_v19, %v5624_v63  ;;  %v2800_v4 = vcombine.high %v2792_v43, %v2792_v43  ;;  %v3854_v0 = vrot.slane %v2792_v43, 9 }
 0x46d   :  { %v2893_v15 = vmax.f32 %v2784_v35, %v3853_v55  ;;  %v3029_v22 = vrot.slane %v2891_v9, %v5624_v63  ;;  %v3856_v32 = vrot.slane %v2799_v58, 9  ;;  %v3128_v30 = vrot.slane %v2892_v57, %v5624_v63 }
 0x46e   :  { %v2610_v61 = vpop.f32.mrb[46].mxu1  ;;  %v2739_v25 = vpop.f32.mrb[14].mxu0  ;;  %v3855_v49 = vrot.slane %v2800_v4, 9  ;;  %v2894_v41 = vmax.f32 %v2792_v43, %v3854_v0  ;;  %v3884_v43 = vld [vmem:[%s6784_s9 + $0xf8] sm:$0xff]  ;;  %v3886_v0 = vld [vmem:[%s6784_s9 + $0x108] sm:$0xff] }
 0x46f   :  { %v2611_v29 = vpop.f32.mrb[47].mxu1  ;;  %v2740_v17 = vpop.f32.mrb[15].mxu0  ;;  %v2896_v20 = vmax.f32 %v2799_v58, %v3856_v32  ;;  %v3891_v32 = vld [vmem:[%s6784_s9 + $0x130] sm:$0xff] }
 0x470   :  { %v2895_v17 = vmax.f32 %v2800_v4, %v3855_v49  ;;  %v3326_v28 = vrot.slane %v2894_v41, %v5624_v63  ;;  %v3885_v4 = vld [vmem:[%s6784_s9 + $0x100] sm:$0xff]  ;;  %v3896_v49 = vld [vmem:[%s6784_s9 + $0x150] sm:$0xff]  ;;  %v3897_v41 = vld [vmem:[%s6784_s9 + $0x158] sm:$0xff] }
 0x471   :  { %v3524_v58 = vrot.slane %v2896_v20, %v5624_v63  ;;  %v3904_v20 = vld [vmem:[%s6784_s9 + $0x190] sm:$0xff] }
 0x472   :  { %v2614_v44 = vpop.f32.mrb[48].mxu1  ;;  %v2743_v46 = vpop.f32.mrb[16].mxu0 }
 0x473   :  { %v2762_v51 = vmax.f32 %v2614_v44, %v2743_v46  ;;  %v2616_v52 = vpop.f32.mrb[49].mxu1  ;;  %v2745_v53 = vpop.f32.mrb[17].mxu0 }
 0x474   :  { %v3227_v53 = vrot.slane %v2893_v15, %v5624_v63  ;;  %v3890_v15 = vld [vmem:[%s6784_s9 + $0x128] sm:$0xff] }
 0x475   :  { %v2801_v59 = vcombine.high %v2762_v51, %v2762_v51  ;;  %v2808_v16 = vrot.slane %v2762_v51, %v5620_v56 }
 0x476   :  { %v2619_v26 = vpop.f32.mrb[50].mxu1  ;;  %v2748_v13 = vpop.f32.mrb[18].mxu0 }
 0x477   :  { %v2815_v47 = vrot.slane %v2801_v59, %v5620_v56  ;;  %v2816_v6 = vcombine.high %v2808_v16, %v2808_v16  ;;  %v3857_v21 = vrot.slane %v2808_v16, 9  ;;  %v2763_v24 = vmax.f32 %v2619_v26, %v2748_v13  ;;  %v2621_v1 = vpop.f32.mrb[51].mxu1  ;;  %v2750_v18 = vpop.f32.mrb[19].mxu0 }
 0x478   :  { %v3425_v13 = vrot.slane %v2895_v17, %v5624_v63  ;;  %v3888_v1 = vld [vmem:[%s6784_s9 + $0x118] sm:$0xff]  ;;  %v3889_v18 = vld [vmem:[%s6784_s9 + $0x120] sm:$0xff] }
 0x479   :  { %v2817_v2 = vcombine.high %v2815_v47, %v2815_v47  ;;  %v3858_v12 = vrot.slane %v2816_v6, 9  ;;  %v3859_v48 = vrot.slane %v2815_v47, 9  ;;  %v2897_v38 = vmax.f32 %v2808_v16, %v3857_v21 }
 0x47a   :  { %v2818_v50 = vcombine.high %v2763_v24, %v2763_v24  ;;  %v2825_v23 = vrot.slane %v2763_v24, %v5620_v56  ;;  %v2624_v42 = vpop.f32.mrb[52].mxu1  ;;  %v2753_v33 = vpop.f32.mrb[20].mxu0  ;;  %v4861_v21 = vpack.c.bf16 %v3886_v0, %v3885_v4  ;;  %v3887_v24 = vld [vmem:[%s6784_s9 + $0x110] sm:$0xff]  ;;  %v3927_v0 = vld [vmem:[%s6784_s9 + $0x238] sm:$0xff] }
 0x47b   :  { %v3860_v45 = vrot.slane %v2817_v2, 9  ;;  %v2898_v34 = vmax.f32 %v2816_v6, %v3858_v12  ;;  %v2899_v36 = vmax.f32 %v2815_v47, %v3859_v48  ;;  %v2928_v7 = vrot.slane %v2897_v38, %v5624_v63  ;;  %v2625_v37 = vpop.f32.mrb[53].mxu1  ;;  %v2754_v10 = vpop.f32.mrb[21].mxu0  ;;  %v3893_v12 = vld [vmem:[%s6784_s9 + $0x140] sm:$0xff]  ;;  %v3894_v48 = vld [vmem:[%s6784_s9 + $0x148] sm:$0xff]  ;;  %v3926_v4 = vld [vmem:[%s6784_s9 + $0x230] sm:$0xff] }
 0x47c   :  { %v2832_v3 = vrot.slane %v2818_v50, %v5620_v56  ;;  %v2833_v11 = vcombine.high %v2825_v23, %v2825_v23  ;;  %v3861_v14 = vrot.slane %v2825_v23, 9  ;;  %v3883_v56 = vld [vmem:[%s6784_s9 + $0xf0] sm:$0xff]  ;;  %v4873_v38 = vpack.c.bf16 %v3894_v48, %v3893_v12  ;;  %v3899_v42 = vld [vmem:[%s6784_s9 + $0x168] sm:$0xff]  ;;  %v3936_v12 = vld [vmem:[%s6784_s9 + $0x280] sm:$0xff] }
 0x47d   :  { %v2900_v5 = vmax.f32 %v2817_v2, %v3860_v45  ;;  %v3033_v61 = vrot.slane %v2898_v34, %v5624_v63  ;;  %v2929_v25 = vsel %vm1540_vm10, %v2928_v7, %v2924_v60  ;;  %v3132_v29 = vrot.slane %v2899_v36, %v5624_v63  ;;  %v3900_v45 = vld [vmem:[%s6784_s9 + $0x170] sm:$0xff]  ;;  %v3901_v34 = vld [vmem:[%s6784_s9 + $0x178] sm:$0xff]  ;;  %v3902_v7 = vld [vmem:[%s6784_s9 + $0x180] sm:$0xff] }
 0x47e   :  { %v3862_v35 = vrot.slane %v2833_v11, 9  ;;  %v3863_v39 = vrot.slane %v2832_v3, 9  ;;  %v2901_v31 = vmax.f32 %v2825_v23, %v3861_v14  ;;  %v2628_v40 = vpop.f32.mrb[54].mxu1  ;;  %v2757_v19 = vpop.f32.mrb[22].mxu0  ;;  %4374 = vmatmul.mubr.msk.f32.vlgmr.msra.gmra.mrb[56].mxu1 %vm864_vm8, %v2929_v25  ;;  %v4858_v59 = vpack.c.bf16 %v3884_v43, %v3883_v56  ;;  %v3898_v23 = vld [vmem:[%s6784_s9 + $0x160] sm:$0xff]  ;;  %v3903_v37 = vld [vmem:[%s6784_s9 + $0x188] sm:$0xff] }
 0x47f   :  { %v2629_v44 = vpop.f32.mrb[55].mxu1  ;;  %v2758_v46 = vpop.f32.mrb[23].mxu0  ;;  %v3034_v51 = vsel %vm1540_vm10, %v3033_v61, %v3029_v22  ;;  %v3133_v52 = vsel %vm1540_vm10, %v3132_v29, %v3128_v30  ;;  %v3231_v54 = vrot.slane %v2900_v5, %v5624_v63  ;;  %v4867_v22 = vpack.c.bf16 %v3890_v15, %v3889_v18  ;;  %v3892_v30 = vld [vmem:[%s6784_s9 + $0x138] sm:$0xff]  ;;  %v3906_v14 = vld [vmem:[%s6784_s9 + $0x1a0] sm:$0xff]  ;;  %v3907_v5 = vld [vmem:[%s6784_s9 + $0x1a8] sm:$0xff] }
 0x480   :  { %v2902_v55 = vmax.f32 %v2833_v11, %v3862_v35  ;;  %v2903_v9 = vmax.f32 %v2832_v3, %v3863_v39  ;;  %v3330_v57 = vrot.slane %v2901_v31, %v5624_v63  ;;  %4405 = vmatmul.mubr.msk.f32.vlgmr.msra.gmra.mrb[24].mxu0 %vm864_vm8, %v3034_v51  ;;  %v4870_v2 = vpack.c.bf16 %v3892_v30, %v3891_v32  ;;  %v3905_v3 = vld [vmem:[%s6784_s9 + $0x198] sm:$0xff]  ;;  %v3908_v25 = vld [vmem:[%s6784_s9 + $0x1b0] sm:$0xff]  ;;  %v3911_v35 = vld [vmem:[%s6784_s9 + $0x1c0] sm:$0xff] }
 0x481   :  { %4856 = vmatpush3.bf16.msra.mxu0 %v4855_v27  ;;  %4435 = vmatprep.mubr.msk.f32.mxu0 %vm5105_vm3, %v5102_v8  ;;  %v6494_v16 = vsel %vm1540_vm10, %v3231_v54, %v3227_v53  ;;  %v4876_v50 = vpack.c.bf16 %v3897_v41, %v3896_v49  ;;  %v4879_v33 = vpack.c.bf16 %v3899_v42, %v3898_v23  ;;  %v3909_v29 = vld [vmem:[%s6784_s9 + $0x1b8] sm:$0xff]  ;;  %v3912_v39 = vld [vmem:[%s6784_s9 + $0x1c8] sm:$0xff]  ;;  %v3913_v40 = vld [vmem:[%s6784_s9 + $0x1d0] sm:$0xff] }
 0x482   :  { %v3528_v60 = vrot.slane %v2903_v9, %v5624_v63  ;;  %4857 = vmatprep.subr.bf16.mxu0 %v5104_v62  ;;  %v6505_v26 = vsel %vm1540_vm10, %v3330_v57, %v3326_v28  ;;  %v3429_v27 = vrot.slane %v2902_v55, %v5624_v63  ;;  %v4864_v63 = vpack.c.bf16 %v3888_v1, %v3887_v24  ;;  %v3914_v19 = vld [vmem:[%s6784_s9 + $0x1d8] sm:$0xff]  ;;  %v3915_v43 = vld [vmem:[%s6784_s9 + $0x1e0] sm:$0xff]  ;;  %v3916_v44 = vld [vmem:[%s6784_s9 + $0x1e8] sm:$0xff] }
 0x483   :  { %v4882_v36 = vpack.c.bf16 %v3901_v34, %v3900_v45  ;;  %v4885_v10 = vpack.c.bf16 %v3903_v37, %v3902_v7  ;;  %v4888_v11 = vpack.c.bf16 %v3905_v3, %v3904_v20  ;;  %v4891_v61 = vpack.c.bf16 %v3907_v5, %v3906_v14  ;;  %v3917_v51 = vld [vmem:[%s6784_s9 + $0x1f0] sm:$0xff]  ;;  %v3919_v54 = vld [vmem:[%s6784_s9 + $0x200] sm:$0xff]  ;;  %v3920_v28 = vld [vmem:[%s6784_s9 + $0x208] sm:$0xff] }
 0x484   :  { %v6510_v47 = vsel %vm1540_vm10, %v3429_v27, %v3425_v13  ;;  %v6513_v6 = vsel %vm1540_vm10, %v3528_v60, %v3524_v58  ;;  %v4894_v17 = vpack.c.bf16 %v3909_v29, %v3908_v25  ;;  %v4897_v31 = vpack.c.bf16 %v3912_v39, %v3911_v35  ;;  %v3921_v9 = vld [vmem:[%s6784_s9 + $0x210] sm:$0xff]  ;;  %v3922_v57 = vld [vmem:[%s6784_s9 + $0x218] sm:$0xff]  ;;  %v3928_v27 = vld [vmem:[%s6784_s9 + $0x240] sm:$0xff] }
 0x485   :  { %4859 = vmatpush3.bf16.msra.mxu0 %v4858_v59  ;;  %v4900_v56 = vpack.c.bf16 %v3914_v19, %v3913_v40  ;;  %v4903_v46 = vpack.c.bf16 %v3916_v44, %v3915_v43  ;;  %v4909_v55 = vpack.c.bf16 %v3920_v28, %v3919_v54  ;;  %v4912_v58 = vpack.c.bf16 %v3922_v57, %v3921_v9  ;;  %v3923_v59 = vld [vmem:[%s6784_s9 + $0x220] sm:$0xff]  ;;  %v3930_v1 = vld [vmem:[%s6784_s9 + $0x250] sm:$0xff]  ;;  %v3933_v15 = vld [vmem:[%s6784_s9 + $0x268] sm:$0xff] }
 0x486   :  { %4860 = vmatprep.subr.bf16.mxu0 %v5104_v62  ;;  %v4918_v13 = vpack.c.bf16 %v3927_v0, %v3926_v4  ;;  %v3934_v32 = vld [vmem:[%s6784_s9 + $0x270] sm:$0xff]  ;;  %v3935_v30 = vld [vmem:[%s6784_s9 + $0x278] sm:$0xff]  ;;  %v3937_v48 = vld [vmem:[%s6784_s9 + $0x288] sm:$0xff] }
 0x487   :  { %v3938_v49 = vld [vmem:[%s6784_s9 + $0x290] sm:$0xff]  ;;  %v3939_v41 = vld [vmem:[%s6784_s9 + $0x298] sm:$0xff]  ;;  %v3941_v23 = vld [vmem:[%s6784_s9 + $0x2a0] sm:$0xff] }
 0x488   :  { %v3942_v42 = vld [vmem:[%s6784_s9 + $0x2a8] sm:$0xff]  ;;  %v3943_v45 = vld [vmem:[%s6784_s9 + $0x2b0] sm:$0xff]  ;;  %v3944_v34 = vld [vmem:[%s6784_s9 + $0x2b8] sm:$0xff] }
 0x489   :  { %4862 = vmatpush3.bf16.msra.mxu0 %v4861_v21  ;;  %v3929_v21 = vld [vmem:[%s6784_s9 + $0x248] sm:$0xff]  ;;  %v3945_v7 = vld [vmem:[%s6784_s9 + $0x2c0] sm:$0xff]  ;;  %v3951_v5 = vld [vmem:[%s6784_s9 + $0x2f0] sm:$0xff] }
 0x48a   :  { %4863 = vmatprep.subr.bf16.mxu0 %v5104_v62  ;;  %v4921_v24 = vpack.c.bf16 %v3929_v21, %v3928_v27  ;;  %v3946_v37 = vld [vmem:[%s6784_s9 + $0x2c8] sm:$0xff]  ;;  %v3949_v3 = vld [vmem:[%s6784_s9 + $0x2e0] sm:$0xff] }
 0x48b   :  { %v3953_v29 = vld [vmem:[%s6784_s9 + $0x300] sm:$0xff] }
 0x48c   :  { %v3865_v40 = vld [vmem:[%s6785_s10] ss:$0 sm:$0xff] }
 0x48d   :  { %4865 = vmatpush3.bf16.msra.mxu0 %v4864_v63  ;;  %v3931_v63 = vld [vmem:[%s6784_s9 + $0x258] sm:$0xff] }
 0x48e   :  { %4866 = vmatprep.subr.bf16.mxu0 %v5104_v62  ;;  %v4924_v18 = vpack.c.bf16 %v3931_v63, %v3930_v1 }
 0x491   :  { %4868 = vmatpush3.bf16.msra.mxu0 %v4867_v22 }
 0x492   :  { %4869 = vmatprep.subr.bf16.mxu0 %v5104_v62 }
 0x495   :  { %4871 = vmatpush3.bf16.msra.mxu0 %v4870_v2  ;;  %v4930_v2 = vpack.c.bf16 %v3935_v30, %v3934_v32 }
 0x496   :  { %4872 = vmatprep.subr.bf16.mxu0 %v5104_v62 }
 0x499   :  { %4874 = vmatpush3.bf16.msra.mxu0 %v4873_v38  ;;  %v4933_v38 = vpack.c.bf16 %v3937_v48, %v3936_v12 }
 0x49a   :  { %4875 = vmatprep.subr.bf16.mxu0 %v5104_v62 }
 0x49c   :  { %4436 = vmatmul.mubr.msk.f32.vlgmr.msra.gmra.mrb[24].mxu0 %vm864_vm8, %v3133_v52  ;;  %v3918_v52 = vld [vmem:[%s6784_s9 + $0x1f8] sm:$0xff] }
 0x49d   :  { %4877 = vmatpush3.bf16.msra.mxu0 %v4876_v50  ;;  %4466 = vmatprep.mubr.msk.f32.mxu0 %vm5105_vm3, %v5102_v8  ;;  %v4906_v53 = vpack.c.bf16 %v3918_v52, %v3917_v51  ;;  %v4936_v50 = vpack.c.bf16 %v3939_v41, %v3938_v49 }
 0x49e   :  { %4878 = vmatprep.subr.bf16.mxu0 %v5104_v62 }
 0x4a1   :  { %4880 = vmatpush3.bf16.msra.mxu0 %v4879_v33  ;;  %v4939_v33 = vpack.c.bf16 %v3942_v42, %v3941_v23 }
 0x4a2   :  { %4881 = vmatprep.subr.bf16.mxu0 %v5104_v62 }
 0x4a5   :  { %4883 = vmatpush3.bf16.msra.mxu0 %v4882_v36  ;;  %v4942_v36 = vpack.c.bf16 %v3944_v34, %v3943_v45 }
 0x4a6   :  { %4884 = vmatprep.subr.bf16.mxu0 %v5104_v62 }
 0x4a9   :  { %4886 = vmatpush3.bf16.msra.mxu0 %v4885_v10  ;;  %v4945_v10 = vpack.c.bf16 %v3946_v37, %v3945_v7 }
 0x4aa   :  { %4887 = vmatprep.subr.bf16.mxu0 %v5104_v62 }
 0x4ad   :  { %4889 = vmatpush3.bf16.msra.mxu0 %v4888_v11  ;;  %v3950_v11 = vld [vmem:[%s6784_s9 + $0x2e8] sm:$0xff] }
 0x4ae   :  { %4890 = vmatprep.subr.bf16.mxu0 %v5104_v62  ;;  %v4951_v14 = vpack.c.bf16 %v3950_v11, %v3949_v3 }
 0x4b1   :  { %4892 = vmatpush3.bf16.msra.mxu0 %v4891_v61  ;;  %v3952_v61 = vld [vmem:[%s6784_s9 + $0x2f8] sm:$0xff] }
 0x4b2   :  { %4893 = vmatprep.subr.bf16.mxu0 %v5104_v62  ;;  %v4954_v25 = vpack.c.bf16 %v3952_v61, %v3951_v5 }
 0x4b5   :  { %4895 = vmatpush3.bf16.msra.mxu0 %v4894_v17  ;;  %v3954_v17 = vld [vmem:[%s6784_s9 + $0x308] sm:$0xff] }
 0x4b6   :  { %4896 = vmatprep.subr.bf16.mxu0 %v5104_v62  ;;  %v4957_v35 = vpack.c.bf16 %v3954_v17, %v3953_v29 }
 0x4b8   :  { %4467 = vmatmul.mubr.msk.f32.vlgmr.msra.gmra.mrb[24].mxu0 %vm864_vm8, %v6494_v16  ;;  %v3924_v16 = vld [vmem:[%s6784_s9 + $0x228] sm:$0xff] }
 0x4b9   :  { %4898 = vmatpush3.bf16.msra.mxu0 %v4897_v31  ;;  %4497 = vmatprep.mubr.msk.f32.mxu0 %vm5105_vm3, %v5102_v8  ;;  %v4915_v60 = vpack.c.bf16 %v3924_v16, %v3923_v59 }
 0x4ba   :  { %4899 = vmatprep.subr.bf16.mxu0 %v5104_v62 }
 0x4bd   :  { %4901 = vmatpush3.bf16.msra.mxu0 %v4900_v56 }
 0x4be   :  { %4902 = vmatprep.subr.bf16.mxu0 %v5104_v62 }
 0x4c1   :  { %4904 = vmatpush3.bf16.msra.mxu0 %v4903_v46 }
 0x4c2   :  { %4905 = vmatprep.subr.bf16.mxu0 %v5104_v62 }
 0x4c5   :  { %4907 = vmatpush3.bf16.msra.mxu0 %v4906_v53 }
 0x4c6   :  { %4908 = vmatprep.subr.bf16.mxu0 %v5104_v62 }
 0x4c9   :  { %4910 = vmatpush3.bf16.msra.mxu0 %v4909_v55 }
 0x4ca   :  { %4911 = vmatprep.subr.bf16.mxu0 %v5104_v62 }
 0x4cd   :  { %4913 = vmatpush3.bf16.msra.mxu0 %v4912_v58 }
 0x4ce   :  { %4914 = vmatprep.subr.bf16.mxu0 %v5104_v62 }
 0x4d1   :  { %4916 = vmatpush3.bf16.msra.mxu0 %v4915_v60 }
 0x4d2   :  { %4917 = vmatprep.subr.bf16.mxu0 %v5104_v62 }
 0x4d4   :  { %4498 = vmatmul.mubr.msk.f32.vlgmr.msra.gmra.mrb[24].mxu0 %vm864_vm8, %v6505_v26  ;;  %v3932_v26 = vld [vmem:[%s6784_s9 + $0x260] sm:$0xff] }
 0x4d5   :  { %4919 = vmatpush3.bf16.msra.mxu0 %v4918_v13  ;;  %4528 = vmatprep.mubr.msk.f32.mxu0 %vm5105_vm3, %v5102_v8  ;;  %v4927_v22 = vpack.c.bf16 %v3933_v15, %v3932_v26 }
 0x4d6   :  { %4920 = vmatprep.subr.bf16.mxu0 %v5104_v62 }
 0x4d9   :  { %4922 = vmatpush3.bf16.msra.mxu0 %v4921_v24 }
 0x4da   :  { %4923 = vmatprep.subr.bf16.mxu0 %v5104_v62 }
 0x4dd   :  { %4925 = vmatpush3.bf16.msra.mxu0 %v4924_v18 }
 0x4de   :  { %4926 = vmatprep.subr.bf16.mxu0 %v5104_v62 }
 0x4e1   :  { %4928 = vmatpush3.bf16.msra.mxu0 %v4927_v22 }
 0x4e2   :  { %4929 = vmatprep.subr.bf16.mxu0 %v5104_v62 }
 0x4e5   :  { %4931 = vmatpush3.bf16.msra.mxu0 %v4930_v2 }
 0x4e6   :  { %4932 = vmatprep.subr.bf16.mxu0 %v5104_v62 }
 0x4e9   :  { %4934 = vmatpush3.bf16.msra.mxu0 %v4933_v38 }
 0x4ea   :  { %4935 = vmatprep.subr.bf16.mxu0 %v5104_v62 }
 0x4ed   :  { %4937 = vmatpush3.bf16.msra.mxu0 %v4936_v50 }
 0x4ee   :  { %4938 = vmatprep.subr.bf16.mxu0 %v5104_v62 }
 0x4f0   :  { %4529 = vmatmul.mubr.msk.f32.vlgmr.msra.gmra.mrb[24].mxu0 %vm864_vm8, %v6510_v47  ;;  %v3947_v47 = vld [vmem:[%s6784_s9 + $0x2d0] sm:$0xff] }
 0x4f1   :  { %4940 = vmatpush3.bf16.msra.mxu0 %v4939_v33  ;;  %4559 = vmatprep.mubr.msk.f32.mxu0 %vm5105_vm3, %v5102_v8  ;;  %v3948_v8 = vld [vmem:[%s6784_s9 + $0x2d8] sm:$0xff]  ;;  %s5106_s9 = smov [#allocation4]  }
 0x4f2   :  { %4941 = vmatprep.subr.bf16.mxu0 %v5104_v62  ;;  %v4948_v20 = vpack.c.bf16 %v3948_v8, %v3947_v47  ;;  %s3624_s10 = sshll.u32 %s5106_s9, 4  ;;  %s3625_s10 = int_to_ptr.vmem [resolvable:$true] %s3624_s10 }
 0x4f3   :  { %s5077_s15 = scalar_lea.vmem %s3625_s10, 32  ;;  %p5082_p1 = scmp.lt.s32.totalorder %s3625_s10, %s3625_s10 }
 0x4f4   :  { %p5078_p0 = scmp.ne.s32.totalorder %s3625_s10, %s5077_s15  ;;  %p5083_p2 = scmp.lt.s32.totalorder %s5077_s15, %s5077_s15 }
 0x4f5   :  { %4943 = vmatpush3.bf16.msra.mxu0 %v4942_v36 }
 0x4f6   :  { %4944 = vmatprep.subr.bf16.mxu0 %v5104_v62  ;;  %p5084_p3 = por %p5083_p2, %p5082_p1 }
 0x4f8   :  { %p5085_p4 = pnand %p5084_p3, %p5078_p0 }
 0x4f9   :  { %4946 = vmatpush3.bf16.msra.mxu0 %v4945_v10 }
 0x4fa   :  { %4947 = vmatprep.subr.bf16.mxu0 %v5104_v62 }
 0x4fd   :  { %4949 = vmatpush3.bf16.msra.mxu0 %v4948_v20 }
 0x4fe   :  { %4950 = vmatprep.subr.bf16.mxu0 %v5104_v62 }
 0x501   :  { %4952 = vmatpush3.bf16.msra.mxu0 %v4951_v14 }
 0x502   :  { %4953 = vmatprep.subr.bf16.mxu0 %v5104_v62 }
 0x505   :  { %4955 = vmatpush3.bf16.msra.mxu0 %v4954_v25 }
 0x506   :  { %4956 = vmatprep.subr.bf16.mxu0 %v5104_v62 }
 0x509   :  { %4958 = vmatpush3.bf16.msra.mxu0 %v4957_v35 }
 0x50c   :  { %4560 = vmatmul.mubr.msk.f32.vlgmr.msra.gmra.mrb[24].mxu0 %vm864_vm8, %v6513_v6 }
 0x551   :  { %v2998_v39 = vpop.f32.mrb[56].mxu1 }
 0x552   :  { %v4375_v31 = vpop.f32.mrb[57].mxu1  ;;  %v3008_v19 = vadd.f32 %v3865_v40, %v2998_v39 }
 0x5df   :  { %v3598_v56 = vpop.f32.mrb[24].mxu0 }
 0x5e0   :  { %v4968_v43 = vadd.f32 %v3598_v56, %v3008_v19  ;;  %v4561_v44 = vpop.f32.mrb[25].mxu0 }
 0x5e2   :  { %v3604_v46 = vsel %vm3603_vm4, %v4968_v43, -inf }
 0x5e3   :  { %3605 = vmax.xlane.f32.xlu0 %v3604_v46 }
 0x670   :  { %v3606_v51 = vpop.xlane.xlu0 %3605 }
 0x671   :  { %v3607_v62 = vsub.f32 %v4968_v43, %v3606_v51 }
 0x673   :  { %v3608_v52 = vmul.f32 1.442695, %v3607_v62 }
 0x675   :  { %5073 = vpow2.f32 %v3608_v52 }
 0x67f   :  { %v5074_v53 = vpop.eup %5073 }
 0x680   :  { %v3610_v6 = vsel %vm3603_vm4, %v5074_v53, 0.0 }
 0x681   :  { %3611 = vadd.xlane.f32.xlu0 %v3610_v6 }
 0x70e   :  { %v3612_v54 = vpop.xlane.xlu0 %3611 }
 0x70f   :  { %5075 = vlog2.f32 %v3612_v54 }
 0x719   :  { %v5076_v28 = vpop.eup %5075 }
 0x71a   :  { %v3614_v55 = vmul.f32 0.6931472, %v5076_v28 }
 0x71c   :  { %v3615_v9 = vadd.f32 %v3614_v55, %v3606_v51 }
 0x71e   :  { %v3616_v57 = vsub.f32 %v4968_v43, %v3615_v9 }
 0x720   :  { %3617 = vst.msk [vmem:[#allocation4] sm:$0x3] %vm3603_vm4, %v3616_v57 }
 0x721   :  { %5088 = shalt.err (!%p5085_p4)
}
 0x722   :  { %s5089_s17 = scalar_lea.hbm %s6786_s11, 32 }
 0x723   :  { %p5090_p5 = scmp.ne.s32.totalorder %s6786_s11, %s5089_s17  ;;  %p5093_p6 = scmp.lt.u32.totalorder %s5089_s17, %s6786_s11 }
 0x725   :  { %p5095_p7 = pnand %p5093_p6, %p5090_p5 }
 0x727   :  { %5098 = shalt.err (!%p5095_p7)
}
 0x728   :  { %3627 = dma.vmem_to_hbm [thread:$0]  %s3625_s10, 32, %s6786_s11, [#allocation5]  }
 0x729   :  { %5099 = dma.done.wait [#allocation5], 32  }
 0x72a   :  { %5100 = vsyncadd [#allocation5], 4294967264 }
 0x72b   :  { %3631 = vsyncpa [#allocation5], 1 }

</bundles_post_ra>
